<compile_context>
chip_gen: v7x
topology: tpu7x:2x2x1
jax: 0.10.0
libtpu: 0.0.40
codegen_flags: <defaults>
</compile_context>

<pallas_src>
import functools

import jax
import jax.numpy as jnp
from jax.experimental import pallas as pl
from jax.experimental.pallas import tpu as pltpu

IN_DIM = 32 * 32 * 3  # 3072

# (in, out, relu?) for each of the 9 Linear layers; last decoder layer uses tanh.
LAYER_DIMS = [
    # encoder
    (IN_DIM, 128, True),
    (128, 128, True),
    (128, 64, True),
    (64, 12, True),
    (12, 3, False),        # encoder output (no activation)
    # decoder
    (3, 12, True),
    (12, 64, True),
    (64, 128, True),
    (IN_DIM and 128, IN_DIM, False),  # followed by tanh
]

_BF16_LAYERS = (0, 8)  # the two 3072-wide matmuls dominate FLOPs / bandwidth


def _pad_dim(d):
    """Pad tiny hidden dims up to one full 128-lane vreg width (zero padding is exact)."""
    return d if d >= 128 else 128


def _round_up(n, m):
    return ((n + m - 1) // m) * m


@functools.lru_cache(maxsize=None)
def _physical_vmem_bytes():
    try:
        return int(pltpu.get_tpu_info().vmem_capacity_bytes)
    except Exception:
        return 64 << 20  # conservative (v7x-sized) fallback


@functools.lru_cache(maxsize=None)
def _vmem_limit_bytes():
    """Physical VMEM minus headroom, capped."""
    cap = _physical_vmem_bytes()
    return max(32 << 20, min(cap - (8 << 20), 112 << 20))


@functools.lru_cache(maxsize=None)
def _default_block_cap():
    """blk cap per generation: 1024 on 128 MiB-VMEM chips (v5e/v6e), 512 on 64 MiB v7x."""
    return 1024 if _physical_vmem_bytes() >= (96 << 20) else 512


@functools.lru_cache(maxsize=None)
def _has_bf16_eup():
    """v5e has no bf16 EUP; v6e/v7x do. Detection failure just picks the safe path."""
    try:
        kind = jax.devices()[0].device_kind.lower()
    except Exception:
        return True
    return not any(tag in kind for tag in ("v5 lite", "v5e", "v5litepod"))


def _choose_block(batch, block_b, cap):
    """Pick the batch tile: big enough for lane/sublane-dense MXU passes, small enough
    that large batches get >= ~4 grid steps (DMA/compute overlap + both v7x TCs)."""
    b8 = _round_up(batch, 8)
    quarter = _round_up(max(1, -(-b8 // 4)), 8)       # ~B/4, sublane-rounded
    blk = min(block_b, cap, max(128, quarter))        # floor of 128 rows
    return max(8, min(blk, b8))                       # never pad tiny batches up


def _autoencoder_kernel(x_ref, *refs, bf16_tanh):
    """refs = (w1, b1, ..., w9, b9, o_ref). All 9 layers fused per batch tile."""
    o_ref = refs[-1]
    param_refs = refs[:-1]

    n_layers = len(LAYER_DIMS)
    h = None
    for li, (_, _, use_relu) in enumerate(LAYER_DIMS):
        w = param_refs[2 * li][...]
        b = param_refs[2 * li + 1][...]            # (1, out) -> broadcasts
        # Cast activations (or the raw x tile for layer 0) to the weight dtype once;
        # accumulate in f32 on the MXU.
        lhs = (x_ref[...] if li == 0 else h).astype(w.dtype)
        h = jnp.dot(lhs, w, preferred_element_type=jnp.float32) + b
        if li < n_layers - 1:
            if use_relu:
                h = jnp.maximum(h, 0.0)
        else:
            # Final decoder activation. bf16 tanh halves EUP work on v6e/v7x; the
            # result precision is already bounded by the bf16 layer-9 matmul.
            h = jnp.tanh(h.astype(jnp.bfloat16) if bf16_tanh else h)
    o_ref[...] = h.astype(o_ref.dtype)


def prepare_params(params, use_bf16=True, bf16_all=False):
    """Pad tiny hidden dims to 128 lanes (exact: zero rows/cols contribute nothing,
    ReLU(0)=0, pad bias = 0) and cast the dominant weights to bf16. Call ONCE outside
    the hot loop; the result is what fcn_autoencoder_forward consumes.

    bf16_all=True additionally casts the middle-layer weights to bf16 (useful on v5e
    where f32 MXU throughput is low)."""
    prepared = []
    for li, (fi, fo, _) in enumerate(LAYER_DIMS):
        w, b = params[2 * li], params[2 * li + 1]
        assert w.shape == (fi, fo) and b.shape == (1, fo)
        pfi, pfo = _pad_dim(fi), _pad_dim(fo)
        if (pfi, pfo) != (fi, fo):
            w = jnp.pad(w, ((0, pfi - fi), (0, pfo - fo)))
            b = jnp.pad(b, ((0, 0), (0, pfo - fo)))
        if use_bf16 and (bf16_all or li in _BF16_LAYERS):
            w = w.astype(jnp.bfloat16)
        prepared.append(w)
        prepared.append(b)
    return prepared


def _param_spec(p):
    # Whole-array block, resident in VMEM across the grid. The index_map is
    # grid-invariant, so single-buffer it (frees the dead second pipeline buffer).
    # NOTE: bind ndim explicitly to avoid the late-binding closure bug.
    idx = lambda i, nd=p.ndim: (0,) * nd
    try:
        return pl.BlockSpec(p.shape, idx, pipeline_mode=pl.Buffered(1))
    except TypeError:  # older JAX without pipeline_mode kwarg
        return pl.BlockSpec(p.shape, idx)


@functools.partial(jax.jit, static_argnames=("block_b", "bf16_tanh", "out_dtype"))
def fcn_autoencoder_forward(x, prepared_params, block_b=None, bf16_tanh=None,
                            out_dtype=None):
    """x: (B, 3072); prepared_params: output of prepare_params() (flat [w1,b1,...,w9,b9],
    W is (in, out), already padded/cast)."""
    B, D = x.shape
    assert D == IN_DIM
    if out_dtype is None:
        out_dtype = x.dtype
    if bf16_tanh is None:
        # bf16 tanh only when the bf16 matmul path is active and the chip has a bf16 EUP.
        bf16_tanh = bool(prepared_params[0].dtype == jnp.bfloat16) and _has_bf16_eup()

    cap = _default_block_cap()
    blk = _choose_block(B, block_b if block_b is not None else cap, cap)
    B_pad = _round_up(B, blk)
    if B_pad != B:
        x = jnp.pad(x, ((0, B_pad - B), (0, 0)))

    grid = (B_pad // blk,)
    x_spec = pl.BlockSpec((blk, IN_DIM), lambda i: (i, 0))
    out_spec = pl.BlockSpec((blk, IN_DIM), lambda i: (i, 0))
    param_specs = [_param_spec(p) for p in prepared_params]

    flops_per_row = 2 * sum(fi * fo for fi, fo, _ in LAYER_DIMS)
    param_bytes = sum(int(p.size) * p.dtype.itemsize for p in prepared_params)
    cost = pl.CostEstimate(
        flops=int(flops_per_row * B_pad),
        transcendentals=int(B_pad * IN_DIM),
        bytes_accessed=int(
            B_pad * IN_DIM * (x.dtype.itemsize + jnp.dtype(out_dtype).itemsize)
            + param_bytes
        ),
    )

    kernel = functools.partial(_autoencoder_kernel, bf16_tanh=bool(bf16_tanh))
    out = pl.pallas_call(
        kernel,
        out_shape=jax.ShapeDtypeStruct((B_pad, IN_DIM), out_dtype),
        grid_spec=pltpu.PrefetchScalarGridSpec(
            num_scalar_prefetch=0,
            grid=grid,
            in_specs=[x_spec] + param_specs,
            out_specs=out_spec,
        ),
        compiler_params=pltpu.CompilerParams(
            dimension_semantics=("parallel",),   # batch axis -> megacore split on v7x
            vmem_limit_bytes=_vmem_limit_bytes(),
        ),
        cost_estimate=cost,
    )(x, *prepared_params)

    return out[:B] if B_pad != B else out


def init_params(key):
    """Deterministic synthetic parameters: W_i (in, out), b_i (1, out)."""
    params = []
    for fan_in, fan_out, _ in LAYER_DIMS:
        kw, kb, key = jax.random.split(key, 3)
        bound = 1.0 / jnp.sqrt(fan_in)  # mimic torch.nn.Linear default init range
        w = jax.random.uniform(kw, (fan_in, fan_out), jnp.float32, -bound, bound)
        b = jax.random.uniform(kb, (1, fan_out), jnp.float32, -bound, bound)
        params.extend([w, b])
    return params


def reference_forward(x, params):
    h = x
    n_layers = len(LAYER_DIMS)
    for li, (_, _, use_relu) in enumerate(LAYER_DIMS):
        w, b = params[2 * li], params[2 * li + 1]
        h = h @ w + b
        if li < n_layers - 1:
            if use_relu:
                h = jnp.maximum(h, 0.0)
        else:
            h = jnp.tanh(h)
    return h


if __name__ == "__main__":
    key = jax.random.PRNGKey(0)
    kx, kp = jax.random.split(key)

    B = 8  # small batch for the correctness check
    x = jax.random.uniform(kx, (B, IN_DIM), jnp.float32, -1.0, 1.0)
    params = init_params(kp)
    ref = reference_forward(x, params)

    # 1) f32 path. Tolerance is loose enough to cover chips where f32 MXU matmuls
    #    are emulated via multi-pass bf16 and need not bit-match XLA's default.
    p_f32 = prepare_params(params, use_bf16=False)
    out_f32 = jax.block_until_ready(
        fcn_autoencoder_forward(x, p_f32, bf16_tanh=False))
    assert out_f32.shape == (B, IN_DIM)
    assert jnp.allclose(out_f32, ref, atol=2e-3, rtol=2e-3), "f32 Pallas output mismatch"

    # 2) Default (bf16 big-matmul + bf16 tanh where supported) path: loose tolerance.
    p_bf16 = prepare_params(params, use_bf16=True)
    out_bf16 = jax.block_until_ready(fcn_autoencoder_forward(x, p_bf16))
    assert out_bf16.shape == (B, IN_DIM)
    assert jnp.allclose(out_bf16, ref, atol=3e-2, rtol=3e-2), "bf16 Pallas output mismatch"

    # 3) Batch not divisible by the block: exercises the pad + slice path.
    B2 = 12
    x2 = jax.random.uniform(jax.random.PRNGKey(1), (B2, IN_DIM), jnp.float32, -1.0, 1.0)
    out2 = jax.block_until_ready(
        fcn_autoencoder_forward(x2, p_f32, bf16_tanh=False))
    assert out2.shape == (B2, IN_DIM)
    assert jnp.allclose(out2, reference_forward(x2, params), atol=2e-3, rtol=2e-3), \
        "ragged-batch Pallas output mismatch"

    print("KERNEL_OK")
</pallas_src>

<mosaic_0001>
module attributes {stable_mosaic.version = 11 : i64} {
  func.func @_autoencoder_kernel(%arg0: i32, %arg1: memref<8x3072xf32, #tpu.memory_space<vmem>>, %arg2: memref<3072x128xf32, #tpu.memory_space<vmem>>, %arg3: memref<1x128xf32, #tpu.memory_space<vmem>>, %arg4: memref<128x128xf32, #tpu.memory_space<vmem>>, %arg5: memref<1x128xf32, #tpu.memory_space<vmem>>, %arg6: memref<128x128xf32, #tpu.memory_space<vmem>>, %arg7: memref<1x128xf32, #tpu.memory_space<vmem>>, %arg8: memref<128x128xf32, #tpu.memory_space<vmem>>, %arg9: memref<1x128xf32, #tpu.memory_space<vmem>>, %arg10: memref<128x128xf32, #tpu.memory_space<vmem>>, %arg11: memref<1x128xf32, #tpu.memory_space<vmem>>, %arg12: memref<128x128xf32, #tpu.memory_space<vmem>>, %arg13: memref<1x128xf32, #tpu.memory_space<vmem>>, %arg14: memref<128x128xf32, #tpu.memory_space<vmem>>, %arg15: memref<1x128xf32, #tpu.memory_space<vmem>>, %arg16: memref<128x128xf32, #tpu.memory_space<vmem>>, %arg17: memref<1x128xf32, #tpu.memory_space<vmem>>, %arg18: memref<128x3072xf32, #tpu.memory_space<vmem>>, %arg19: memref<1x3072xf32, #tpu.memory_space<vmem>>, %arg20: memref<8x3072xf32, #tpu.memory_space<vmem>>) attributes {dimension_semantics = [#tpu.dimension_semantics<parallel>], iteration_bounds = array<i64: 1>, scalar_prefetch = 0 : i64, scratch_operands = 0 : i64, tpu.core_type = #tpu.core_type<tc>, window_params = [{transform_indices = @transform_0, window_bounds = array<i64: 8, 3072>}, {pipeline_mode = #tpu.pipeline_mode<synchronous>, transform_indices = @transform_1, window_bounds = array<i64: 3072, 128>}, {pipeline_mode = #tpu.pipeline_mode<synchronous>, transform_indices = @transform_2, window_bounds = array<i64: 1, 128>}, {pipeline_mode = #tpu.pipeline_mode<synchronous>, transform_indices = @transform_3, window_bounds = array<i64: 128, 128>}, {pipeline_mode = #tpu.pipeline_mode<synchronous>, transform_indices = @transform_4, window_bounds = array<i64: 1, 128>}, {pipeline_mode = #tpu.pipeline_mode<synchronous>, transform_indices = @transform_5, window_bounds = array<i64: 128, 128>}, {pipeline_mode = #tpu.pipeline_mode<synchronous>, transform_indices = @transform_6, window_bounds = array<i64: 1, 128>}, {pipeline_mode = #tpu.pipeline_mode<synchronous>, transform_indices = @transform_7, window_bounds = array<i64: 128, 128>}, {pipeline_mode = #tpu.pipeline_mode<synchronous>, transform_indices = @transform_8, window_bounds = array<i64: 1, 128>}, {pipeline_mode = #tpu.pipeline_mode<synchronous>, transform_indices = @transform_9, window_bounds = array<i64: 128, 128>}, {pipeline_mode = #tpu.pipeline_mode<synchronous>, transform_indices = @transform_10, window_bounds = array<i64: 1, 128>}, {pipeline_mode = #tpu.pipeline_mode<synchronous>, transform_indices = @transform_11, window_bounds = array<i64: 128, 128>}, {pipeline_mode = #tpu.pipeline_mode<synchronous>, transform_indices = @transform_12, window_bounds = array<i64: 1, 128>}, {pipeline_mode = #tpu.pipeline_mode<synchronous>, transform_indices = @transform_13, window_bounds = array<i64: 128, 128>}, {pipeline_mode = #tpu.pipeline_mode<synchronous>, transform_indices = @transform_14, window_bounds = array<i64: 1, 128>}, {pipeline_mode = #tpu.pipeline_mode<synchronous>, transform_indices = @transform_15, window_bounds = array<i64: 128, 128>}, {pipeline_mode = #tpu.pipeline_mode<synchronous>, transform_indices = @transform_16, window_bounds = array<i64: 1, 128>}, {pipeline_mode = #tpu.pipeline_mode<synchronous>, transform_indices = @transform_17, window_bounds = array<i64: 128, 3072>}, {pipeline_mode = #tpu.pipeline_mode<synchronous>, transform_indices = @transform_18, window_bounds = array<i64: 1, 3072>}, {transform_indices = @transform_19, window_bounds = array<i64: 8, 3072>}]} {
    %c0 = arith.constant 0 : index
    %c0_0 = arith.constant 0 : index
    %0 = vector.load %arg2[%c0, %c0_0] : memref<3072x128xf32, #tpu.memory_space<vmem>>, vector<3072x128xf32>
    %c0_1 = arith.constant 0 : index
    %c0_2 = arith.constant 0 : index
    %1 = vector.load %arg3[%c0_1, %c0_2] : memref<1x128xf32, #tpu.memory_space<vmem>>, vector<1x128xf32>
    %c0_3 = arith.constant 0 : index
    %c0_4 = arith.constant 0 : index
    %2 = vector.load %arg1[%c0_3, %c0_4] : memref<8x3072xf32, #tpu.memory_space<vmem>>, vector<8x3072xf32>
    %cst = arith.constant dense<0.000000e+00> : vector<8x128xf32>
    %3 = tpu.matmul %2, %0, %cst {dimension_numbers = #tpu.dot_dimension_numbers<[1], [0], [0], [1], [0, 0, 1, 1], [], []>} : vector<8x3072xf32>, vector<3072x128xf32>, vector<8x128xf32> -> vector<8x128xf32>
    %4 = vector.broadcast %1 : vector<1x128xf32> to vector<8x128xf32>
    %5 = arith.addf %3, %4 : vector<8x128xf32>
    %cst_5 = arith.constant 0.000000e+00 : f32
    %6 = vector.broadcast %cst_5 : f32 to vector<8x128xf32>
    %7 = arith.maximumf %5, %6 : vector<8x128xf32>
    %c0_6 = arith.constant 0 : index
    %c0_7 = arith.constant 0 : index
    %8 = vector.load %arg4[%c0_6, %c0_7] : memref<128x128xf32, #tpu.memory_space<vmem>>, vector<128x128xf32>
    %c0_8 = arith.constant 0 : index
    %c0_9 = arith.constant 0 : index
    %9 = vector.load %arg5[%c0_8, %c0_9] : memref<1x128xf32, #tpu.memory_space<vmem>>, vector<1x128xf32>
    %cst_10 = arith.constant dense<0.000000e+00> : vector<8x128xf32>
    %10 = tpu.matmul %7, %8, %cst_10 {dimension_numbers = #tpu.dot_dimension_numbers<[1], [0], [0], [1], [0, 0, 1, 1], [], []>} : vector<8x128xf32>, vector<128x128xf32>, vector<8x128xf32> -> vector<8x128xf32>
    %11 = vector.broadcast %9 : vector<1x128xf32> to vector<8x128xf32>
    %12 = arith.addf %10, %11 : vector<8x128xf32>
    %cst_11 = arith.constant 0.000000e+00 : f32
    %13 = vector.broadcast %cst_11 : f32 to vector<8x128xf32>
    %14 = arith.maximumf %12, %13 : vector<8x128xf32>
    %c0_12 = arith.constant 0 : index
    %c0_13 = arith.constant 0 : index
    %15 = vector.load %arg6[%c0_12, %c0_13] : memref<128x128xf32, #tpu.memory_space<vmem>>, vector<128x128xf32>
    %c0_14 = arith.constant 0 : index
    %c0_15 = arith.constant 0 : index
    %16 = vector.load %arg7[%c0_14, %c0_15] : memref<1x128xf32, #tpu.memory_space<vmem>>, vector<1x128xf32>
    %cst_16 = arith.constant dense<0.000000e+00> : vector<8x128xf32>
    %17 = tpu.matmul %14, %15, %cst_16 {dimension_numbers = #tpu.dot_dimension_numbers<[1], [0], [0], [1], [0, 0, 1, 1], [], []>} : vector<8x128xf32>, vector<128x128xf32>, vector<8x128xf32> -> vector<8x128xf32>
    %18 = vector.broadcast %16 : vector<1x128xf32> to vector<8x128xf32>
    %19 = arith.addf %17, %18 : vector<8x128xf32>
    %cst_17 = arith.constant 0.000000e+00 : f32
    %20 = vector.broadcast %cst_17 : f32 to vector<8x128xf32>
    %21 = arith.maximumf %19, %20 : vector<8x128xf32>
    %c0_18 = arith.constant 0 : index
    %c0_19 = arith.constant 0 : index
    %22 = vector.load %arg8[%c0_18, %c0_19] : memref<128x128xf32, #tpu.memory_space<vmem>>, vector<128x128xf32>
    %c0_20 = arith.constant 0 : index
    %c0_21 = arith.constant 0 : index
    %23 = vector.load %arg9[%c0_20, %c0_21] : memref<1x128xf32, #tpu.memory_space<vmem>>, vector<1x128xf32>
    %cst_22 = arith.constant dense<0.000000e+00> : vector<8x128xf32>
    %24 = tpu.matmul %21, %22, %cst_22 {dimension_numbers = #tpu.dot_dimension_numbers<[1], [0], [0], [1], [0, 0, 1, 1], [], []>} : vector<8x128xf32>, vector<128x128xf32>, vector<8x128xf32> -> vector<8x128xf32>
    %25 = vector.broadcast %23 : vector<1x128xf32> to vector<8x128xf32>
    %26 = arith.addf %24, %25 : vector<8x128xf32>
    %cst_23 = arith.constant 0.000000e+00 : f32
    %27 = vector.broadcast %cst_23 : f32 to vector<8x128xf32>
    %28 = arith.maximumf %26, %27 : vector<8x128xf32>
    %c0_24 = arith.constant 0 : index
    %c0_25 = arith.constant 0 : index
    %29 = vector.load %arg10[%c0_24, %c0_25] : memref<128x128xf32, #tpu.memory_space<vmem>>, vector<128x128xf32>
    %c0_26 = arith.constant 0 : index
    %c0_27 = arith.constant 0 : index
    %30 = vector.load %arg11[%c0_26, %c0_27] : memref<1x128xf32, #tpu.memory_space<vmem>>, vector<1x128xf32>
    %cst_28 = arith.constant dense<0.000000e+00> : vector<8x128xf32>
    %31 = tpu.matmul %28, %29, %cst_28 {dimension_numbers = #tpu.dot_dimension_numbers<[1], [0], [0], [1], [0, 0, 1, 1], [], []>} : vector<8x128xf32>, vector<128x128xf32>, vector<8x128xf32> -> vector<8x128xf32>
    %32 = vector.broadcast %30 : vector<1x128xf32> to vector<8x128xf32>
    %33 = arith.addf %31, %32 : vector<8x128xf32>
    %c0_29 = arith.constant 0 : index
    %c0_30 = arith.constant 0 : index
    %34 = vector.load %arg12[%c0_29, %c0_30] : memref<128x128xf32, #tpu.memory_space<vmem>>, vector<128x128xf32>
    %c0_31 = arith.constant 0 : index
    %c0_32 = arith.constant 0 : index
    %35 = vector.load %arg13[%c0_31, %c0_32] : memref<1x128xf32, #tpu.memory_space<vmem>>, vector<1x128xf32>
    %cst_33 = arith.constant dense<0.000000e+00> : vector<8x128xf32>
    %36 = tpu.matmul %33, %34, %cst_33 {dimension_numbers = #tpu.dot_dimension_numbers<[1], [0], [0], [1], [0, 0, 1, 1], [], []>} : vector<8x128xf32>, vector<128x128xf32>, vector<8x128xf32> -> vector<8x128xf32>
    %37 = vector.broadcast %35 : vector<1x128xf32> to vector<8x128xf32>
    %38 = arith.addf %36, %37 : vector<8x128xf32>
    %cst_34 = arith.constant 0.000000e+00 : f32
    %39 = vector.broadcast %cst_34 : f32 to vector<8x128xf32>
    %40 = arith.maximumf %38, %39 : vector<8x128xf32>
    %c0_35 = arith.constant 0 : index
    %c0_36 = arith.constant 0 : index
    %41 = vector.load %arg14[%c0_35, %c0_36] : memref<128x128xf32, #tpu.memory_space<vmem>>, vector<128x128xf32>
    %c0_37 = arith.constant 0 : index
    %c0_38 = arith.constant 0 : index
    %42 = vector.load %arg15[%c0_37, %c0_38] : memref<1x128xf32, #tpu.memory_space<vmem>>, vector<1x128xf32>
    %cst_39 = arith.constant dense<0.000000e+00> : vector<8x128xf32>
    %43 = tpu.matmul %40, %41, %cst_39 {dimension_numbers = #tpu.dot_dimension_numbers<[1], [0], [0], [1], [0, 0, 1, 1], [], []>} : vector<8x128xf32>, vector<128x128xf32>, vector<8x128xf32> -> vector<8x128xf32>
    %44 = vector.broadcast %42 : vector<1x128xf32> to vector<8x128xf32>
    %45 = arith.addf %43, %44 : vector<8x128xf32>
    %cst_40 = arith.constant 0.000000e+00 : f32
    %46 = vector.broadcast %cst_40 : f32 to vector<8x128xf32>
    %47 = arith.maximumf %45, %46 : vector<8x128xf32>
    %c0_41 = arith.constant 0 : index
    %c0_42 = arith.constant 0 : index
    %48 = vector.load %arg16[%c0_41, %c0_42] : memref<128x128xf32, #tpu.memory_space<vmem>>, vector<128x128xf32>
    %c0_43 = arith.constant 0 : index
    %c0_44 = arith.constant 0 : index
    %49 = vector.load %arg17[%c0_43, %c0_44] : memref<1x128xf32, #tpu.memory_space<vmem>>, vector<1x128xf32>
    %cst_45 = arith.constant dense<0.000000e+00> : vector<8x128xf32>
    %50 = tpu.matmul %47, %48, %cst_45 {dimension_numbers = #tpu.dot_dimension_numbers<[1], [0], [0], [1], [0, 0, 1, 1], [], []>} : vector<8x128xf32>, vector<128x128xf32>, vector<8x128xf32> -> vector<8x128xf32>
    %51 = vector.broadcast %49 : vector<1x128xf32> to vector<8x128xf32>
    %52 = arith.addf %50, %51 : vector<8x128xf32>
    %cst_46 = arith.constant 0.000000e+00 : f32
    %53 = vector.broadcast %cst_46 : f32 to vector<8x128xf32>
    %54 = arith.maximumf %52, %53 : vector<8x128xf32>
    %c0_47 = arith.constant 0 : index
    %c0_48 = arith.constant 0 : index
    %55 = vector.load %arg18[%c0_47, %c0_48] : memref<128x3072xf32, #tpu.memory_space<vmem>>, vector<128x3072xf32>
    %c0_49 = arith.constant 0 : index
    %c0_50 = arith.constant 0 : index
    %56 = vector.load %arg19[%c0_49, %c0_50] : memref<1x3072xf32, #tpu.memory_space<vmem>>, vector<1x3072xf32>
    %cst_51 = arith.constant dense<0.000000e+00> : vector<8x3072xf32>
    %57 = tpu.matmul %54, %55, %cst_51 {dimension_numbers = #tpu.dot_dimension_numbers<[1], [0], [0], [1], [0, 0, 1, 1], [], []>} : vector<8x128xf32>, vector<128x3072xf32>, vector<8x3072xf32> -> vector<8x3072xf32>
    %58 = vector.broadcast %56 : vector<1x3072xf32> to vector<8x3072xf32>
    %59 = arith.addf %57, %58 : vector<8x3072xf32>
    %60 = math.tanh %59 : vector<8x3072xf32>
    %c0_52 = arith.constant 0 : index
    %c0_53 = arith.constant 0 : index
    %61 = vector.load %arg20[%c0_52, %c0_53] : memref<8x3072xf32, #tpu.memory_space<vmem>>, vector<8x3072xf32>
    tpu.vector_store %arg20[%c0_52, %c0_53], %60 {strides = array<i32>} : memref<8x3072xf32, #tpu.memory_space<vmem>>, vector<8x3072xf32>,
    return
  }
  func.func @transform_0(%arg0: i32) -> (i32, i32) {
    %c0_i32 = arith.constant 0 : i32
    %c0_i32_0 = arith.constant 0 : i32
    return %arg0, %c0_i32 : i32, i32
  }
  func.func @transform_1(%arg0: i32) -> (i32, i32) {
    %c0_i32 = arith.constant 0 : i32
    %c0_i32_0 = arith.constant 0 : i32
    %c0_i32_1 = arith.constant 0 : i32
    return %c0_i32, %c0_i32_0 : i32, i32
  }
  func.func @transform_2(%arg0: i32) -> (i32, i32) {
    %c0_i32 = arith.constant 0 : i32
    %c0_i32_0 = arith.constant 0 : i32
    %c0_i32_1 = arith.constant 0 : i32
    return %c0_i32, %c0_i32_0 : i32, i32
  }
  func.func @transform_3(%arg0: i32) -> (i32, i32) {
    %c0_i32 = arith.constant 0 : i32
    %c0_i32_0 = arith.constant 0 : i32
    %c0_i32_1 = arith.constant 0 : i32
    return %c0_i32, %c0_i32_0 : i32, i32
  }
  func.func @transform_4(%arg0: i32) -> (i32, i32) {
    %c0_i32 = arith.constant 0 : i32
    %c0_i32_0 = arith.constant 0 : i32
    %c0_i32_1 = arith.constant 0 : i32
    return %c0_i32, %c0_i32_0 : i32, i32
  }
  func.func @transform_5(%arg0: i32) -> (i32, i32) {
    %c0_i32 = arith.constant 0 : i32
    %c0_i32_0 = arith.constant 0 : i32
    %c0_i32_1 = arith.constant 0 : i32
    return %c0_i32, %c0_i32_0 : i32, i32
  }
  func.func @transform_6(%arg0: i32) -> (i32, i32) {
    %c0_i32 = arith.constant 0 : i32
    %c0_i32_0 = arith.constant 0 : i32
    %c0_i32_1 = arith.constant 0 : i32
    return %c0_i32, %c0_i32_0 : i32, i32
  }
  func.func @transform_7(%arg0: i32) -> (i32, i32) {
    %c0_i32 = arith.constant 0 : i32
    %c0_i32_0 = arith.constant 0 : i32
    %c0_i32_1 = arith.constant 0 : i32
    return %c0_i32, %c0_i32_0 : i32, i32
  }
  func.func @transform_8(%arg0: i32) -> (i32, i32) {
    %c0_i32 = arith.constant 0 : i32
    %c0_i32_0 = arith.constant 0 : i32
    %c0_i32_1 = arith.constant 0 : i32
    return %c0_i32, %c0_i32_0 : i32, i32
  }
  func.func @transform_9(%arg0: i32) -> (i32, i32) {
    %c0_i32 = arith.constant 0 : i32
    %c0_i32_0 = arith.constant 0 : i32
    %c0_i32_1 = arith.constant 0 : i32
    return %c0_i32, %c0_i32_0 : i32, i32
  }
  func.func @transform_10(%arg0: i32) -> (i32, i32) {
    %c0_i32 = arith.constant 0 : i32
    %c0_i32_0 = arith.constant 0 : i32
    %c0_i32_1 = arith.constant 0 : i32
    return %c0_i32, %c0_i32_0 : i32, i32
  }
  func.func @transform_11(%arg0: i32) -> (i32, i32) {
    %c0_i32 = arith.constant 0 : i32
    %c0_i32_0 = arith.constant 0 : i32
    %c0_i32_1 = arith.constant 0 : i32
    return %c0_i32, %c0_i32_0 : i32, i32
  }
  func.func @transform_12(%arg0: i32) -> (i32, i32) {
    %c0_i32 = arith.constant 0 : i32
    %c0_i32_0 = arith.constant 0 : i32
    %c0_i32_1 = arith.constant 0 : i32
    return %c0_i32, %c0_i32_0 : i32, i32
  }
  func.func @transform_13(%arg0: i32) -> (i32, i32) {
    %c0_i32 = arith.constant 0 : i32
    %c0_i32_0 = arith.constant 0 : i32
    %c0_i32_1 = arith.constant 0 : i32
    return %c0_i32, %c0_i32_0 : i32, i32
  }
  func.func @transform_14(%arg0: i32) -> (i32, i32) {
    %c0_i32 = arith.constant 0 : i32
    %c0_i32_0 = arith.constant 0 : i32
    %c0_i32_1 = arith.constant 0 : i32
    return %c0_i32, %c0_i32_0 : i32, i32
  }
  func.func @transform_15(%arg0: i32) -> (i32, i32) {
    %c0_i32 = arith.constant 0 : i32
    %c0_i32_0 = arith.constant 0 : i32
    %c0_i32_1 = arith.constant 0 : i32
    return %c0_i32, %c0_i32_0 : i32, i32
  }
  func.func @transform_16(%arg0: i32) -> (i32, i32) {
    %c0_i32 = arith.constant 0 : i32
    %c0_i32_0 = arith.constant 0 : i32
    %c0_i32_1 = arith.constant 0 : i32
    return %c0_i32, %c0_i32_0 : i32, i32
  }
  func.func @transform_17(%arg0: i32) -> (i32, i32) {
    %c0_i32 = arith.constant 0 : i32
    %c0_i32_0 = arith.constant 0 : i32
    %c0_i32_1 = arith.constant 0 : i32
    return %c0_i32, %c0_i32_0 : i32, i32
  }
  func.func @transform_18(%arg0: i32) -> (i32, i32) {
    %c0_i32 = arith.constant 0 : i32
    %c0_i32_0 = arith.constant 0 : i32
    %c0_i32_1 = arith.constant 0 : i32
    return %c0_i32, %c0_i32_0 : i32, i32
  }
  func.func @transform_19(%arg0: i32) -> (i32, i32) {
    %c0_i32 = arith.constant 0 : i32
    %c0_i32_0 = arith.constant 0 : i32
    return %arg0, %c0_i32 : i32, i32
  }
}

</mosaic_0001>

<bundles_post_ra>
// kernel: fcn_autoencoder_forward.1
= control target key start
LH: loop header
LB: loop body
LE: loop exit
PB: predicated region body
PF: predicated region fallthrough
CT: control target
= control target key end

     0   :  { %s6439_s0 = inlined_call_operand.hbm [shape: f32[8,3072], index: 0, kind: input, shape index: {}]   ;;  %s6440_s1 = inlined_call_operand.hbm [shape: f32[3072,128], index: 1, kind: input, shape index: {}]   ;;  %s6441_s2 = inlined_call_operand.hbm [shape: f32[1,128], index: 2, kind: input, shape index: {}]   ;;  %s6442_s3 = inlined_call_operand.hbm [shape: f32[128,128], index: 3, kind: input, shape index: {}]   ;;  %s6443_s4 = inlined_call_operand.hbm [shape: f32[1,128], index: 4, kind: input, shape index: {}]   ;;  %s6444_s5 = inlined_call_operand.hbm [shape: f32[128,128], index: 5, kind: input, shape index: {}]   ;;  %s6445_s6 = inlined_call_operand.hbm [shape: f32[1,128], index: 6, kind: input, shape index: {}]   ;;  %s6446_s7 = inlined_call_operand.hbm [shape: f32[128,128], index: 7, kind: input, shape index: {}]   ;;  %s6447_s8 = inlined_call_operand.hbm [shape: f32[1,128], index: 8, kind: input, shape index: {}]   ;;  %s6448_s9 = inlined_call_operand.hbm [shape: f32[128,128], index: 9, kind: input, shape index: {}]   ;;  %s6449_s10 = inlined_call_operand.hbm [shape: f32[1,128], index: 10, kind: input, shape index: {}]   ;;  %s6450_s11 = inlined_call_operand.hbm [shape: f32[128,128], index: 11, kind: input, shape index: {}]   ;;  %s6451_s12 = inlined_call_operand.hbm [shape: f32[1,128], index: 12, kind: input, shape index: {}]   ;;  %s6452_s13 = inlined_call_operand.hbm [shape: f32[128,128], index: 13, kind: input, shape index: {}]   ;;  %s6453_s14 = inlined_call_operand.hbm [shape: f32[1,128], index: 14, kind: input, shape index: {}]   ;;  %s6454_s15 = inlined_call_operand.hbm [shape: f32[128,128], index: 15, kind: input, shape index: {}]   ;;  %s6455_s16 = inlined_call_operand.hbm [shape: f32[1,128], index: 16, kind: input, shape index: {}]   ;;  %s6456_s17 = inlined_call_operand.hbm [shape: f32[128,3072], index: 17, kind: input, shape index: {}]   ;;  %s6457_s18 = inlined_call_operand.hbm [shape: f32[1,3072], index: 18, kind: input, shape index: {}]   ;;  %s6458_s19 = inlined_call_operand.hbm [shape: f32[8,3072], index: 19, kind: output, shape index: {}]  }
   0x1   :  { %6466 = sst [smem:[#allocation44_spill]] %s6439_s0 }
   0x2   :  { %6467 = sst [smem:[#allocation45_spill]] %s6440_s1 }
   0x3   :  { %6468 = sst [smem:[#allocation46_spill]] %s6441_s2 }
   0x4   :  { %6469 = sst [smem:[#allocation47_spill]] %s6442_s3 }
   0x5   :  { %6470 = sst [smem:[#allocation48_spill]] %s6455_s16 }
   0x6   :  { %6471 = sst [smem:[#allocation49_spill]] %s6457_s18 }
   0x7   :  { %6472 = sst [smem:[#allocation50_spill]] %s6458_s19 }
   0x8   :  { %24 = vsyncpa [#allocation3], 0 }
   0x9   :  { %25 = vsyncpa [#allocation6], 0 }
   0xa   :  { %26 = vsyncpa [#allocation9], 0 }
   0xb   :  { %27 = vsyncpa [#allocation12], 0 }
   0xc   :  { %28 = vsyncpa [#allocation15], 0 }
   0xd   :  { %29 = vsyncpa [#allocation18], 0 }
   0xe   :  { %30 = vsyncpa [#allocation21], 0 }
   0xf   :  { %31 = vsyncpa [#allocation24], 0 }
  0x10   :  { %32 = vsyncpa [#allocation27], 0 }
  0x11   :  { %33 = vsyncpa [#allocation30], 0 }
  0x12   :  { %34 = vsyncpa [#allocation4], 0  ;;  %s5912_s0 = smov [#allocation5]   ;;  %s6473_s1 = sld [smem:[#allocation45_spill]] }
  0x13   :  { %s50_s30 = sshll.u32 %s5912_s0, 4  ;;  %s51_s30 = int_to_ptr.vmem [resolvable:$true] %s50_s30 }
  0x18   :  { %s5450_s22 = scalar_lea.hbm %s6473_s1, 49152 }
  0x19   :  { %p5451_p0 = scmp.ne.s32.totalorder %s6473_s1, %s5450_s22  ;;  %p5454_p1 = scmp.lt.u32.totalorder %s5450_s22, %s6473_s1 }
  0x1b   :  { %p5456_p2 = pnand %p5454_p1, %p5451_p0 }
  0x1d   :  { %5459 = shalt.err (!%p5456_p2)
}
  0x1e   :  { %s5460_s3 = scalar_lea.vmem %s51_s30, 49152  ;;  %p5465_p4 = scmp.lt.s32.totalorder %s51_s30, %s51_s30 }
  0x1f   :  { %p5461_p3 = scmp.ne.s32.totalorder %s51_s30, %s5460_s3  ;;  %p5466_p5 = scmp.lt.s32.totalorder %s5460_s3, %s5460_s3 }
  0x21   :  { %p5467_p6 = por %p5466_p5, %p5465_p4 }
  0x23   :  { %p5468_p7 = pnand %p5467_p6, %p5461_p3 }
  0x25   :  { %5471 = shalt.err (!%p5468_p7)
}
  0x26   :  { %s5913_s26 = smov 128   ;;  %s5914_s27 = smov 8  }
  0x27   :  { %56 = dma.hbm_to_vmem [thread:$0]  %s6473_s1, 49152, %s51_s30, [#allocation6], %s5913_s26, %s5913_s26, %s5914_s27  }
  0x28   :  { %s5915_s0 = smov [#allocation8]   ;;  %s5916_s21 = smov [#allocation11]  }
  0x29   :  { %s72_s20 = sshll.u32 %s5915_s0, 4  ;;  %s94_s22 = sshll.u32 %s5916_s21, 4  ;;  %s73_s20 = int_to_ptr.vmem [resolvable:$true] %s72_s20  ;;  %s95_s22 = int_to_ptr.vmem [resolvable:$true] %s94_s22 }
  0x2a   :  { %s6474_s24 = sld [smem:[#allocation47_spill]] }
  0x30   :  { %s5472_s25 = scalar_lea.hbm %s6474_s24, 2048 }
  0x31   :  { %p5473_p8 = scmp.ne.s32.totalorder %s6474_s24, %s5472_s25  ;;  %p5476_p9 = scmp.lt.u32.totalorder %s5472_s25, %s6474_s24 }
  0x33   :  { %p5478_p10 = pnand %p5476_p9, %p5473_p8 }
  0x35   :  { %5481 = shalt.err (!%p5478_p10)
}
  0x36   :  { %s5482_s30 = scalar_lea.vmem %s73_s20, 2048  ;;  %p5487_p12 = scmp.lt.s32.totalorder %s73_s20, %s73_s20 }
  0x37   :  { %p5483_p11 = scmp.ne.s32.totalorder %s73_s20, %s5482_s30  ;;  %p5488_p13 = scmp.lt.s32.totalorder %s5482_s30, %s5482_s30 }
  0x39   :  { %p5489_p0 = por %p5488_p13, %p5487_p12 }
  0x3b   :  { %p5490_p1 = pnand %p5489_p0, %p5483_p11 }
  0x3d   :  { %5493 = shalt.err (!%p5490_p1)
}
  0x3e   :  { %78 = dma.hbm_to_vmem [thread:$0]  %s6474_s24, 2048, %s73_s20, [#allocation9], %s5913_s26, %s5913_s26, %s5914_s27  }
  0x3f   :  { %s5494_s18 = scalar_lea.hbm %s6444_s5, 2048 }
  0x40   :  { %p5495_p2 = scmp.ne.s32.totalorder %s6444_s5, %s5494_s18  ;;  %p5498_p3 = scmp.lt.u32.totalorder %s5494_s18, %s6444_s5 }
  0x42   :  { %p5500_p4 = pnand %p5498_p3, %p5495_p2 }
  0x44   :  { %5503 = shalt.err (!%p5500_p4)
}
  0x45   :  { %s5504_s23 = scalar_lea.vmem %s95_s22, 2048  ;;  %p5509_p6 = scmp.lt.s32.totalorder %s95_s22, %s95_s22 }
  0x46   :  { %p5505_p5 = scmp.ne.s32.totalorder %s95_s22, %s5504_s23  ;;  %p5510_p7 = scmp.lt.s32.totalorder %s5504_s23, %s5504_s23 }
  0x48   :  { %p5511_p8 = por %p5510_p7, %p5509_p6 }
  0x4a   :  { %p5512_p9 = pnand %p5511_p8, %p5505_p5 }
  0x4c   :  { %5515 = shalt.err (!%p5512_p9)
}
  0x4d   :  { %100 = dma.hbm_to_vmem [thread:$0]  %s6444_s5, 2048, %s95_s22, [#allocation12], %s5913_s26, %s5913_s26, %s5914_s27  }
  0x4e   :  { %s5917_s25 = smov [#allocation14]   ;;  %s5918_s30 = smov [#allocation17]  }
  0x4f   :  { %s116_s3 = sshll.u32 %s5917_s25, 4  ;;  %s138_s1 = sshll.u32 %s5918_s30, 4  ;;  %s117_s3 = int_to_ptr.vmem [resolvable:$true] %s116_s3  ;;  %s139_s1 = int_to_ptr.vmem [resolvable:$true] %s138_s1 }
  0x50   :  { %s5516_s16 = scalar_lea.hbm %s6446_s7, 2048 }
  0x51   :  { %p5517_p10 = scmp.ne.s32.totalorder %s6446_s7, %s5516_s16  ;;  %p5520_p11 = scmp.lt.u32.totalorder %s5516_s16, %s6446_s7 }
  0x53   :  { %p5522_p12 = pnand %p5520_p11, %p5517_p10 }
  0x55   :  { %5525 = shalt.err (!%p5522_p12)
}
  0x56   :  { %s5526_s5 = scalar_lea.vmem %s117_s3, 2048  ;;  %p5531_p0 = scmp.lt.s32.totalorder %s117_s3, %s117_s3 }
  0x57   :  { %p5527_p13 = scmp.ne.s32.totalorder %s117_s3, %s5526_s5  ;;  %p5532_p1 = scmp.lt.s32.totalorder %s5526_s5, %s5526_s5 }
  0x59   :  { %p5533_p2 = por %p5532_p1, %p5531_p0 }
  0x5b   :  { %p5534_p3 = pnand %p5533_p2, %p5527_p13 }
  0x5d   :  { %5537 = shalt.err (!%p5534_p3)
}
  0x5e   :  { %122 = dma.hbm_to_vmem [thread:$0]  %s6446_s7, 2048, %s117_s3, [#allocation15], %s5913_s26, %s5913_s26, %s5914_s27  }
  0x5f   :  { %s5538_s24 = scalar_lea.hbm %s6448_s9, 2048 }
  0x60   :  { %p5539_p4 = scmp.ne.s32.totalorder %s6448_s9, %s5538_s24  ;;  %p5542_p5 = scmp.lt.u32.totalorder %s5538_s24, %s6448_s9 }
  0x62   :  { %p5544_p6 = pnand %p5542_p5, %p5539_p4 }
  0x64   :  { %5547 = shalt.err (!%p5544_p6)
}
  0x65   :  { %s5548_s16 = scalar_lea.vmem %s139_s1, 2048  ;;  %p5553_p8 = scmp.lt.s32.totalorder %s139_s1, %s139_s1 }
  0x66   :  { %p5549_p7 = scmp.ne.s32.totalorder %s139_s1, %s5548_s16  ;;  %p5554_p9 = scmp.lt.s32.totalorder %s5548_s16, %s5548_s16 }
  0x68   :  { %p5555_p10 = por %p5554_p9, %p5553_p8 }
  0x6a   :  { %p5556_p11 = pnand %p5555_p10, %p5549_p7 }
  0x6c   :  { %5559 = shalt.err (!%p5556_p11)
}
  0x6d   :  { %144 = dma.hbm_to_vmem [thread:$0]  %s6448_s9, 2048, %s139_s1, [#allocation18], %s5913_s26, %s5913_s26, %s5914_s27  }
  0x6e   :  { %s5919_s18 = smov [#allocation20]   ;;  %s5920_s0 = smov [#allocation23]  }
  0x6f   :  { %s160_s29 = sshll.u32 %s5919_s18, 4  ;;  %s182_s21 = sshll.u32 %s5920_s0, 4  ;;  %s161_s29 = int_to_ptr.vmem [resolvable:$true] %s160_s29  ;;  %s183_s21 = int_to_ptr.vmem [resolvable:$true] %s182_s21 }
  0x70   :  { %s5560_s2 = scalar_lea.hbm %s6450_s11, 2048 }
  0x71   :  { %p5561_p12 = scmp.ne.s32.totalorder %s6450_s11, %s5560_s2  ;;  %p5564_p13 = scmp.lt.u32.totalorder %s5560_s2, %s6450_s11 }
  0x73   :  { %p5566_p0 = pnand %p5564_p13, %p5561_p12 }
  0x75   :  { %5569 = shalt.err (!%p5566_p0)
}
  0x76   :  { %s5570_s9 = scalar_lea.vmem %s161_s29, 2048  ;;  %p5575_p2 = scmp.lt.s32.totalorder %s161_s29, %s161_s29 }
  0x77   :  { %p5571_p1 = scmp.ne.s32.totalorder %s161_s29, %s5570_s9  ;;  %p5576_p3 = scmp.lt.s32.totalorder %s5570_s9, %s5570_s9 }
  0x79   :  { %p5577_p4 = por %p5576_p3, %p5575_p2 }
  0x7b   :  { %p5578_p5 = pnand %p5577_p4, %p5571_p1 }
  0x7d   :  { %5581 = shalt.err (!%p5578_p5)
}
  0x7e   :  { %166 = dma.hbm_to_vmem [thread:$0]  %s6450_s11, 2048, %s161_s29, [#allocation21], %s5913_s26, %s5913_s26, %s5914_s27  }
  0x7f   :  { %s5582_s16 = scalar_lea.hbm %s6452_s13, 2048 }
  0x80   :  { %p5583_p6 = scmp.ne.s32.totalorder %s6452_s13, %s5582_s16  ;;  %p5586_p7 = scmp.lt.u32.totalorder %s5582_s16, %s6452_s13 }
  0x82   :  { %p5588_p8 = pnand %p5586_p7, %p5583_p6 }
  0x84   :  { %5591 = shalt.err (!%p5588_p8)
}
  0x85   :  { %s5592_s5 = scalar_lea.vmem %s183_s21, 2048  ;;  %p5597_p10 = scmp.lt.s32.totalorder %s183_s21, %s183_s21 }
  0x86   :  { %p5593_p9 = scmp.ne.s32.totalorder %s183_s21, %s5592_s5  ;;  %p5598_p11 = scmp.lt.s32.totalorder %s5592_s5, %s5592_s5 }
  0x88   :  { %p5599_p12 = por %p5598_p11, %p5597_p10 }
  0x8a   :  { %p5600_p13 = pnand %p5599_p12, %p5593_p9 }
  0x8c   :  { %5603 = shalt.err (!%p5600_p13)
}
  0x8d   :  { %188 = dma.hbm_to_vmem [thread:$0]  %s6452_s13, 2048, %s183_s21, [#allocation24], %s5913_s26, %s5913_s26, %s5914_s27  }
  0x8e   :  { %s5921_s22 = smov [#allocation26]   ;;  %s5922_s23 = smov [#allocation29]  }
  0x8f   :  { %s204_s2 = sshll.u32 %s5921_s22, 4  ;;  %s226_s20 = sshll.u32 %s5922_s23, 4  ;;  %s205_s2 = int_to_ptr.vmem [resolvable:$true] %s204_s2  ;;  %s227_s20 = int_to_ptr.vmem [resolvable:$true] %s226_s20 }
  0x90   :  { %s5604_s9 = scalar_lea.hbm %s6454_s15, 2048 }
  0x91   :  { %p5605_p0 = scmp.ne.s32.totalorder %s6454_s15, %s5604_s9  ;;  %p5608_p1 = scmp.lt.u32.totalorder %s5604_s9, %s6454_s15 }
  0x93   :  { %p5610_p2 = pnand %p5608_p1, %p5605_p0 }
  0x95   :  { %5613 = shalt.err (!%p5610_p2)
}
  0x96   :  { %s5614_s13 = scalar_lea.vmem %s205_s2, 2048  ;;  %p5619_p4 = scmp.lt.s32.totalorder %s205_s2, %s205_s2 }
  0x97   :  { %p5615_p3 = scmp.ne.s32.totalorder %s205_s2, %s5614_s13  ;;  %p5620_p5 = scmp.lt.s32.totalorder %s5614_s13, %s5614_s13 }
  0x99   :  { %p5621_p6 = por %p5620_p5, %p5619_p4 }
  0x9b   :  { %p5622_p7 = pnand %p5621_p6, %p5615_p3 }
  0x9d   :  { %5625 = shalt.err (!%p5622_p7)
}
  0x9e   :  { %210 = dma.hbm_to_vmem [thread:$0]  %s6454_s15, 2048, %s205_s2, [#allocation27], %s5913_s26, %s5913_s26, %s5914_s27  }
  0x9f   :  { %s5626_s18 = scalar_lea.hbm %s6456_s17, 49152 }
  0xa0   :  { %p5627_p8 = scmp.ne.s32.totalorder %s6456_s17, %s5626_s18  ;;  %p5630_p9 = scmp.lt.u32.totalorder %s5626_s18, %s6456_s17 }
  0xa2   :  { %p5632_p10 = pnand %p5630_p9, %p5627_p8 }
  0xa4   :  { %5635 = shalt.err (!%p5632_p10)
}
  0xa5   :  { %s5636_s22 = scalar_lea.vmem %s227_s20, 49152  ;;  %p5641_p12 = scmp.lt.s32.totalorder %s227_s20, %s227_s20 }
  0xa6   :  { %p5637_p11 = scmp.ne.s32.totalorder %s227_s20, %s5636_s22  ;;  %p5642_p13 = scmp.lt.s32.totalorder %s5636_s22, %s5636_s22 }
  0xa8   :  { %p5643_p0 = por %p5642_p13, %p5641_p12 }
  0xaa   :  { %p5644_p1 = pnand %p5643_p0, %p5637_p11 }
  0xac   :  { %5647 = shalt.err (!%p5644_p1)
}
  0xad   :  { %s5923_s15 = smov 3072   ;;  %s5924_s26 = smov 192  }
  0xae   :  { %232 = dma.hbm_to_vmem [thread:$0]  %s6456_s17, 49152, %s227_s20, [#allocation30], %s5923_s15, %s5923_s15, %s5924_s26  }
  0xaf   :  { %s5925_s23 = smov [#allocation2]   ;;  %s5926_s25 = smov [#allocation7]  }
  0xb0   :  { %s41_s24 = sshll.u32 %s5925_s23, 4  ;;  %s63_s9 = sshll.u32 %s5926_s25, 4  ;;  %s42_s24 = int_to_ptr.vmem [resolvable:$true] %s41_s24  ;;  %s64_s9 = int_to_ptr.vmem [resolvable:$true] %s63_s9 }
  0xb1   :  { %s6475_s28 = sld [smem:[#allocation44_spill]] }
  0xb7   :  { %s5648_s19 = scalar_lea.hbm %s6475_s28, 3072 }
  0xb8   :  { %p5649_p2 = scmp.ne.s32.totalorder %s6475_s28, %s5648_s19  ;;  %p5652_p3 = scmp.lt.u32.totalorder %s5648_s19, %s6475_s28 }
  0xba   :  { %p5654_p4 = pnand %p5652_p3, %p5649_p2 }
  0xbc   :  { %5657 = shalt.err (!%p5654_p4)
}
  0xbd   :  { %s5658_s17 = scalar_lea.vmem %s42_s24, 3072  ;;  %p5663_p6 = scmp.lt.s32.totalorder %s42_s24, %s42_s24 }
  0xbe   :  { %p5659_p5 = scmp.ne.s32.totalorder %s42_s24, %s5658_s17  ;;  %p5664_p7 = scmp.lt.s32.totalorder %s5658_s17, %s5658_s17 }
  0xc0   :  { %p5665_p8 = por %p5664_p7, %p5663_p6 }
  0xc2   :  { %p5666_p9 = pnand %p5665_p8, %p5659_p5 }
  0xc4   :  { %5669 = shalt.err (!%p5666_p9)
}
  0xc5   :  { %44 = dma.hbm_to_vmem [thread:$0]  %s6475_s28, 3072, %s42_s24, [#allocation3]  }
  0xc6   :  { %s6476_s5 = sld [smem:[#allocation46_spill]] }
  0xcc   :  { %s5670_s11 = scalar_lea.hbm %s6476_s5, 16 }
  0xcd   :  { %p5671_p10 = scmp.ne.s32.totalorder %s6476_s5, %s5670_s11  ;;  %p5674_p11 = scmp.lt.u32.totalorder %s5670_s11, %s6476_s5 }
  0xcf   :  { %p5676_p12 = pnand %p5674_p11, %p5671_p10 }
  0xd1   :  { %5679 = shalt.err (!%p5676_p12)
}
  0xd2   :  { %s5680_s27 = scalar_lea.vmem %s64_s9, 16  ;;  %s5684_s2 = scalar_lea.vmem %s64_s9, 32 }
  0xd3   :  { %p5681_p13 = scmp.ne.s32.totalorder %s64_s9, %s5680_s27  ;;  %p5685_p0 = scmp.lt.s32.totalorder %s64_s9, %s64_s9 }
  0xd4   :  { %p5686_p1 = scmp.lt.s32.totalorder %s5684_s2, %s5680_s27 }
  0xd6   :  { %p5687_p2 = por %p5686_p1, %p5685_p0 }
  0xd8   :  { %p5688_p3 = pnand %p5687_p2, %p5681_p13 }
  0xda   :  { %5691 = shalt.err (!%p5688_p3)
}
  0xdb   :  { %66 = dma.hbm_to_vmem [thread:$0]  %s6476_s5, 16, %s64_s9, [#allocation6]  }
  0xdc   :  { %s5927_s25 = smov [#allocation10]   ;;  %s5928_s30 = smov [#allocation13]  }
  0xdd   :  { %s85_s1 = sshll.u32 %s5927_s25, 4  ;;  %s107_s28 = sshll.u32 %s5928_s30, 4  ;;  %s86_s1 = int_to_ptr.vmem [resolvable:$true] %s85_s1  ;;  %s108_s28 = int_to_ptr.vmem [resolvable:$true] %s107_s28 }
  0xde   :  { %s5692_s21 = scalar_lea.hbm %s6443_s4, 16 }
  0xdf   :  { %p5693_p4 = scmp.ne.s32.totalorder %s6443_s4, %s5692_s21  ;;  %p5696_p5 = scmp.lt.u32.totalorder %s5692_s21, %s6443_s4 }
  0xe1   :  { %p5698_p6 = pnand %p5696_p5, %p5693_p4 }
  0xe3   :  { %5701 = shalt.err (!%p5698_p6)
}
  0xe4   :  { %s5702_s9 = scalar_lea.vmem %s86_s1, 16  ;;  %s5706_s3 = scalar_lea.vmem %s86_s1, 32 }
  0xe5   :  { %p5703_p7 = scmp.ne.s32.totalorder %s86_s1, %s5702_s9  ;;  %p5707_p8 = scmp.lt.s32.totalorder %s86_s1, %s86_s1 }
  0xe6   :  { %p5708_p9 = scmp.lt.s32.totalorder %s5706_s3, %s5702_s9 }
  0xe8   :  { %p5709_p10 = por %p5708_p9, %p5707_p8 }
  0xea   :  { %p5710_p11 = pnand %p5709_p10, %p5703_p7 }
  0xec   :  { %5713 = shalt.err (!%p5710_p11)
}
  0xed   :  { %88 = dma.hbm_to_vmem [thread:$0]  %s6443_s4, 16, %s86_s1, [#allocation9]  }
  0xee   :  { %s5714_s29 = scalar_lea.hbm %s6445_s6, 16 }
  0xef   :  { %p5715_p12 = scmp.ne.s32.totalorder %s6445_s6, %s5714_s29  ;;  %p5718_p13 = scmp.lt.u32.totalorder %s5714_s29, %s6445_s6 }
  0xf1   :  { %p5720_p0 = pnand %p5718_p13, %p5715_p12 }
  0xf3   :  { %5723 = shalt.err (!%p5720_p0)
}
  0xf4   :  { %s5724_s2 = scalar_lea.vmem %s108_s28, 16  ;;  %s5728_s23 = scalar_lea.vmem %s108_s28, 32 }
  0xf5   :  { %p5725_p1 = scmp.ne.s32.totalorder %s108_s28, %s5724_s2  ;;  %p5729_p2 = scmp.lt.s32.totalorder %s108_s28, %s108_s28 }
  0xf6   :  { %p5730_p3 = scmp.lt.s32.totalorder %s5728_s23, %s5724_s2 }
  0xf8   :  { %p5731_p4 = por %p5730_p3, %p5729_p2 }
  0xfa   :  { %p5732_p5 = pnand %p5731_p4, %p5725_p1 }
  0xfc   :  { %5735 = shalt.err (!%p5732_p5)
}
  0xfd   :  { %110 = dma.hbm_to_vmem [thread:$0]  %s6445_s6, 16, %s108_s28, [#allocation12]  }
  0xfe   :  { %s5929_s25 = smov [#allocation16]   ;;  %s5930_s30 = smov [#allocation19]  }
  0xff   :  { %s129_s1 = sshll.u32 %s5929_s25, 4  ;;  %s151_s19 = sshll.u32 %s5930_s30, 4  ;;  %s130_s1 = int_to_ptr.vmem [resolvable:$true] %s129_s1  ;;  %s152_s19 = int_to_ptr.vmem [resolvable:$true] %s151_s19 }
 0x100   :  { %s5736_s16 = scalar_lea.hbm %s6447_s8, 16 }
 0x101   :  { %p5737_p6 = scmp.ne.s32.totalorder %s6447_s8, %s5736_s16  ;;  %p5740_p7 = scmp.lt.u32.totalorder %s5736_s16, %s6447_s8 }
 0x103   :  { %p5742_p8 = pnand %p5740_p7, %p5737_p6 }
 0x105   :  { %5745 = shalt.err (!%p5742_p8)
}
 0x106   :  { %s5746_s6 = scalar_lea.vmem %s130_s1, 16  ;;  %s5750_s28 = scalar_lea.vmem %s130_s1, 32 }
 0x107   :  { %p5747_p9 = scmp.ne.s32.totalorder %s130_s1, %s5746_s6  ;;  %p5751_p10 = scmp.lt.s32.totalorder %s130_s1, %s130_s1 }
 0x108   :  { %p5752_p11 = scmp.lt.s32.totalorder %s5750_s28, %s5746_s6 }
 0x10a   :  { %p5753_p12 = por %p5752_p11, %p5751_p10 }
 0x10c   :  { %p5754_p13 = pnand %p5753_p12, %p5747_p9 }
 0x10e   :  { %5757 = shalt.err (!%p5754_p13)
}
 0x10f   :  { %132 = dma.hbm_to_vmem [thread:$0]  %s6447_s8, 16, %s130_s1, [#allocation15]  }
 0x110   :  { %s5758_s11 = scalar_lea.hbm %s6449_s10, 16 }
 0x111   :  { %p5759_p0 = scmp.ne.s32.totalorder %s6449_s10, %s5758_s11  ;;  %p5762_p1 = scmp.lt.u32.totalorder %s5758_s11, %s6449_s10 }
 0x113   :  { %p5764_p2 = pnand %p5762_p1, %p5759_p0 }
 0x115   :  { %5767 = shalt.err (!%p5764_p2)
}
 0x116   :  { %s5768_s27 = scalar_lea.vmem %s152_s19, 16  ;;  %s5772_s2 = scalar_lea.vmem %s152_s19, 32 }
 0x117   :  { %p5769_p3 = scmp.ne.s32.totalorder %s152_s19, %s5768_s27  ;;  %p5773_p4 = scmp.lt.s32.totalorder %s152_s19, %s152_s19 }
 0x118   :  { %p5774_p5 = scmp.lt.s32.totalorder %s5772_s2, %s5768_s27 }
 0x11a   :  { %p5775_p6 = por %p5774_p5, %p5773_p4 }
 0x11c   :  { %p5776_p7 = pnand %p5775_p6, %p5769_p3 }
 0x11e   :  { %5779 = shalt.err (!%p5776_p7)
}
 0x11f   :  { %154 = dma.hbm_to_vmem [thread:$0]  %s6449_s10, 16, %s152_s19, [#allocation18]  }
 0x120   :  { %s5931_s4 = smov [#allocation22]   ;;  %s5932_s25 = smov [#allocation25]  }
 0x121   :  { %s173_s24 = sshll.u32 %s5931_s4, 4  ;;  %s195_s1 = sshll.u32 %s5932_s25, 4  ;;  %s174_s24 = int_to_ptr.vmem [resolvable:$true] %s173_s24  ;;  %s196_s1 = int_to_ptr.vmem [resolvable:$true] %s195_s1 }
 0x122   :  { %s5780_s21 = scalar_lea.hbm %s6451_s12, 16 }
 0x123   :  { %p5781_p8 = scmp.ne.s32.totalorder %s6451_s12, %s5780_s21  ;;  %p5784_p9 = scmp.lt.u32.totalorder %s5780_s21, %s6451_s12 }
 0x125   :  { %p5786_p10 = pnand %p5784_p9, %p5781_p8 }
 0x127   :  { %5789 = shalt.err (!%p5786_p10)
}
 0x128   :  { %s5790_s10 = scalar_lea.vmem %s174_s24, 16  ;;  %s5794_s19 = scalar_lea.vmem %s174_s24, 32 }
 0x129   :  { %p5791_p11 = scmp.ne.s32.totalorder %s174_s24, %s5790_s10  ;;  %p5795_p12 = scmp.lt.s32.totalorder %s174_s24, %s174_s24 }
 0x12a   :  { %p5796_p13 = scmp.lt.s32.totalorder %s5794_s19, %s5790_s10 }
 0x12c   :  { %p5797_p0 = por %p5796_p13, %p5795_p12 }
 0x12e   :  { %p5798_p1 = pnand %p5797_p0, %p5791_p11 }
 0x130   :  { %5801 = shalt.err (!%p5798_p1)
}
 0x131   :  { %176 = dma.hbm_to_vmem [thread:$0]  %s6451_s12, 16, %s174_s24, [#allocation21]  }
 0x132   :  { %s5802_s18 = scalar_lea.hbm %s6453_s14, 16 }
 0x133   :  { %p5803_p2 = scmp.ne.s32.totalorder %s6453_s14, %s5802_s18  ;;  %p5806_p3 = scmp.lt.u32.totalorder %s5802_s18, %s6453_s14 }
 0x135   :  { %p5808_p4 = pnand %p5806_p3, %p5803_p2 }
 0x137   :  { %5811 = shalt.err (!%p5808_p4)
}
 0x138   :  { %s5812_s22 = scalar_lea.vmem %s196_s1, 16  ;;  %s5816_s15 = scalar_lea.vmem %s196_s1, 32 }
 0x139   :  { %p5813_p5 = scmp.ne.s32.totalorder %s196_s1, %s5812_s22  ;;  %p5817_p6 = scmp.lt.s32.totalorder %s196_s1, %s196_s1 }
 0x13a   :  { %p5818_p7 = scmp.lt.s32.totalorder %s5816_s15, %s5812_s22 }
 0x13c   :  { %p5819_p8 = por %p5818_p7, %p5817_p6 }
 0x13e   :  { %p5820_p9 = pnand %p5819_p8, %p5813_p5 }
 0x140   :  { %5823 = shalt.err (!%p5820_p9)
}
 0x141   :  { %198 = dma.hbm_to_vmem [thread:$0]  %s6453_s14, 16, %s196_s1, [#allocation24]  }
 0x142   :  { %s5933_s27 = smov [#allocation28]   ;;  %s5934_s8 = smov [#allocation31]  }
 0x143   :  { %s217_s2 = sshll.u32 %s5933_s27, 4  ;;  %s239_s23 = sshll.u32 %s5934_s8, 4  ;;  %s218_s2 = int_to_ptr.vmem [resolvable:$true] %s217_s2  ;;  %s240_s23 = int_to_ptr.vmem [resolvable:$true] %s239_s23 }
 0x144   :  { %s6477_s25 = sld [smem:[#allocation48_spill]] }
 0x14a   :  { %s5824_s30 = scalar_lea.hbm %s6477_s25, 16 }
 0x14b   :  { %p5825_p10 = scmp.ne.s32.totalorder %s6477_s25, %s5824_s30  ;;  %p5828_p11 = scmp.lt.u32.totalorder %s5824_s30, %s6477_s25 }
 0x14d   :  { %p5830_p12 = pnand %p5828_p11, %p5825_p10 }
 0x14f   :  { %5833 = shalt.err (!%p5830_p12)
}
 0x150   :  { %s5834_s14 = scalar_lea.vmem %s218_s2, 16  ;;  %s5838_s1 = scalar_lea.vmem %s218_s2, 32 }
 0x151   :  { %p5835_p13 = scmp.ne.s32.totalorder %s218_s2, %s5834_s14  ;;  %p5839_p0 = scmp.lt.s32.totalorder %s218_s2, %s218_s2 }
 0x152   :  { %p5840_p1 = scmp.lt.s32.totalorder %s5838_s1, %s5834_s14 }
 0x154   :  { %p5841_p2 = por %p5840_p1, %p5839_p0 }
 0x156   :  { %p5842_p3 = pnand %p5841_p2, %p5835_p13 }
 0x158   :  { %5845 = shalt.err (!%p5842_p3)
}
 0x159   :  { %220 = dma.hbm_to_vmem [thread:$0]  %s6477_s25, 16, %s218_s2, [#allocation27]  }
 0x15a   :  { %s6478_s9 = sld [smem:[#allocation49_spill]] }
 0x160   :  { %s5846_s6 = scalar_lea.hbm %s6478_s9, 384 }
 0x161   :  { %p5847_p4 = scmp.ne.s32.totalorder %s6478_s9, %s5846_s6  ;;  %p5850_p5 = scmp.lt.u32.totalorder %s5846_s6, %s6478_s9 }
 0x163   :  { %p5852_p6 = pnand %p5850_p5, %p5847_p4 }
 0x165   :  { %5855 = shalt.err (!%p5852_p6)
}
 0x166   :  { %s5856_s5 = scalar_lea.vmem %s240_s23, 384  ;;  %p5861_p8 = scmp.lt.s32.totalorder %s240_s23, %s240_s23 }
 0x167   :  { %p5857_p7 = scmp.ne.s32.totalorder %s240_s23, %s5856_s5  ;;  %p5862_p9 = scmp.lt.s32.totalorder %s5856_s5, %s5856_s5 }
 0x169   :  { %p5863_p10 = por %p5862_p9, %p5861_p8 }
 0x16b   :  { %p5864_p11 = pnand %p5863_p10, %p5857_p7 }
 0x16d   :  { %5867 = shalt.err (!%p5864_p11)
}
 0x16e   :  { %242 = dma.hbm_to_vmem [thread:$0]  %s6478_s9, 384, %s240_s23, [#allocation30]  }
 0x16f   :  { %5890 = dma.done.wait [#allocation3], 3072  }
 0x170   :  { %5891 = vsyncadd [#allocation3], 4294964224 }
 0x171   :  { %5892 = dma.done.wait [#allocation6], 49168  }
 0x172   :  { %5893 = vsyncadd [#allocation6], 4294918128 }
 0x173   :  { %5894 = dma.done.wait [#allocation9], 2064  }
 0x174   :  { %5895 = vsyncadd [#allocation9], 4294965232 }
 0x175   :  { %5896 = dma.done.wait [#allocation12], 2064  }
 0x176   :  { %5897 = vsyncadd [#allocation12], 4294965232 }
 0x177   :  { %5898 = dma.done.wait [#allocation15], 2064  }
 0x178   :  { %5899 = vsyncadd [#allocation15], 4294965232 }
 0x179   :  { %5900 = dma.done.wait [#allocation18], 2064  }
 0x17a   :  { %5901 = vsyncadd [#allocation18], 4294965232 }
 0x17b   :  { %5902 = dma.done.wait [#allocation21], 2064  }
 0x17c   :  { %5903 = vsyncadd [#allocation21], 4294965232 }
 0x17d   :  { %5904 = dma.done.wait [#allocation24], 2064  }
 0x17e   :  { %5905 = vsyncadd [#allocation24], 4294965232 }
 0x17f   :  { %5906 = dma.done.wait [#allocation27], 2064  }
 0x180   :  { %5907 = vsyncadd [#allocation27], 4294965232 }
 0x181   :  { %5908 = dma.done.wait [#allocation30], 49536  }
 0x182   :  { %5909 = vsyncadd [#allocation30], 4294917760  ;;  %v316_v0 = vld [vmem:[#allocation5 + $0x80] sm:$0xff]  ;;  %v317_v1 = vld [vmem:[#allocation5 + $0x88] sm:$0xff]  ;;  %vm5936_vm0 = vmmov 0   ;;  %s5938_s22 = smov [#allocation32]  }
 0x183   :  { %v300_v2 = vld [vmem:[#allocation5] sm:$0xff]  ;;  %v4439_v3 = vpack.c.bf16 %v317_v1, %v316_v0  ;;  %v301_v4 = vld [vmem:[#allocation5 + $0x8] sm:$0xff]  ;;  %v318_v11 = vld [vmem:[#allocation5 + $0x90] sm:$0xff]  ;;  %s3629_s15 = sshll.u32 %s5938_s22, 4  ;;  %s3630_s15 = int_to_ptr.vmem [resolvable:$true] %s3629_s15 }
 0x184   :  { %v348_v5 = vld [vmem:[#allocation5 + $0x180] sm:$0xff]  ;;  %v349_v6 = vld [vmem:[#allocation5 + $0x188] sm:$0xff]  ;;  %v4441_v7 = vpack.c.bf16 %v301_v4, %v300_v2  ;;  %v319_v13 = vld [vmem:[#allocation5 + $0x98] sm:$0xff]  ;;  %s5868_s12 = scalar_lea.vmem %s3630_s15, 3072  ;;  %p5873_p13 = scmp.lt.s32.totalorder %s3630_s15, %s3630_s15 }
 0x185   :  { %v4471_v8 = vpack.c.bf16 %v349_v6, %v348_v5  ;;  %v332_v9 = vld [vmem:[#allocation5 + $0x100] sm:$0xff]  ;;  %v333_v10 = vld [vmem:[#allocation5 + $0x108] sm:$0xff]  ;;  %4440 = vmatprep.subr.bf16.mxu0 %v4439_v3  ;;  %v302_v14 = vld [vmem:[#allocation5 + $0x10] sm:$0xff]  ;;  %v4443_v16 = vpack.c.bf16 %v319_v13, %v318_v11  ;;  %p5869_p12 = scmp.ne.s32.totalorder %s3630_s15, %s5868_s12  ;;  %p5874_p0 = scmp.lt.s32.totalorder %s5868_s12, %s5868_s12 }
 0x186   :  { %v4473_v12 = vpack.c.bf16 %v333_v10, %v332_v9  ;;  %v303_v15 = vld [vmem:[#allocation5 + $0x18] sm:$0xff]  ;;  %4442 = vmatpush3.bf16.msra.mxu0 %v4441_v7  ;;  %v350_v18 = vld [vmem:[#allocation5 + $0x190] sm:$0xff]  ;;  %v320_v23 = vld [vmem:[#allocation5 + $0xa0] sm:$0xff] }
 0x187   :  { %4472 = vmatprep.subr.bf16.mxu1 %v4471_v8  ;;  %v4445_v17 = vpack.c.bf16 %v303_v15, %v302_v14  ;;  %v351_v19 = vld [vmem:[#allocation5 + $0x198] sm:$0xff]  ;;  %v334_v20 = vld [vmem:[#allocation5 + $0x110] sm:$0xff]  ;;  %v321_v24 = vld [vmem:[#allocation5 + $0xa8] sm:$0xff]  ;;  %4444 = vmatprep.subr.bf16.mxu0 %v4443_v16  ;;  %p5875_p1 = por %p5874_p0, %p5873_p13 }
 0x188   :  { %4474 = vmatpush3.bf16.msra.mxu1 %v4473_v12  ;;  %v4475_v21 = vpack.c.bf16 %v351_v19, %v350_v18  ;;  %v335_v22 = vld [vmem:[#allocation5 + $0x118] sm:$0xff]  ;;  %v4447_v26 = vpack.c.bf16 %v321_v24, %v320_v23  ;;  %v304_v27 = vld [vmem:[#allocation5 + $0x20] sm:$0xff]  ;;  %v305_v28 = vld [vmem:[#allocation5 + $0x28] sm:$0xff] }
 0x189   :  { %v4477_v25 = vpack.c.bf16 %v335_v22, %v334_v20  ;;  %v352_v29 = vld [vmem:[#allocation5 + $0x1a0] sm:$0xff]  ;;  %v353_v30 = vld [vmem:[#allocation5 + $0x1a8] sm:$0xff]  ;;  %v4449_v33 = vpack.c.bf16 %v305_v28, %v304_v27  ;;  %v322_v35 = vld [vmem:[#allocation5 + $0xb0] sm:$0xff]  ;;  %p5876_p2 = pnand %p5875_p1, %p5869_p12 }
 0x18a   :  { %4476 = vmatprep.subr.bf16.mxu1 %v4475_v21  ;;  %v336_v31 = vld [vmem:[#allocation5 + $0x120] sm:$0xff]  ;;  %v337_v32 = vld [vmem:[#allocation5 + $0x128] sm:$0xff]  ;;  %4446 = vmatpush3.bf16.msra.mxu0 %v4445_v17  ;;  %v4479_v34 = vpack.c.bf16 %v353_v30, %v352_v29  ;;  %v323_v36 = vld [vmem:[#allocation5 + $0xb8] sm:$0xff] }
 0x18b   :  { %v306_v37 = vld [vmem:[#allocation5 + $0x30] sm:$0xff]  ;;  %4448 = vmatprep.subr.bf16.mxu0 %v4447_v26  ;;  %v4481_v38 = vpack.c.bf16 %v337_v32, %v336_v31  ;;  %v4451_v39 = vpack.c.bf16 %v323_v36, %v322_v35  ;;  %v307_v40 = vld [vmem:[#allocation5 + $0x38] sm:$0xff]  ;;  %v324_v46 = vld [vmem:[#allocation5 + $0xc0] sm:$0xff] }
 0x18c   :  { %4478 = vmatpush3.bf16.msra.mxu1 %v4477_v25  ;;  %v354_v41 = vld [vmem:[#allocation5 + $0x1b0] sm:$0xff]  ;;  %v355_v42 = vld [vmem:[#allocation5 + $0x1b8] sm:$0xff]  ;;  %v325_v47 = vld [vmem:[#allocation5 + $0xc8] sm:$0xff]  ;;  %v4453_v48 = vpack.c.bf16 %v307_v40, %v306_v37 }
 0x18d   :  { %4480 = vmatprep.subr.bf16.mxu1 %v4479_v34  ;;  %v4483_v43 = vpack.c.bf16 %v355_v42, %v354_v41  ;;  %v338_v44 = vld [vmem:[#allocation5 + $0x130] sm:$0xff]  ;;  %v339_v45 = vld [vmem:[#allocation5 + $0x138] sm:$0xff]  ;;  %v356_v49 = vld [vmem:[#allocation5 + $0x1c0] sm:$0xff]  ;;  %v4455_v52 = vpack.c.bf16 %v325_v47, %v324_v46 }
 0x18e   :  { %4450 = vmatpush3.bf16.msra.mxu0 %v4449_v33  ;;  %v357_v50 = vld [vmem:[#allocation5 + $0x1c8] sm:$0xff]  ;;  %v4485_v51 = vpack.c.bf16 %v339_v45, %v338_v44  ;;  %v308_v53 = vld [vmem:[#allocation5 + $0x40] sm:$0xff]  ;;  %v326_v58 = vld [vmem:[#allocation5 + $0xd0] sm:$0xff] }
 0x18f   :  { %4452 = vmatprep.subr.bf16.mxu0 %v4451_v39  ;;  %v309_v54 = vld [vmem:[#allocation5 + $0x48] sm:$0xff]  ;;  %v340_v55 = vld [vmem:[#allocation5 + $0x140] sm:$0xff]  ;;  %v4487_v56 = vpack.c.bf16 %v357_v50, %v356_v49  ;;  %v327_v59 = vld [vmem:[#allocation5 + $0xd8] sm:$0xff] }
 0x190   :  { %4482 = vmatpush3.bf16.msra.mxu1 %v4481_v38  ;;  %v341_v57 = vld [vmem:[#allocation5 + $0x148] sm:$0xff]  ;;  %v358_v60 = vld [vmem:[#allocation5 + $0x1d0] sm:$0xff]  ;;  %v359_v61 = vld [vmem:[#allocation5 + $0x1d8] sm:$0xff]  ;;  %v4457_v62 = vpack.c.bf16 %v309_v54, %v308_v53  ;;  %v4459_v0 = vpack.c.bf16 %v327_v59, %v326_v58 }
 0x191   :  { %4484 = vmatprep.subr.bf16.mxu1 %v4483_v43  ;;  %v4489_v63 = vpack.c.bf16 %v341_v57, %v340_v55  ;;  %v310_v1 = vld [vmem:[#allocation5 + $0x50] sm:$0xff]  ;;  %v311_v2 = vld [vmem:[#allocation5 + $0x58] sm:$0xff]  ;;  %v4491_v4 = vpack.c.bf16 %v359_v61, %v358_v60  ;;  %v328_v6 = vld [vmem:[#allocation5 + $0xe0] sm:$0xff] }
 0x192   :  { %4454 = vmatpush3.bf16.msra.mxu0 %v4453_v48  ;;  %v342_v3 = vld [vmem:[#allocation5 + $0x150] sm:$0xff]  ;;  %v343_v5 = vld [vmem:[#allocation5 + $0x158] sm:$0xff]  ;;  %v329_v7 = vld [vmem:[#allocation5 + $0xe8] sm:$0xff]  ;;  %v4461_v10 = vpack.c.bf16 %v311_v2, %v310_v1 }
 0x193   :  { %4456 = vmatprep.subr.bf16.mxu0 %v4455_v52  ;;  %v360_v8 = vld [vmem:[#allocation5 + $0x1e0] sm:$0xff]  ;;  %v361_v9 = vld [vmem:[#allocation5 + $0x1e8] sm:$0xff]  ;;  %v4493_v13 = vpack.c.bf16 %v343_v5, %v342_v3  ;;  %v4463_v14 = vpack.c.bf16 %v329_v7, %v328_v6  ;;  %v330_v19 = vld [vmem:[#allocation5 + $0xf0] sm:$0xff] }
 0x194   :  { %4486 = vmatpush3.bf16.msra.mxu1 %v4485_v51  ;;  %v312_v11 = vld [vmem:[#allocation5 + $0x60] sm:$0xff]  ;;  %v313_v12 = vld [vmem:[#allocation5 + $0x68] sm:$0xff]  ;;  %v4495_v18 = vpack.c.bf16 %v361_v9, %v360_v8  ;;  %v331_v20 = vld [vmem:[#allocation5 + $0xf8] sm:$0xff] }
 0x195   :  { %4488 = vmatprep.subr.bf16.mxu1 %v4487_v56  ;;  %v344_v15 = vld [vmem:[#allocation5 + $0x160] sm:$0xff]  ;;  %v345_v16 = vld [vmem:[#allocation5 + $0x168] sm:$0xff]  ;;  %v688_v21 = vld [vmem:[#allocation2 + $0x18] sm:$0xff]  ;;  %v4465_v24 = vpack.c.bf16 %v313_v12, %v312_v11  ;;  %v4467_v26 = vpack.c.bf16 %v331_v20, %v330_v19 }
 0x196   :  { %4458 = vmatpush3.bf16.msra.mxu0 %v4457_v62  ;;  %v686_v17 = vld [vmem:[#allocation2 + $0x8] sm:$0xff]  ;;  %v362_v22 = vld [vmem:[#allocation5 + $0x1f0] sm:$0xff]  ;;  %v363_v23 = vld [vmem:[#allocation5 + $0x1f8] sm:$0xff]  ;;  %849 = vmatprep.mubr.f32.mxu1 %v688_v21  ;;  %v4497_v25 = vpack.c.bf16 %v345_v16, %v344_v15 }
 0x197   :  { %4460 = vmatprep.subr.bf16.mxu0 %v4459_v0  ;;  %779 = vmatprep.mubr.f32.mxu0 %v686_v17  ;;  %v314_v27 = vld [vmem:[#allocation5 + $0x70] sm:$0xff]  ;;  %v315_v28 = vld [vmem:[#allocation5 + $0x78] sm:$0xff]  ;;  %v4499_v30 = vpack.c.bf16 %v363_v23, %v362_v22  ;;  %v380_v32 = vld [vmem:[#allocation5 + $0x280] sm:$0xff] }
 0x198   :  { %4490 = vmatpush3.bf16.msra.mxu1 %v4489_v63  ;;  %v346_v29 = vld [vmem:[#allocation5 + $0x170] sm:$0xff]  ;;  %v347_v31 = vld [vmem:[#allocation5 + $0x178] sm:$0xff]  ;;  %v381_v33 = vld [vmem:[#allocation5 + $0x288] sm:$0xff]  ;;  %v4469_v36 = vpack.c.bf16 %v315_v28, %v314_v27 }
 0x199   :  { %4492 = vmatprep.subr.bf16.mxu1 %v4491_v4  ;;  %v412_v34 = vld [vmem:[#allocation5 + $0x380] sm:$0xff]  ;;  %v413_v35 = vld [vmem:[#allocation5 + $0x388] sm:$0xff]  ;;  %v4501_v37 = vpack.c.bf16 %v347_v31, %v346_v29  ;;  %v4503_v38 = vpack.c.bf16 %v381_v33, %v380_v32  ;;  %v382_v44 = vld [vmem:[#allocation5 + $0x290] sm:$0xff] }
 0x19a   :  { %4462 = vmatpush3.bf16.msra.mxu0 %v4461_v10  ;;  %v364_v39 = vld [vmem:[#allocation5 + $0x200] sm:$0xff]  ;;  %v365_v40 = vld [vmem:[#allocation5 + $0x208] sm:$0xff]  ;;  %v4535_v42 = vpack.c.bf16 %v413_v35, %v412_v34  ;;  %v383_v45 = vld [vmem:[#allocation5 + $0x298] sm:$0xff] }
 0x19b   :  { %4464 = vmatprep.subr.bf16.mxu0 %v4463_v14  ;;  %v396_v41 = vld [vmem:[#allocation5 + $0x300] sm:$0xff]  ;;  %v397_v43 = vld [vmem:[#allocation5 + $0x308] sm:$0xff]  ;;  %v414_v46 = vld [vmem:[#allocation5 + $0x390] sm:$0xff]  ;;  %v4505_v49 = vpack.c.bf16 %v365_v40, %v364_v39  ;;  %v4507_v52 = vpack.c.bf16 %v383_v45, %v382_v44 }
 0x19c   :  { %4494 = vmatpush3.bf16.msra.mxu1 %v4493_v13  ;;  %v415_v47 = vld [vmem:[#allocation5 + $0x398] sm:$0xff]  ;;  %v685_v48 = vld [vmem:[#allocation2] sm:$0xff]  ;;  %v687_v50 = vld [vmem:[#allocation2 + $0x10] sm:$0xff]  ;;  %v4537_v51 = vpack.c.bf16 %v397_v43, %v396_v41 }
 0x19d   :  { %4496 = vmatprep.subr.bf16.mxu1 %v4495_v18  ;;  %v366_v53 = vld [vmem:[#allocation5 + $0x210] sm:$0xff]  ;;  %v367_v54 = vld [vmem:[#allocation5 + $0x218] sm:$0xff]  ;;  %v4539_v56 = vpack.c.bf16 %v415_v47, %v414_v46  ;;  %v384_v58 = vld [vmem:[#allocation5 + $0x2a0] sm:$0xff] }
 0x19e   :  { %4466 = vmatpush3.bf16.msra.mxu0 %v4465_v24  ;;  %v398_v55 = vld [vmem:[#allocation5 + $0x310] sm:$0xff]  ;;  %v399_v57 = vld [vmem:[#allocation5 + $0x318] sm:$0xff]  ;;  %v385_v59 = vld [vmem:[#allocation5 + $0x2a8] sm:$0xff]  ;;  %v4509_v62 = vpack.c.bf16 %v367_v54, %v366_v53 }
 0x19f   :  { %4468 = vmatprep.subr.bf16.mxu0 %v4467_v26  ;;  %v416_v60 = vld [vmem:[#allocation5 + $0x3a0] sm:$0xff]  ;;  %v417_v61 = vld [vmem:[#allocation5 + $0x3a8] sm:$0xff]  ;;  %v4541_v63 = vpack.c.bf16 %v399_v57, %v398_v55  ;;  %v4511_v0 = vpack.c.bf16 %v385_v59, %v384_v58  ;;  %v386_v6 = vld [vmem:[#allocation5 + $0x2b0] sm:$0xff] }
 0x1a0   :  { %4498 = vmatpush3.bf16.msra.mxu1 %v4497_v25  ;;  %v368_v1 = vld [vmem:[#allocation5 + $0x220] sm:$0xff]  ;;  %v369_v2 = vld [vmem:[#allocation5 + $0x228] sm:$0xff]  ;;  %v4543_v4 = vpack.c.bf16 %v417_v61, %v416_v60  ;;  %v387_v7 = vld [vmem:[#allocation5 + $0x2b8] sm:$0xff] }
 0x1a1   :  { %4500 = vmatprep.subr.bf16.mxu1 %v4499_v30  ;;  %v400_v3 = vld [vmem:[#allocation5 + $0x320] sm:$0xff]  ;;  %v401_v5 = vld [vmem:[#allocation5 + $0x328] sm:$0xff]  ;;  %v418_v8 = vld [vmem:[#allocation5 + $0x3b0] sm:$0xff]  ;;  %v4513_v10 = vpack.c.bf16 %v369_v2, %v368_v1  ;;  %v4515_v12 = vpack.c.bf16 %v387_v7, %v386_v6 }
 0x1a2   :  { %4470 = vmatpush3.bf16.msra.mxu0 %v4469_v36  ;;  %v419_v9 = vld [vmem:[#allocation5 + $0x3b8] sm:$0xff]  ;;  %v4545_v11 = vpack.c.bf16 %v401_v5, %v400_v3  ;;  %v370_v13 = vld [vmem:[#allocation5 + $0x230] sm:$0xff]  ;;  %v388_v18 = vld [vmem:[#allocation5 + $0x2c0] sm:$0xff] }
 0x1a3   :  { %4504 = vmatprep.subr.bf16.mxu0 %v4503_v38  ;;  %v371_v14 = vld [vmem:[#allocation5 + $0x238] sm:$0xff]  ;;  %v402_v15 = vld [vmem:[#allocation5 + $0x330] sm:$0xff]  ;;  %v4547_v16 = vpack.c.bf16 %v419_v9, %v418_v8  ;;  %v389_v19 = vld [vmem:[#allocation5 + $0x2c8] sm:$0xff] }
 0x1a4   :  { %4502 = vmatpush3.bf16.msra.mxu1 %v4501_v37  ;;  %v403_v17 = vld [vmem:[#allocation5 + $0x338] sm:$0xff]  ;;  %v420_v20 = vld [vmem:[#allocation5 + $0x3c0] sm:$0xff]  ;;  %v421_v21 = vld [vmem:[#allocation5 + $0x3c8] sm:$0xff]  ;;  %v4517_v22 = vpack.c.bf16 %v371_v14, %v370_v13  ;;  %v4519_v26 = vpack.c.bf16 %v389_v19, %v388_v18 }
 0x1a5   :  { %4536 = vmatprep.subr.bf16.mxu1 %v4535_v42  ;;  %780 = vmatmul.mubr.f32.vlgmr.msra.gmra.mrb[0].mxu0 %v685_v48  ;;  %v372_v23 = vld [vmem:[#allocation5 + $0x240] sm:$0xff]  ;;  %v690_v24 = vld [vmem:[#allocation2 + $0x28] sm:$0xff]  ;;  %v4549_v25 = vpack.c.bf16 %v403_v17, %v402_v15  ;;  %v692_v29 = vld [vmem:[#allocation2 + $0x38] sm:$0xff]  ;;  %v4551_v30 = vpack.c.bf16 %v421_v21, %v420_v20 }
 0x1a6   :  { %4506 = vmatpush3.bf16.msra.mxu0 %v4505_v49  ;;  %v373_v27 = vld [vmem:[#allocation5 + $0x248] sm:$0xff]  ;;  %v404_v28 = vld [vmem:[#allocation5 + $0x340] sm:$0xff]  ;;  %v390_v32 = vld [vmem:[#allocation5 + $0x2d0] sm:$0xff]  ;;  %919 = vmatprep.mubr.f32.mxu0 %v690_v24 }
 0x1a7   :  { %850 = vmatmul.mubr.f32.vlgmr.msra.gmra.mrb[0].mxu1 %v687_v50  ;;  %4508 = vmatprep.subr.bf16.mxu0 %v4507_v52  ;;  %v405_v31 = vld [vmem:[#allocation5 + $0x348] sm:$0xff]  ;;  %v391_v33 = vld [vmem:[#allocation5 + $0x2d8] sm:$0xff]  ;;  %v422_v34 = vld [vmem:[#allocation5 + $0x3d0] sm:$0xff]  ;;  %v4521_v36 = vpack.c.bf16 %v373_v27, %v372_v23 }
 0x1a8   :  { %4538 = vmatpush3.bf16.msra.mxu1 %v4537_v51  ;;  %v423_v35 = vld [vmem:[#allocation5 + $0x3d8] sm:$0xff]  ;;  %989 = vmatprep.mubr.f32.mxu1 %v692_v29  ;;  %v4553_v37 = vpack.c.bf16 %v405_v31, %v404_v28  ;;  %v4523_v38 = vpack.c.bf16 %v391_v33, %v390_v32  ;;  %v374_v39 = vld [vmem:[#allocation5 + $0x250] sm:$0xff]  ;;  %v392_v44 = vld [vmem:[#allocation5 + $0x2e0] sm:$0xff] }
 0x1a9   :  { %4540 = vmatprep.subr.bf16.mxu1 %v4539_v56  ;;  %v375_v40 = vld [vmem:[#allocation5 + $0x258] sm:$0xff]  ;;  %v406_v41 = vld [vmem:[#allocation5 + $0x350] sm:$0xff]  ;;  %v4555_v42 = vpack.c.bf16 %v423_v35, %v422_v34  ;;  %v393_v45 = vld [vmem:[#allocation5 + $0x2e8] sm:$0xff] }
 0x1aa   :  { %4510 = vmatpush3.bf16.msra.mxu0 %v4509_v62  ;;  %v407_v43 = vld [vmem:[#allocation5 + $0x358] sm:$0xff]  ;;  %v424_v46 = vld [vmem:[#allocation5 + $0x3e0] sm:$0xff]  ;;  %v425_v47 = vld [vmem:[#allocation5 + $0x3e8] sm:$0xff]  ;;  %v4525_v48 = vpack.c.bf16 %v375_v40, %v374_v39  ;;  %v4527_v50 = vpack.c.bf16 %v393_v45, %v392_v44 }
 0x1ab   :  { %4512 = vmatprep.subr.bf16.mxu0 %v4511_v0  ;;  %v4557_v49 = vpack.c.bf16 %v407_v43, %v406_v41  ;;  %v376_v51 = vld [vmem:[#allocation5 + $0x260] sm:$0xff]  ;;  %v377_v52 = vld [vmem:[#allocation5 + $0x268] sm:$0xff]  ;;  %v4559_v54 = vpack.c.bf16 %v425_v47, %v424_v46  ;;  %v394_v56 = vld [vmem:[#allocation5 + $0x2f0] sm:$0xff] }
 0x1ac   :  { %4542 = vmatpush3.bf16.msra.mxu1 %v4541_v63  ;;  %v408_v53 = vld [vmem:[#allocation5 + $0x360] sm:$0xff]  ;;  %v409_v55 = vld [vmem:[#allocation5 + $0x368] sm:$0xff]  ;;  %v395_v57 = vld [vmem:[#allocation5 + $0x2f8] sm:$0xff]  ;;  %v4529_v60 = vpack.c.bf16 %v377_v52, %v376_v51 }
 0x1ad   :  { %4544 = vmatprep.subr.bf16.mxu1 %v4543_v4  ;;  %v426_v58 = vld [vmem:[#allocation5 + $0x3f0] sm:$0xff]  ;;  %v427_v59 = vld [vmem:[#allocation5 + $0x3f8] sm:$0xff]  ;;  %v4561_v61 = vpack.c.bf16 %v409_v55, %v408_v53  ;;  %v4531_v62 = vpack.c.bf16 %v395_v57, %v394_v56  ;;  %v444_v4 = vld [vmem:[#allocation5 + $0x480] sm:$0xff] }
 0x1ae   :  { %4514 = vmatpush3.bf16.msra.mxu0 %v4513_v10  ;;  %v378_v63 = vld [vmem:[#allocation5 + $0x270] sm:$0xff]  ;;  %v379_v0 = vld [vmem:[#allocation5 + $0x278] sm:$0xff]  ;;  %v4563_v2 = vpack.c.bf16 %v427_v59, %v426_v58  ;;  %v445_v5 = vld [vmem:[#allocation5 + $0x488] sm:$0xff] }
 0x1af   :  { %4516 = vmatprep.subr.bf16.mxu0 %v4515_v12  ;;  %v410_v1 = vld [vmem:[#allocation5 + $0x370] sm:$0xff]  ;;  %v411_v3 = vld [vmem:[#allocation5 + $0x378] sm:$0xff]  ;;  %v476_v6 = vld [vmem:[#allocation5 + $0x580] sm:$0xff]  ;;  %v4533_v8 = vpack.c.bf16 %v379_v0, %v378_v63  ;;  %v4567_v10 = vpack.c.bf16 %v445_v5, %v444_v4 }
 0x1b0   :  { %4546 = vmatpush3.bf16.msra.mxu1 %v4545_v11  ;;  %v477_v7 = vld [vmem:[#allocation5 + $0x588] sm:$0xff]  ;;  %v4565_v9 = vpack.c.bf16 %v411_v3, %v410_v1  ;;  %v428_v11 = vld [vmem:[#allocation5 + $0x400] sm:$0xff]  ;;  %v447_v17 = vld [vmem:[#allocation5 + $0x498] sm:$0xff] }
 0x1b1   :  { %4548 = vmatprep.subr.bf16.mxu1 %v4547_v16  ;;  %v429_v12 = vld [vmem:[#allocation5 + $0x408] sm:$0xff]  ;;  %v460_v13 = vld [vmem:[#allocation5 + $0x500] sm:$0xff]  ;;  %v4599_v14 = vpack.c.bf16 %v477_v7, %v476_v6  ;;  %v446_v16 = vld [vmem:[#allocation5 + $0x490] sm:$0xff] }
 0x1b2   :  { %4518 = vmatpush3.bf16.msra.mxu0 %v4517_v22  ;;  %v461_v15 = vld [vmem:[#allocation5 + $0x508] sm:$0xff]  ;;  %v478_v18 = vld [vmem:[#allocation5 + $0x590] sm:$0xff]  ;;  %v479_v19 = vld [vmem:[#allocation5 + $0x598] sm:$0xff]  ;;  %v4569_v21 = vpack.c.bf16 %v429_v12, %v428_v11  ;;  %v4571_v24 = vpack.c.bf16 %v447_v17, %v446_v16 }
 0x1b3   :  { %4520 = vmatprep.subr.bf16.mxu0 %v4519_v26  ;;  %v689_v20 = vld [vmem:[#allocation2 + $0x20] sm:$0xff]  ;;  %v691_v22 = vld [vmem:[#allocation2 + $0x30] sm:$0xff]  ;;  %v4601_v23 = vpack.c.bf16 %v461_v15, %v460_v13  ;;  %v431_v26 = vld [vmem:[#allocation5 + $0x418] sm:$0xff]  ;;  %v4603_v28 = vpack.c.bf16 %v479_v19, %v478_v18 }
 0x1b4   :  { %4550 = vmatpush3.bf16.msra.mxu1 %v4549_v25  ;;  %v430_v25 = vld [vmem:[#allocation5 + $0x410] sm:$0xff]  ;;  %v463_v29 = vld [vmem:[#allocation5 + $0x518] sm:$0xff]  ;;  %v449_v31 = vld [vmem:[#allocation5 + $0x4a8] sm:$0xff] }
 0x1b5   :  { %4552 = vmatprep.subr.bf16.mxu1 %v4551_v30  ;;  %v462_v27 = vld [vmem:[#allocation5 + $0x510] sm:$0xff]  ;;  %v448_v30 = vld [vmem:[#allocation5 + $0x4a0] sm:$0xff]  ;;  %v481_v33 = vld [vmem:[#allocation5 + $0x5a8] sm:$0xff]  ;;  %v4573_v35 = vpack.c.bf16 %v431_v26, %v430_v25 }
 0x1b6   :  { %4522 = vmatpush3.bf16.msra.mxu0 %v4521_v36  ;;  %v480_v32 = vld [vmem:[#allocation5 + $0x5a0] sm:$0xff]  ;;  %v694_v34 = vld [vmem:[#allocation2 + $0x48] sm:$0xff]  ;;  %v696_v36 = vld [vmem:[#allocation2 + $0x58] sm:$0xff] }
 0x1b7   :  { %4524 = vmatprep.subr.bf16.mxu0 %v4523_v38  ;;  %v4575_v38 = vpack.c.bf16 %v449_v31, %v448_v30  ;;  %v432_v39 = vld [vmem:[#allocation5 + $0x420] sm:$0xff]  ;;  %v433_v40 = vld [vmem:[#allocation5 + $0x428] sm:$0xff]  ;;  %v450_v44 = vld [vmem:[#allocation5 + $0x4b0] sm:$0xff] }
 0x1b8   :  { %4554 = vmatpush3.bf16.msra.mxu1 %v4553_v37  ;;  %v4605_v37 = vpack.c.bf16 %v463_v29, %v462_v27  ;;  %v464_v41 = vld [vmem:[#allocation5 + $0x520] sm:$0xff]  ;;  %v465_v43 = vld [vmem:[#allocation5 + $0x528] sm:$0xff]  ;;  %v451_v45 = vld [vmem:[#allocation5 + $0x4b8] sm:$0xff] }
 0x1b9   :  { %4556 = vmatprep.subr.bf16.mxu1 %v4555_v42  ;;  %v4607_v42 = vpack.c.bf16 %v481_v33, %v480_v32  ;;  %v482_v46 = vld [vmem:[#allocation5 + $0x5b0] sm:$0xff]  ;;  %v483_v47 = vld [vmem:[#allocation5 + $0x5b8] sm:$0xff]  ;;  %v452_v56 = vld [vmem:[#allocation5 + $0x4c0] sm:$0xff] }
 0x1ba   :  { %4526 = vmatpush3.bf16.msra.mxu0 %v4525_v48  ;;  %v4577_v48 = vpack.c.bf16 %v433_v40, %v432_v39  ;;  %v434_v51 = vld [vmem:[#allocation5 + $0x430] sm:$0xff]  ;;  %v435_v52 = vld [vmem:[#allocation5 + $0x438] sm:$0xff]  ;;  %v453_v57 = vld [vmem:[#allocation5 + $0x4c8] sm:$0xff] }
 0x1bb   :  { %4528 = vmatprep.subr.bf16.mxu0 %v4527_v50  ;;  %v4579_v50 = vpack.c.bf16 %v451_v45, %v450_v44  ;;  %v466_v53 = vld [vmem:[#allocation5 + $0x530] sm:$0xff]  ;;  %v467_v55 = vld [vmem:[#allocation5 + $0x538] sm:$0xff]  ;;  %v484_v58 = vld [vmem:[#allocation5 + $0x5c0] sm:$0xff] }
 0x1bc   :  { %4558 = vmatpush3.bf16.msra.mxu1 %v4557_v49  ;;  %v4609_v49 = vpack.c.bf16 %v465_v43, %v464_v41  ;;  %v485_v59 = vld [vmem:[#allocation5 + $0x5c8] sm:$0xff]  ;;  %v436_v63 = vld [vmem:[#allocation5 + $0x440] sm:$0xff]  ;;  %v454_v4 = vld [vmem:[#allocation5 + $0x4d0] sm:$0xff] }
 0x1bd   :  { %4560 = vmatprep.subr.bf16.mxu1 %v4559_v54  ;;  %v4611_v54 = vpack.c.bf16 %v483_v47, %v482_v46  ;;  %v437_v0 = vld [vmem:[#allocation5 + $0x448] sm:$0xff]  ;;  %v468_v1 = vld [vmem:[#allocation5 + $0x540] sm:$0xff]  ;;  %v455_v5 = vld [vmem:[#allocation5 + $0x4d8] sm:$0xff] }
 0x1be   :  { %4530 = vmatpush3.bf16.msra.mxu0 %v4529_v60  ;;  %v4581_v60 = vpack.c.bf16 %v435_v52, %v434_v51  ;;  %v469_v3 = vld [vmem:[#allocation5 + $0x548] sm:$0xff]  ;;  %v486_v6 = vld [vmem:[#allocation5 + $0x5d0] sm:$0xff]  ;;  %v487_v7 = vld [vmem:[#allocation5 + $0x5d8] sm:$0xff] }
 0x1bf   :  { %4532 = vmatprep.subr.bf16.mxu0 %v4531_v62  ;;  %v4583_v62 = vpack.c.bf16 %v453_v57, %v452_v56  ;;  %v438_v11 = vld [vmem:[#allocation5 + $0x450] sm:$0xff]  ;;  %v439_v12 = vld [vmem:[#allocation5 + $0x458] sm:$0xff]  ;;  %v456_v16 = vld [vmem:[#allocation5 + $0x4e0] sm:$0xff] }
 0x1c0   :  { %4562 = vmatpush3.bf16.msra.mxu1 %v4561_v61  ;;  %v4613_v61 = vpack.c.bf16 %v467_v55, %v466_v53  ;;  %v470_v13 = vld [vmem:[#allocation5 + $0x550] sm:$0xff]  ;;  %v471_v15 = vld [vmem:[#allocation5 + $0x558] sm:$0xff]  ;;  %v457_v17 = vld [vmem:[#allocation5 + $0x4e8] sm:$0xff] }
 0x1c1   :  { %4564 = vmatprep.subr.bf16.mxu1 %v4563_v2  ;;  %v4615_v2 = vpack.c.bf16 %v485_v59, %v484_v58  ;;  %v488_v18 = vld [vmem:[#allocation5 + $0x5e0] sm:$0xff]  ;;  %v489_v19 = vld [vmem:[#allocation5 + $0x5e8] sm:$0xff]  ;;  %v459_v29 = vld [vmem:[#allocation5 + $0x4f8] sm:$0xff] }
 0x1c2   :  { %4534 = vmatpush3.bf16.msra.mxu0 %v4533_v8  ;;  %v4585_v8 = vpack.c.bf16 %v437_v0, %v436_v63  ;;  %v472_v25 = vld [vmem:[#allocation5 + $0x560] sm:$0xff]  ;;  %v4623_v26 = vpack.c.bf16 %v489_v19, %v488_v18  ;;  %v473_v27 = vld [vmem:[#allocation5 + $0x568] sm:$0xff]  ;;  %v490_v30 = vld [vmem:[#allocation5 + $0x5f0] sm:$0xff] }
 0x1c3   :  { %4568 = vmatprep.subr.bf16.mxu0 %v4567_v10  ;;  %v4587_v10 = vpack.c.bf16 %v455_v5, %v454_v4  ;;  %v491_v31 = vld [vmem:[#allocation5 + $0x5f8] sm:$0xff]  ;;  %v4625_v33 = vpack.c.bf16 %v473_v27, %v472_v25  ;;  %v508_v40 = vld [vmem:[#allocation5 + $0x680] sm:$0xff]  ;;  %v509_v41 = vld [vmem:[#allocation5 + $0x688] sm:$0xff] }
 0x1c4   :  { %4566 = vmatpush3.bf16.msra.mxu1 %v4565_v9  ;;  %v4617_v9 = vpack.c.bf16 %v469_v3, %v468_v1  ;;  %v475_v39 = vld [vmem:[#allocation5 + $0x578] sm:$0xff]  ;;  %v541_v43 = vld [vmem:[#allocation5 + $0x788] sm:$0xff]  ;;  %v4631_v46 = vpack.c.bf16 %v509_v41, %v508_v40  ;;  %v492_v47 = vld [vmem:[#allocation5 + $0x600] sm:$0xff] }
 0x1c5   :  { %4600 = vmatprep.subr.bf16.mxu1 %v4599_v14  ;;  %920 = vmatmul.mubr.f32.vlgmr.msra.gmra.mrb[2].mxu0 %v689_v20  ;;  %v4619_v14 = vpack.c.bf16 %v487_v7, %v486_v6  ;;  %v4589_v20 = vpack.c.bf16 %v439_v12, %v438_v11  ;;  %v525_v51 = vld [vmem:[#allocation5 + $0x708] sm:$0xff]  ;;  %v510_v52 = vld [vmem:[#allocation5 + $0x690] sm:$0xff]  ;;  %v511_v53 = vld [vmem:[#allocation5 + $0x698] sm:$0xff] }
 0x1c6   :  { %4570 = vmatpush3.bf16.msra.mxu0 %v4569_v21  ;;  %1059 = vmatprep.mubr.f32.mxu0 %v694_v34  ;;  %v4621_v21 = vpack.c.bf16 %v471_v15, %v470_v13  ;;  %v543_v55 = vld [vmem:[#allocation5 + $0x798] sm:$0xff]  ;;  %v693_v56 = vld [vmem:[#allocation2 + $0x40] sm:$0xff]  ;;  %v695_v58 = vld [vmem:[#allocation2 + $0x50] sm:$0xff] }
 0x1c7   :  { %990 = vmatmul.mubr.f32.vlgmr.msra.gmra.mrb[2].mxu1 %v691_v22  ;;  %4572 = vmatprep.subr.bf16.mxu0 %v4571_v24  ;;  %v4591_v22 = vpack.c.bf16 %v457_v17, %v456_v16  ;;  %v441_v24 = vld [vmem:[#allocation5 + $0x468] sm:$0xff]  ;;  %v526_v63 = vld [vmem:[#allocation5 + $0x710] sm:$0xff]  ;;  %v527_v1 = vld [vmem:[#allocation5 + $0x718] sm:$0xff] }
 0x1c8   :  { %4602 = vmatpush3.bf16.msra.mxu1 %v4601_v23  ;;  %1129 = vmatprep.mubr.f32.mxu1 %v696_v36  ;;  %v440_v23 = vld [vmem:[#allocation5 + $0x460] sm:$0xff]  ;;  %v443_v36 = vld [vmem:[#allocation5 + $0x478] sm:$0xff]  ;;  %v513_v3 = vld [vmem:[#allocation5 + $0x6a8] sm:$0xff] }
 0x1c9   :  { %4604 = vmatprep.subr.bf16.mxu1 %v4603_v28  ;;  %v458_v28 = vld [vmem:[#allocation5 + $0x4f0] sm:$0xff]  ;;  %v4593_v32 = vpack.c.bf16 %v441_v24, %v440_v23  ;;  %v544_v4 = vld [vmem:[#allocation5 + $0x7a0] sm:$0xff]  ;;  %v545_v5 = vld [vmem:[#allocation5 + $0x7a8] sm:$0xff] }
 0x1ca   :  { %4574 = vmatpush3.bf16.msra.mxu0 %v4573_v35  ;;  %v4595_v34 = vpack.c.bf16 %v459_v29, %v458_v28  ;;  %v442_v35 = vld [vmem:[#allocation5 + $0x470] sm:$0xff]  ;;  %v698_v6 = vld [vmem:[#allocation2 + $0x68] sm:$0xff]  ;;  %v496_v11 = vld [vmem:[#allocation5 + $0x620] sm:$0xff] }
 0x1cb   :  { %4576 = vmatprep.subr.bf16.mxu0 %v4575_v38  ;;  %v4627_v38 = vpack.c.bf16 %v491_v31, %v490_v30  ;;  %v4597_v44 = vpack.c.bf16 %v443_v36, %v442_v35  ;;  %v497_v12 = vld [vmem:[#allocation5 + $0x628] sm:$0xff]  ;;  %v528_v13 = vld [vmem:[#allocation5 + $0x720] sm:$0xff]  ;;  %v514_v16 = vld [vmem:[#allocation5 + $0x6b0] sm:$0xff] }
 0x1cc   :  { %4606 = vmatpush3.bf16.msra.mxu1 %v4605_v37  ;;  %v474_v37 = vld [vmem:[#allocation5 + $0x570] sm:$0xff]  ;;  %v529_v15 = vld [vmem:[#allocation5 + $0x728] sm:$0xff]  ;;  %v515_v17 = vld [vmem:[#allocation5 + $0x6b8] sm:$0xff] }
 0x1cd   :  { %4608 = vmatprep.subr.bf16.mxu1 %v4607_v42  ;;  %v540_v42 = vld [vmem:[#allocation5 + $0x780] sm:$0xff]  ;;  %v4629_v45 = vpack.c.bf16 %v475_v39, %v474_v37  ;;  %v546_v18 = vld [vmem:[#allocation5 + $0x7b0] sm:$0xff]  ;;  %v547_v19 = vld [vmem:[#allocation5 + $0x7b8] sm:$0xff] }
 0x1ce   :  { %4578 = vmatpush3.bf16.msra.mxu0 %v4577_v48  ;;  %v493_v48 = vld [vmem:[#allocation5 + $0x608] sm:$0xff]  ;;  %v498_v23 = vld [vmem:[#allocation5 + $0x630] sm:$0xff]  ;;  %v499_v24 = vld [vmem:[#allocation5 + $0x638] sm:$0xff] }
 0x1cf   :  { %4580 = vmatprep.subr.bf16.mxu0 %v4579_v50  ;;  %v4663_v50 = vpack.c.bf16 %v541_v43, %v540_v42  ;;  %v4633_v57 = vpack.c.bf16 %v493_v48, %v492_v47  ;;  %v530_v25 = vld [vmem:[#allocation5 + $0x730] sm:$0xff]  ;;  %v531_v27 = vld [vmem:[#allocation5 + $0x738] sm:$0xff]  ;;  %v516_v28 = vld [vmem:[#allocation5 + $0x6c0] sm:$0xff] }
 0x1d0   :  { %4610 = vmatpush3.bf16.msra.mxu1 %v4609_v49  ;;  %v524_v49 = vld [vmem:[#allocation5 + $0x700] sm:$0xff]  ;;  %v517_v29 = vld [vmem:[#allocation5 + $0x6c8] sm:$0xff]  ;;  %v518_v40 = vld [vmem:[#allocation5 + $0x6d0] sm:$0xff] }
 0x1d1   :  { %4612 = vmatprep.subr.bf16.mxu1 %v4611_v54  ;;  %v542_v54 = vld [vmem:[#allocation5 + $0x790] sm:$0xff]  ;;  %v4665_v59 = vpack.c.bf16 %v525_v51, %v524_v49  ;;  %v548_v30 = vld [vmem:[#allocation5 + $0x7c0] sm:$0xff]  ;;  %v549_v31 = vld [vmem:[#allocation5 + $0x7c8] sm:$0xff] }
 0x1d2   :  { %4582 = vmatpush3.bf16.msra.mxu0 %v4581_v60  ;;  %v4635_v60 = vpack.c.bf16 %v511_v53, %v510_v52  ;;  %v4667_v0 = vpack.c.bf16 %v543_v55, %v542_v54  ;;  %v500_v35 = vld [vmem:[#allocation5 + $0x640] sm:$0xff]  ;;  %v501_v36 = vld [vmem:[#allocation5 + $0x648] sm:$0xff]  ;;  %v519_v41 = vld [vmem:[#allocation5 + $0x6d8] sm:$0xff] }
 0x1d3   :  { %4584 = vmatprep.subr.bf16.mxu0 %v4583_v62  ;;  %v495_v62 = vld [vmem:[#allocation5 + $0x618] sm:$0xff]  ;;  %v532_v37 = vld [vmem:[#allocation5 + $0x740] sm:$0xff]  ;;  %v533_v39 = vld [vmem:[#allocation5 + $0x748] sm:$0xff] }
 0x1d4   :  { %4614 = vmatpush3.bf16.msra.mxu1 %v4613_v61  ;;  %v494_v61 = vld [vmem:[#allocation5 + $0x610] sm:$0xff]  ;;  %v551_v43 = vld [vmem:[#allocation5 + $0x7d8] sm:$0xff]  ;;  %v520_v52 = vld [vmem:[#allocation5 + $0x6e0] sm:$0xff] }
 0x1d5   :  { %4616 = vmatprep.subr.bf16.mxu1 %v4615_v2  ;;  %v512_v2 = vld [vmem:[#allocation5 + $0x6a0] sm:$0xff]  ;;  %v4637_v7 = vpack.c.bf16 %v495_v62, %v494_v61  ;;  %v550_v42 = vld [vmem:[#allocation5 + $0x7d0] sm:$0xff]  ;;  %v503_v48 = vld [vmem:[#allocation5 + $0x658] sm:$0xff] }
 0x1d6   :  { %4586 = vmatpush3.bf16.msra.mxu0 %v4585_v8  ;;  %v700_v8 = vld [vmem:[#allocation2 + $0x78] sm:$0xff]  ;;  %v502_v47 = vld [vmem:[#allocation5 + $0x650] sm:$0xff]  ;;  %v521_v53 = vld [vmem:[#allocation5 + $0x6e8] sm:$0xff] }
 0x1d7   :  { %4588 = vmatprep.subr.bf16.mxu0 %v4587_v10  ;;  %v4639_v10 = vpack.c.bf16 %v513_v3, %v512_v2  ;;  %v534_v49 = vld [vmem:[#allocation5 + $0x750] sm:$0xff]  ;;  %v535_v51 = vld [vmem:[#allocation5 + $0x758] sm:$0xff]  ;;  %v552_v54 = vld [vmem:[#allocation5 + $0x7e0] sm:$0xff] }
 0x1d8   :  { %4618 = vmatpush3.bf16.msra.mxu1 %v4617_v9  ;;  %v4669_v9 = vpack.c.bf16 %v527_v1, %v526_v63  ;;  %v553_v55 = vld [vmem:[#allocation5 + $0x7e8] sm:$0xff]  ;;  %v536_v61 = vld [vmem:[#allocation5 + $0x760] sm:$0xff]  ;;  %v523_v1 = vld [vmem:[#allocation5 + $0x6f8] sm:$0xff] }
 0x1d9   :  { %4620 = vmatprep.subr.bf16.mxu1 %v4619_v14  ;;  %v4671_v14 = vpack.c.bf16 %v545_v5, %v544_v4  ;;  %v4687_v62 = vpack.c.bf16 %v553_v55, %v552_v54  ;;  %v537_v63 = vld [vmem:[#allocation5 + $0x768] sm:$0xff]  ;;  %v554_v2 = vld [vmem:[#allocation5 + $0x7f0] sm:$0xff]  ;;  %v555_v3 = vld [vmem:[#allocation5 + $0x7f8] sm:$0xff] }
 0x1da   :  { %4590 = vmatpush3.bf16.msra.mxu0 %v4589_v20  ;;  %v4641_v20 = vpack.c.bf16 %v497_v12, %v496_v11  ;;  %v4689_v5 = vpack.c.bf16 %v537_v63, %v536_v61  ;;  %v539_v11 = vld [vmem:[#allocation5 + $0x778] sm:$0xff]  ;;  %v572_v12 = vld [vmem:[#allocation5 + $0x880] sm:$0xff]  ;;  %v610_v54 = vld [vmem:[#allocation5 + $0x9b0] sm:$0xff] }
 0x1db   :  { %4592 = vmatprep.subr.bf16.mxu0 %v4591_v22  ;;  %v4643_v22 = vpack.c.bf16 %v515_v17, %v514_v16  ;;  %v611_v55 = vld [vmem:[#allocation5 + $0x9b8] sm:$0xff]  ;;  %v594_v61 = vld [vmem:[#allocation5 + $0x930] sm:$0xff] }
 0x1dc   :  { %4622 = vmatpush3.bf16.msra.mxu1 %v4621_v21  ;;  %v4673_v21 = vpack.c.bf16 %v529_v15, %v528_v13  ;;  %v573_v13 = vld [vmem:[#allocation5 + $0x888] sm:$0xff]  ;;  %v595_v63 = vld [vmem:[#allocation5 + $0x938] sm:$0xff] }
 0x1dd   :  { %4624 = vmatprep.subr.bf16.mxu1 %v4623_v26  ;;  %v4675_v26 = vpack.c.bf16 %v547_v19, %v546_v18  ;;  %v605_v15 = vld [vmem:[#allocation5 + $0x988] sm:$0xff]  ;;  %v4695_v18 = vpack.c.bf16 %v573_v13, %v572_v12  ;;  %v556_v19 = vld [vmem:[#allocation5 + $0x800] sm:$0xff]  ;;  %v582_v12 = vld [vmem:[#allocation5 + $0x8d0] sm:$0xff] }
 0x1de   :  { %4594 = vmatpush3.bf16.msra.mxu0 %v4593_v32  ;;  %v4645_v32 = vpack.c.bf16 %v499_v24, %v498_v23  ;;  %v589_v23 = vld [vmem:[#allocation5 + $0x908] sm:$0xff]  ;;  %v574_v24 = vld [vmem:[#allocation5 + $0x890] sm:$0xff]  ;;  %v583_v13 = vld [vmem:[#allocation5 + $0x8d8] sm:$0xff] }
 0x1df   :  { %4596 = vmatprep.subr.bf16.mxu0 %v4595_v34  ;;  %v4647_v34 = vpack.c.bf16 %v517_v29, %v516_v28  ;;  %v697_v28 = vld [vmem:[#allocation2 + $0x60] sm:$0xff] }
 0x1e0   :  { %4626 = vmatpush3.bf16.msra.mxu1 %v4625_v33  ;;  %v4677_v33 = vpack.c.bf16 %v531_v27, %v530_v25  ;;  %v575_v25 = vld [vmem:[#allocation5 + $0x898] sm:$0xff] }
 0x1e1   :  { %4628 = vmatprep.subr.bf16.mxu1 %v4627_v38  ;;  %v4679_v38 = vpack.c.bf16 %v549_v31, %v548_v30  ;;  %v607_v27 = vld [vmem:[#allocation5 + $0x998] sm:$0xff]  ;;  %v699_v30 = vld [vmem:[#allocation2 + $0x70] sm:$0xff] }
 0x1e2   :  { %4598 = vmatpush3.bf16.msra.mxu0 %v4597_v44  ;;  %v4649_v44 = vpack.c.bf16 %v501_v36, %v500_v35  ;;  %v590_v35 = vld [vmem:[#allocation5 + $0x910] sm:$0xff] }
 0x1e3   :  { %4632 = vmatprep.subr.bf16.mxu0 %v4631_v46  ;;  %v4651_v46 = vpack.c.bf16 %v519_v41, %v518_v40  ;;  %v608_v40 = vld [vmem:[#allocation5 + $0x9a0] sm:$0xff]  ;;  %v609_v41 = vld [vmem:[#allocation5 + $0x9a8] sm:$0xff] }
 0x1e4   :  { %4630 = vmatpush3.bf16.msra.mxu1 %v4629_v45  ;;  %v4681_v45 = vpack.c.bf16 %v533_v39, %v532_v37  ;;  %v591_v37 = vld [vmem:[#allocation5 + $0x918] sm:$0xff]  ;;  %v577_v39 = vld [vmem:[#allocation5 + $0x8a8] sm:$0xff] }
 0x1e5   :  { %4664 = vmatprep.subr.bf16.mxu1 %v4663_v50  ;;  %1060 = vmatmul.mubr.f32.vlgmr.msra.gmra.mrb[4].mxu0 %v693_v56  ;;  %v4683_v50 = vpack.c.bf16 %v551_v43, %v550_v42  ;;  %v4653_v56 = vpack.c.bf16 %v503_v48, %v502_v47  ;;  %v702_v42 = vld [vmem:[#allocation2 + $0x88] sm:$0xff]  ;;  %v560_v47 = vld [vmem:[#allocation5 + $0x820] sm:$0xff] }
 0x1e6   :  { %4634 = vmatpush3.bf16.msra.mxu0 %v4633_v57  ;;  %1199 = vmatprep.mubr.f32.mxu0 %v698_v6  ;;  %v4685_v57 = vpack.c.bf16 %v535_v51, %v534_v49  ;;  %v561_v48 = vld [vmem:[#allocation5 + $0x828] sm:$0xff]  ;;  %v592_v49 = vld [vmem:[#allocation5 + $0x920] sm:$0xff] }
 0x1e7   :  { %1130 = vmatmul.mubr.f32.vlgmr.msra.gmra.mrb[4].mxu1 %v695_v58  ;;  %4636 = vmatprep.subr.bf16.mxu0 %v4635_v60  ;;  %v4655_v58 = vpack.c.bf16 %v521_v53, %v520_v52  ;;  %v505_v60 = vld [vmem:[#allocation5 + $0x668] sm:$0xff]  ;;  %v578_v52 = vld [vmem:[#allocation5 + $0x8b0] sm:$0xff]  ;;  %v579_v53 = vld [vmem:[#allocation5 + $0x8b8] sm:$0xff] }
 0x1e8   :  { %4666 = vmatpush3.bf16.msra.mxu1 %v4665_v59  ;;  %1269 = vmatprep.mubr.f32.mxu1 %v700_v8  ;;  %v504_v59 = vld [vmem:[#allocation5 + $0x660] sm:$0xff]  ;;  %v507_v8 = vld [vmem:[#allocation5 + $0x678] sm:$0xff]  ;;  %v593_v51 = vld [vmem:[#allocation5 + $0x928] sm:$0xff] }
 0x1e9   :  { %4668 = vmatprep.subr.bf16.mxu1 %v4667_v0  ;;  %v522_v0 = vld [vmem:[#allocation5 + $0x6f0] sm:$0xff]  ;;  %v4657_v4 = vpack.c.bf16 %v505_v60, %v504_v59  ;;  %v563_v60 = vld [vmem:[#allocation5 + $0x838] sm:$0xff] }
 0x1ea   :  { %4638 = vmatpush3.bf16.msra.mxu0 %v4637_v7  ;;  %v4659_v6 = vpack.c.bf16 %v523_v1, %v522_v0  ;;  %v506_v7 = vld [vmem:[#allocation5 + $0x670] sm:$0xff]  ;;  %v580_v0 = vld [vmem:[#allocation5 + $0x8c0] sm:$0xff]  ;;  %v581_v1 = vld [vmem:[#allocation5 + $0x8c8] sm:$0xff] }
 0x1eb   :  { %4640 = vmatprep.subr.bf16.mxu0 %v4639_v10  ;;  %v4691_v10 = vpack.c.bf16 %v555_v3, %v554_v2  ;;  %v4661_v16 = vpack.c.bf16 %v507_v8, %v506_v7  ;;  %v562_v59 = vld [vmem:[#allocation5 + $0x830] sm:$0xff]  ;;  %v612_v2 = vld [vmem:[#allocation5 + $0x9c0] sm:$0xff]  ;;  %v613_v3 = vld [vmem:[#allocation5 + $0x9c8] sm:$0xff] }
 0x1ec   :  { %4670 = vmatpush3.bf16.msra.mxu1 %v4669_v9  ;;  %v538_v9 = vld [vmem:[#allocation5 + $0x770] sm:$0xff]  ;;  %v564_v7 = vld [vmem:[#allocation5 + $0x840] sm:$0xff]  ;;  %v565_v8 = vld [vmem:[#allocation5 + $0x848] sm:$0xff] }
 0x1ed   :  { %4672 = vmatprep.subr.bf16.mxu1 %v4671_v14  ;;  %v604_v14 = vld [vmem:[#allocation5 + $0x980] sm:$0xff]  ;;  %v4693_v17 = vpack.c.bf16 %v539_v11, %v538_v9  ;;  %v597_v11 = vld [vmem:[#allocation5 + $0x948] sm:$0xff] }
 0x1ee   :  { %4642 = vmatpush3.bf16.msra.mxu0 %v4641_v20  ;;  %v557_v20 = vld [vmem:[#allocation5 + $0x808] sm:$0xff]  ;;  %v596_v9 = vld [vmem:[#allocation5 + $0x940] sm:$0xff] }
 0x1ef   :  { %4644 = vmatprep.subr.bf16.mxu0 %v4643_v22  ;;  %v4727_v22 = vpack.c.bf16 %v605_v15, %v604_v14  ;;  %v4697_v29 = vpack.c.bf16 %v557_v20, %v556_v19  ;;  %v614_v14 = vld [vmem:[#allocation5 + $0x9d0] sm:$0xff]  ;;  %v615_v15 = vld [vmem:[#allocation5 + $0x9d8] sm:$0xff] }
 0x1f0   :  { %4674 = vmatpush3.bf16.msra.mxu1 %v4673_v21  ;;  %v588_v21 = vld [vmem:[#allocation5 + $0x900] sm:$0xff]  ;;  %v566_v19 = vld [vmem:[#allocation5 + $0x850] sm:$0xff]  ;;  %v567_v20 = vld [vmem:[#allocation5 + $0x858] sm:$0xff] }
 0x1f1   :  { %4676 = vmatprep.subr.bf16.mxu1 %v4675_v26  ;;  %v606_v26 = vld [vmem:[#allocation5 + $0x990] sm:$0xff]  ;;  %v4729_v31 = vpack.c.bf16 %v589_v23, %v588_v21  ;;  %v599_v23 = vld [vmem:[#allocation5 + $0x958] sm:$0xff] }
 0x1f2   :  { %4646 = vmatpush3.bf16.msra.mxu0 %v4645_v32  ;;  %v4699_v32 = vpack.c.bf16 %v575_v25, %v574_v24  ;;  %v4731_v36 = vpack.c.bf16 %v607_v27, %v606_v26  ;;  %v598_v21 = vld [vmem:[#allocation5 + $0x950] sm:$0xff]  ;;  %v584_v24 = vld [vmem:[#allocation5 + $0x8e0] sm:$0xff]  ;;  %v585_v25 = vld [vmem:[#allocation5 + $0x8e8] sm:$0xff] }
 0x1f3   :  { %4648 = vmatprep.subr.bf16.mxu0 %v4647_v34  ;;  %v559_v34 = vld [vmem:[#allocation5 + $0x818] sm:$0xff]  ;;  %v616_v26 = vld [vmem:[#allocation5 + $0x9e0] sm:$0xff]  ;;  %v617_v27 = vld [vmem:[#allocation5 + $0x9e8] sm:$0xff] }
 0x1f4   :  { %4678 = vmatpush3.bf16.msra.mxu1 %v4677_v33  ;;  %v558_v33 = vld [vmem:[#allocation5 + $0x810] sm:$0xff] }
 0x1f5   :  { %4680 = vmatprep.subr.bf16.mxu1 %v4679_v38  ;;  %v576_v38 = vld [vmem:[#allocation5 + $0x8a0] sm:$0xff]  ;;  %v4701_v43 = vpack.c.bf16 %v559_v34, %v558_v33  ;;  %v4751_v34 = vpack.c.bf16 %v617_v27, %v616_v26  ;;  %v674_v26 = vld [vmem:[#allocation5 + $0xbb0] sm:$0xff]  ;;  %v675_v27 = vld [vmem:[#allocation5 + $0xbb8] sm:$0xff] }
 0x1f6   :  { %4650 = vmatpush3.bf16.msra.mxu0 %v4649_v44  ;;  %v704_v44 = vld [vmem:[#allocation2 + $0x98] sm:$0xff]  ;;  %v600_v33 = vld [vmem:[#allocation5 + $0x960] sm:$0xff] }
 0x1f7   :  { %4652 = vmatprep.subr.bf16.mxu0 %v4651_v46  ;;  %v4703_v46 = vpack.c.bf16 %v577_v39, %v576_v38  ;;  %v618_v38 = vld [vmem:[#allocation5 + $0x9f0] sm:$0xff]  ;;  %v619_v39 = vld [vmem:[#allocation5 + $0x9f8] sm:$0xff] }
 0x1f8   :  { %4682 = vmatpush3.bf16.msra.mxu1 %v4681_v45  ;;  %v4733_v45 = vpack.c.bf16 %v591_v37, %v590_v35  ;;  %v601_v35 = vld [vmem:[#allocation5 + $0x968] sm:$0xff]  ;;  %v587_v37 = vld [vmem:[#allocation5 + $0x8f8] sm:$0xff] }
 0x1f9   :  { %4684 = vmatprep.subr.bf16.mxu1 %v4683_v50  ;;  %v4735_v50 = vpack.c.bf16 %v609_v41, %v608_v40  ;;  %v4753_v41 = vpack.c.bf16 %v601_v35, %v600_v33  ;;  %v658_v33 = vld [vmem:[#allocation5 + $0xb30] sm:$0xff]  ;;  %v659_v35 = vld [vmem:[#allocation5 + $0xb38] sm:$0xff] }
 0x1fa   :  { %4654 = vmatpush3.bf16.msra.mxu0 %v4653_v56  ;;  %v4705_v56 = vpack.c.bf16 %v561_v48, %v560_v47  ;;  %v603_v47 = vld [vmem:[#allocation5 + $0x978] sm:$0xff]  ;;  %v636_v48 = vld [vmem:[#allocation5 + $0xa80] sm:$0xff] }
 0x1fb   :  { %4656 = vmatprep.subr.bf16.mxu0 %v4655_v58  ;;  %v4707_v58 = vpack.c.bf16 %v579_v53, %v578_v52 }
 0x1fc   :  { %4686 = vmatpush3.bf16.msra.mxu1 %v4685_v57  ;;  %v4737_v57 = vpack.c.bf16 %v593_v51, %v592_v49  ;;  %v637_v49 = vld [vmem:[#allocation5 + $0xa88] sm:$0xff] }
 0x1fd   :  { %4688 = vmatprep.subr.bf16.mxu1 %v4687_v62  ;;  %v4739_v62 = vpack.c.bf16 %v611_v55, %v610_v54  ;;  %v669_v51 = vld [vmem:[#allocation5 + $0xb88] sm:$0xff]  ;;  %v4759_v54 = vpack.c.bf16 %v637_v49, %v636_v48  ;;  %v620_v55 = vld [vmem:[#allocation5 + $0xa00] sm:$0xff]  ;;  %v646_v48 = vld [vmem:[#allocation5 + $0xad0] sm:$0xff] }
 0x1fe   :  { %4658 = vmatpush3.bf16.msra.mxu0 %v4657_v4  ;;  %v4709_v4 = vpack.c.bf16 %v563_v60, %v562_v59  ;;  %v653_v59 = vld [vmem:[#allocation5 + $0xb08] sm:$0xff]  ;;  %v638_v60 = vld [vmem:[#allocation5 + $0xa90] sm:$0xff]  ;;  %v647_v49 = vld [vmem:[#allocation5 + $0xad8] sm:$0xff] }
 0x1ff   :  { %4660 = vmatprep.subr.bf16.mxu0 %v4659_v6  ;;  %v4711_v6 = vpack.c.bf16 %v581_v1, %v580_v0  ;;  %v701_v0 = vld [vmem:[#allocation2 + $0x80] sm:$0xff] }
 0x200   :  { %4690 = vmatpush3.bf16.msra.mxu1 %v4689_v5  ;;  %v4741_v5 = vpack.c.bf16 %v595_v63, %v594_v61  ;;  %v639_v61 = vld [vmem:[#allocation5 + $0xa98] sm:$0xff] }
 0x201   :  { %4692 = vmatprep.subr.bf16.mxu1 %v4691_v10  ;;  %v4743_v10 = vpack.c.bf16 %v613_v3, %v612_v2  ;;  %v671_v63 = vld [vmem:[#allocation5 + $0xb98] sm:$0xff]  ;;  %v703_v2 = vld [vmem:[#allocation2 + $0x90] sm:$0xff] }
 0x202   :  { %4662 = vmatpush3.bf16.msra.mxu0 %v4661_v16  ;;  %v4713_v16 = vpack.c.bf16 %v565_v8, %v564_v7  ;;  %v654_v7 = vld [vmem:[#allocation5 + $0xb10] sm:$0xff] }
 0x203   :  { %4696 = vmatprep.subr.bf16.mxu0 %v4695_v18  ;;  %v4715_v18 = vpack.c.bf16 %v583_v13, %v582_v12  ;;  %v672_v12 = vld [vmem:[#allocation5 + $0xba0] sm:$0xff]  ;;  %v673_v13 = vld [vmem:[#allocation5 + $0xba8] sm:$0xff] }
 0x204   :  { %4694 = vmatpush3.bf16.msra.mxu1 %v4693_v17  ;;  %v4745_v17 = vpack.c.bf16 %v597_v11, %v596_v9  ;;  %v655_v9 = vld [vmem:[#allocation5 + $0xb18] sm:$0xff]  ;;  %v641_v11 = vld [vmem:[#allocation5 + $0xaa8] sm:$0xff] }
 0x205   :  { %4728 = vmatprep.subr.bf16.mxu1 %v4727_v22  ;;  %1200 = vmatmul.mubr.f32.vlgmr.msra.gmra.mrb[6].mxu0 %v697_v28  ;;  %v4747_v22 = vpack.c.bf16 %v615_v15, %v614_v14  ;;  %v4717_v28 = vpack.c.bf16 %v567_v20, %v566_v19  ;;  %v706_v14 = vld [vmem:[#allocation2 + $0xa8] sm:$0xff]  ;;  %v624_v19 = vld [vmem:[#allocation5 + $0xa20] sm:$0xff] }
 0x206   :  { %4698 = vmatpush3.bf16.msra.mxu0 %v4697_v29  ;;  %1339 = vmatprep.mubr.f32.mxu0 %v702_v42  ;;  %v4749_v29 = vpack.c.bf16 %v599_v23, %v598_v21  ;;  %v625_v20 = vld [vmem:[#allocation5 + $0xa28] sm:$0xff]  ;;  %v656_v21 = vld [vmem:[#allocation5 + $0xb20] sm:$0xff] }
 0x207   :  { %1270 = vmatmul.mubr.f32.vlgmr.msra.gmra.mrb[6].mxu1 %v699_v30  ;;  %4700 = vmatprep.subr.bf16.mxu0 %v4699_v32  ;;  %v4719_v30 = vpack.c.bf16 %v585_v25, %v584_v24  ;;  %v569_v32 = vld [vmem:[#allocation5 + $0x868] sm:$0xff]  ;;  %v642_v24 = vld [vmem:[#allocation5 + $0xab0] sm:$0xff]  ;;  %v643_v25 = vld [vmem:[#allocation5 + $0xab8] sm:$0xff] }
 0x208   :  { %4730 = vmatpush3.bf16.msra.mxu1 %v4729_v31  ;;  %1409 = vmatprep.mubr.f32.mxu1 %v704_v44  ;;  %v568_v31 = vld [vmem:[#allocation5 + $0x860] sm:$0xff]  ;;  %v571_v44 = vld [vmem:[#allocation5 + $0x878] sm:$0xff]  ;;  %v657_v23 = vld [vmem:[#allocation5 + $0xb28] sm:$0xff] }
 0x209   :  { %4732 = vmatprep.subr.bf16.mxu1 %v4731_v36  ;;  %v586_v36 = vld [vmem:[#allocation5 + $0x8f0] sm:$0xff]  ;;  %v4721_v40 = vpack.c.bf16 %v569_v32, %v568_v31  ;;  %v627_v32 = vld [vmem:[#allocation5 + $0xa38] sm:$0xff] }
 0x20a   :  { %4702 = vmatpush3.bf16.msra.mxu0 %v4701_v43  ;;  %v4723_v42 = vpack.c.bf16 %v587_v37, %v586_v36  ;;  %v570_v43 = vld [vmem:[#allocation5 + $0x870] sm:$0xff]  ;;  %v644_v36 = vld [vmem:[#allocation5 + $0xac0] sm:$0xff]  ;;  %v645_v37 = vld [vmem:[#allocation5 + $0xac8] sm:$0xff] }
 0x20b   :  { %4704 = vmatprep.subr.bf16.mxu0 %v4703_v46  ;;  %v4755_v46 = vpack.c.bf16 %v619_v39, %v618_v38  ;;  %v4725_v52 = vpack.c.bf16 %v571_v44, %v570_v43  ;;  %v626_v31 = vld [vmem:[#allocation5 + $0xa30] sm:$0xff]  ;;  %v676_v38 = vld [vmem:[#allocation5 + $0xbc0] sm:$0xff]  ;;  %v677_v39 = vld [vmem:[#allocation5 + $0xbc8] sm:$0xff] }
 0x20c   :  { %4734 = vmatpush3.bf16.msra.mxu1 %v4733_v45  ;;  %v602_v45 = vld [vmem:[#allocation5 + $0x970] sm:$0xff]  ;;  %v628_v43 = vld [vmem:[#allocation5 + $0xa40] sm:$0xff]  ;;  %v629_v44 = vld [vmem:[#allocation5 + $0xa48] sm:$0xff] }
 0x20d   :  { %4736 = vmatprep.subr.bf16.mxu1 %v4735_v50  ;;  %v668_v50 = vld [vmem:[#allocation5 + $0xb80] sm:$0xff]  ;;  %v4757_v53 = vpack.c.bf16 %v603_v47, %v602_v45  ;;  %v661_v47 = vld [vmem:[#allocation5 + $0xb48] sm:$0xff] }
 0x20e   :  { %4706 = vmatpush3.bf16.msra.mxu0 %v4705_v56  ;;  %v621_v56 = vld [vmem:[#allocation5 + $0xa08] sm:$0xff]  ;;  %v660_v45 = vld [vmem:[#allocation5 + $0xb40] sm:$0xff] }
 0x20f   :  { %4708 = vmatprep.subr.bf16.mxu0 %v4707_v58  ;;  %v4791_v58 = vpack.c.bf16 %v669_v51, %v668_v50  ;;  %v4761_v1 = vpack.c.bf16 %v621_v56, %v620_v55  ;;  %v678_v50 = vld [vmem:[#allocation5 + $0xbd0] sm:$0xff]  ;;  %v679_v51 = vld [vmem:[#allocation5 + $0xbd8] sm:$0xff] }
 0x210   :  { %4738 = vmatpush3.bf16.msra.mxu1 %v4737_v57  ;;  %v652_v57 = vld [vmem:[#allocation5 + $0xb00] sm:$0xff]  ;;  %v630_v55 = vld [vmem:[#allocation5 + $0xa50] sm:$0xff]  ;;  %v631_v56 = vld [vmem:[#allocation5 + $0xa58] sm:$0xff] }
 0x211   :  { %4740 = vmatprep.subr.bf16.mxu1 %v4739_v62  ;;  %v670_v62 = vld [vmem:[#allocation5 + $0xb90] sm:$0xff]  ;;  %v4793_v3 = vpack.c.bf16 %v653_v59, %v652_v57  ;;  %v663_v59 = vld [vmem:[#allocation5 + $0xb58] sm:$0xff] }
 0x212   :  { %4710 = vmatpush3.bf16.msra.mxu0 %v4709_v4  ;;  %v4763_v4 = vpack.c.bf16 %v639_v61, %v638_v60  ;;  %v4795_v8 = vpack.c.bf16 %v671_v63, %v670_v62  ;;  %v662_v57 = vld [vmem:[#allocation5 + $0xb50] sm:$0xff]  ;;  %v648_v60 = vld [vmem:[#allocation5 + $0xae0] sm:$0xff]  ;;  %v649_v61 = vld [vmem:[#allocation5 + $0xae8] sm:$0xff] }
 0x213   :  { %4712 = vmatprep.subr.bf16.mxu0 %v4711_v6  ;;  %v623_v6 = vld [vmem:[#allocation5 + $0xa18] sm:$0xff]  ;;  %v680_v62 = vld [vmem:[#allocation5 + $0xbe0] sm:$0xff]  ;;  %v681_v63 = vld [vmem:[#allocation5 + $0xbe8] sm:$0xff] }
 0x214   :  { %4742 = vmatpush3.bf16.msra.mxu1 %v4741_v5  ;;  %v622_v5 = vld [vmem:[#allocation5 + $0xa10] sm:$0xff] }
 0x215   :  { %4744 = vmatprep.subr.bf16.mxu1 %v4743_v10  ;;  %v640_v10 = vld [vmem:[#allocation5 + $0xaa0] sm:$0xff]  ;;  %v4765_v15 = vpack.c.bf16 %v623_v6, %v622_v5  ;;  %v4815_v6 = vpack.c.bf16 %v681_v63, %v680_v62  ;;  %v1570_v62 = vld [vmem:[#allocation8 + $0x70] sm:$0xff] }
 0x216   :  { %4714 = vmatpush3.bf16.msra.mxu0 %v4713_v16  ;;  %v708_v16 = vld [vmem:[#allocation2 + $0xb8] sm:$0xff]  ;;  %v664_v5 = vld [vmem:[#allocation5 + $0xb60] sm:$0xff] }
 0x217   :  { %4716 = vmatprep.subr.bf16.mxu0 %v4715_v18  ;;  %v4767_v18 = vpack.c.bf16 %v641_v11, %v640_v10  ;;  %v682_v10 = vld [vmem:[#allocation5 + $0xbf0] sm:$0xff]  ;;  %v683_v11 = vld [vmem:[#allocation5 + $0xbf8] sm:$0xff] }
 0x218   :  { %4746 = vmatpush3.bf16.msra.mxu1 %v4745_v17  ;;  %v4797_v17 = vpack.c.bf16 %v655_v9, %v654_v7  ;;  %v665_v7 = vld [vmem:[#allocation5 + $0xb68] sm:$0xff]  ;;  %v651_v9 = vld [vmem:[#allocation5 + $0xaf8] sm:$0xff] }
 0x219   :  { %4748 = vmatprep.subr.bf16.mxu1 %v4747_v22  ;;  %v4799_v22 = vpack.c.bf16 %v673_v13, %v672_v12  ;;  %v4817_v13 = vpack.c.bf16 %v665_v7, %v664_v5  ;;  %v1571_v63 = vld [vmem:[#allocation8 + $0x78] sm:$0xff] }
 0x21a   :  { %4718 = vmatpush3.bf16.msra.mxu0 %v4717_v28  ;;  %v4769_v28 = vpack.c.bf16 %v625_v20, %v624_v19  ;;  %v667_v19 = vld [vmem:[#allocation5 + $0xb78] sm:$0xff] }
 0x21b   :  { %4720 = vmatprep.subr.bf16.mxu0 %v4719_v30  ;;  %v4771_v30 = vpack.c.bf16 %v643_v25, %v642_v24  ;;  %v3647_v25 = vld [vmem:[#allocation7] ss:$0 sm:$0xff]  ;;  %v1652_v5 = vld [vmem:[#allocation11 + $0x10] sm:$0xff] }
 0x21c   :  { %4750 = vmatpush3.bf16.msra.mxu1 %v4749_v29  ;;  %v4801_v29 = vpack.c.bf16 %v657_v23, %v656_v21  ;;  %v707_v23 = vld [vmem:[#allocation2 + $0xb0] sm:$0xff]  ;;  %v1653_v7 = vld [vmem:[#allocation11 + $0x18] sm:$0xff] }
 0x21d   :  { %4752 = vmatprep.subr.bf16.mxu1 %v4751_v34  ;;  %v4803_v34 = vpack.c.bf16 %v675_v27, %v674_v26 }
 0x21e   :  { %4722 = vmatpush3.bf16.msra.mxu0 %v4721_v40  ;;  %v4773_v40 = vpack.c.bf16 %v627_v32, %v626_v31 }
 0x21f   :  { %4724 = vmatprep.subr.bf16.mxu0 %v4723_v42  ;;  %v4775_v42 = vpack.c.bf16 %v645_v37, %v644_v36  ;;  %v5935_v36 = vmov 0.0|0.0  }
 0x220   :  { %4754 = vmatpush3.bf16.msra.mxu1 %v4753_v41  ;;  %v4805_v41 = vpack.c.bf16 %v659_v35, %v658_v33  ;;  %v1556_v33 = vld [vmem:[#allocation8] sm:$0xff]  ;;  %v1558_v35 = vld [vmem:[#allocation8 + $0x10] sm:$0xff] }
 0x221   :  { %4756 = vmatprep.subr.bf16.mxu1 %v4755_v46  ;;  %v4807_v46 = vpack.c.bf16 %v677_v39, %v676_v38  ;;  %v1559_v38 = vld [vmem:[#allocation8 + $0x18] sm:$0xff] }
 0x222   :  { %4726 = vmatpush3.bf16.msra.mxu0 %v4725_v52  ;;  %v4777_v52 = vpack.c.bf16 %v629_v44, %v628_v43  ;;  %v4827_v39 = vpack.c.bf16 %v1559_v38, %v1558_v35  ;;  %v1562_v43 = vld [vmem:[#allocation8 + $0x30] sm:$0xff]  ;;  %v1563_v44 = vld [vmem:[#allocation8 + $0x38] sm:$0xff] }
 0x223   :  { %4760 = vmatprep.subr.bf16.mxu0 %v4759_v54  ;;  %v4779_v54 = vpack.c.bf16 %v647_v49, %v646_v48  ;;  %v1566_v49 = vld [vmem:[#allocation8 + $0x50] sm:$0xff] }
 0x224   :  { %4758 = vmatpush3.bf16.msra.mxu1 %v4757_v53  ;;  %v4809_v53 = vpack.c.bf16 %v661_v47, %v660_v45  ;;  %v4833_v45 = vpack.c.bf16 %v1563_v44, %v1562_v43  ;;  %v1565_v47 = vld [vmem:[#allocation8 + $0x48] sm:$0xff] }
 0x225   :  { %4792 = vmatprep.subr.bf16.mxu1 %v4791_v58  ;;  %1340 = vmatmul.mubr.f32.vlgmr.msra.gmra.mrb[8].mxu0 %v701_v0  ;;  %v4811_v58 = vpack.c.bf16 %v679_v51, %v678_v50  ;;  %v4781_v0 = vpack.c.bf16 %v631_v56, %v630_v55  ;;  %v1567_v50 = vld [vmem:[#allocation8 + $0x58] sm:$0xff] }
 0x226   :  { %4762 = vmatpush3.bf16.msra.mxu0 %v4761_v1  ;;  %1479 = vmatprep.mubr.f32.mxu0 %v706_v14  ;;  %v4813_v1 = vpack.c.bf16 %v663_v59, %v662_v57  ;;  %v4839_v51 = vpack.c.bf16 %v1567_v50, %v1566_v49 }
 0x227   :  { %1410 = vmatmul.mubr.f32.vlgmr.msra.gmra.mrb[8].mxu1 %v703_v2  ;;  %4764 = vmatprep.subr.bf16.mxu0 %v4763_v4  ;;  %v4783_v2 = vpack.c.bf16 %v649_v61, %v648_v60  ;;  %v633_v4 = vld [vmem:[#allocation5 + $0xa68] sm:$0xff] }
 0x228   :  { %4794 = vmatpush3.bf16.msra.mxu1 %v4793_v3  ;;  %1549 = vmatprep.mubr.f32.mxu1 %v708_v16  ;;  %v632_v3 = vld [vmem:[#allocation5 + $0xa60] sm:$0xff]  ;;  %v635_v16 = vld [vmem:[#allocation5 + $0xa78] sm:$0xff] }
 0x229   :  { %4796 = vmatprep.subr.bf16.mxu1 %v4795_v8  ;;  %v650_v8 = vld [vmem:[#allocation5 + $0xaf0] sm:$0xff]  ;;  %v4785_v12 = vpack.c.bf16 %v633_v4, %v632_v3  ;;  %v1650_v3 = vld [vmem:[#allocation11] sm:$0xff] }
 0x22a   :  { %4766 = vmatpush3.bf16.msra.mxu0 %v4765_v15  ;;  %v4787_v14 = vpack.c.bf16 %v651_v9, %v650_v8  ;;  %v634_v15 = vld [vmem:[#allocation5 + $0xa70] sm:$0xff]  ;;  %v4851_v8 = vpack.c.bf16 %v1653_v7, %v1652_v5  ;;  %v1654_v9 = vld [vmem:[#allocation11 + $0x20] sm:$0xff] }
 0x22b   :  { %4768 = vmatprep.subr.bf16.mxu0 %v4767_v18  ;;  %v666_v18 = vld [vmem:[#allocation5 + $0xb70] sm:$0xff]  ;;  %v4789_v20 = vpack.c.bf16 %v635_v16, %v634_v15  ;;  %v1658_v15 = vld [vmem:[#allocation11 + $0x40] sm:$0xff] }
 0x22c   :  { %4798 = vmatpush3.bf16.msra.mxu1 %v4797_v17  ;;  %v4819_v17 = vpack.c.bf16 %v683_v11, %v682_v10  ;;  %v4821_v21 = vpack.c.bf16 %v667_v19, %v666_v18  ;;  %v1651_v4 = vld [vmem:[#allocation11 + $0x8] sm:$0xff]  ;;  %v1660_v18 = vld [vmem:[#allocation11 + $0x50] sm:$0xff]  ;;  %v1661_v19 = vld [vmem:[#allocation11 + $0x58] sm:$0xff] }
 0x22d   :  { %4800 = vmatprep.subr.bf16.mxu1 %v4799_v22  ;;  %v705_v22 = vld [vmem:[#allocation2 + $0xa0] sm:$0xff]  ;;  %v1655_v10 = vld [vmem:[#allocation11 + $0x28] sm:$0xff]  ;;  %v1750_v7 = vld [vmem:[#allocation14 + $0x30] sm:$0xff] }
 0x22e   :  { %4770 = vmatpush3.bf16.msra.mxu0 %v4769_v28  ;;  %v4854_v11 = vpack.c.bf16 %v1655_v10, %v1654_v9  ;;  %v1659_v16 = vld [vmem:[#allocation11 + $0x48] sm:$0xff] }
 0x22f   :  { %4772 = vmatprep.subr.bf16.mxu0 %v4771_v30  ;;  %v1749_v5 = vld [vmem:[#allocation14 + $0x28] sm:$0xff]  ;;  %v1752_v10 = vld [vmem:[#allocation14 + $0x40] sm:$0xff] }
 0x230   :  { %4802 = vmatpush3.bf16.msra.mxu1 %v4801_v29 }
 0x231   :  { %4804 = vmatprep.subr.bf16.mxu1 %v4803_v34  ;;  %v1557_v34 = vld [vmem:[#allocation8 + $0x8] sm:$0xff] }
 0x232   :  { %4774 = vmatpush3.bf16.msra.mxu0 %v4773_v40  ;;  %v4824_v37 = vpack.c.bf16 %v1557_v34, %v1556_v33  ;;  %v1560_v40 = vld [vmem:[#allocation8 + $0x20] sm:$0xff] }
 0x233   :  { %4776 = vmatprep.subr.bf16.mxu0 %v4775_v42 }
 0x234   :  { %4806 = vmatpush3.bf16.msra.mxu1 %v4805_v41  ;;  %v1561_v41 = vld [vmem:[#allocation8 + $0x28] sm:$0xff] }
 0x235   :  { %4808 = vmatprep.subr.bf16.mxu1 %v4807_v46  ;;  %v4830_v42 = vpack.c.bf16 %v1561_v41, %v1560_v40  ;;  %v1564_v46 = vld [vmem:[#allocation8 + $0x40] sm:$0xff] }
 0x236   :  { %4778 = vmatpush3.bf16.msra.mxu0 %v4777_v52  ;;  %v4836_v48 = vpack.c.bf16 %v1565_v47, %v1564_v46 }
 0x237   :  { %4780 = vmatprep.subr.bf16.mxu0 %v4779_v54  ;;  %v1569_v54 = vld [vmem:[#allocation8 + $0x68] sm:$0xff] }
 0x238   :  { %4810 = vmatpush3.bf16.msra.mxu1 %v4809_v53  ;;  %v1568_v53 = vld [vmem:[#allocation8 + $0x60] sm:$0xff] }
 0x239   :  { %4812 = vmatprep.subr.bf16.mxu1 %v4811_v58  ;;  %v4842_v57 = vpack.c.bf16 %v1569_v54, %v1568_v53 }
 0x23a   :  { %4782 = vmatpush3.bf16.msra.mxu0 %v4781_v0  ;;  %v4845_v0 = vpack.c.bf16 %v1571_v63, %v1570_v62  ;;  %v1745_v62 = vld [vmem:[#allocation14 + $0x8] sm:$0xff]  ;;  %v1746_v63 = vld [vmem:[#allocation14 + $0x10] sm:$0xff] }
 0x23b   :  { %4784 = vmatprep.subr.bf16.mxu0 %v4783_v2  ;;  %v5937_v2 = vmov 0.0  }
 0x23c   :  { %4814 = vmatpush3.bf16.msra.mxu1 %v4813_v1 }
 0x23d   :  { %4816 = vmatprep.subr.bf16.mxu1 %v4815_v6  ;;  %v4848_v6 = vpack.c.bf16 %v1651_v4, %v1650_v3  ;;  %v1748_v4 = vld [vmem:[#allocation14 + $0x20] sm:$0xff] }
 0x23e   :  { %4786 = vmatpush3.bf16.msra.mxu0 %v4785_v12  ;;  %v1656_v12 = vld [vmem:[#allocation11 + $0x30] sm:$0xff] }
 0x23f   :  { %4788 = vmatprep.subr.bf16.mxu0 %v4787_v14 }
 0x240   :  { %4818 = vmatpush3.bf16.msra.mxu1 %v4817_v13  ;;  %v1657_v13 = vld [vmem:[#allocation11 + $0x38] sm:$0xff] }
 0x241   :  { %4820 = vmatprep.subr.bf16.mxu1 %v4819_v17  ;;  %v4857_v14 = vpack.c.bf16 %v1657_v13, %v1656_v12  ;;  %v4860_v17 = vpack.c.bf16 %v1659_v16, %v1658_v15  ;;  %v1754_v13 = vld [vmem:[#allocation14 + $0x50] sm:$0xff]  ;;  %v1756_v16 = vld [vmem:[#allocation14 + $0x60] sm:$0xff] }
 0x242   :  { %4790 = vmatpush3.bf16.msra.mxu0 %v4789_v20  ;;  %v4863_v20 = vpack.c.bf16 %v1661_v19, %v1660_v18  ;;  %v3648_v19 = vld [vmem:[#allocation10] ss:$0 sm:$0xff] }
 0x243   :  { %4823 = vmatprep.subr.bf16.mxu0 %v5935_v36 }
 0x244   :  { %4822 = vmatpush3.bf16.msra.mxu1 %v4821_v21  ;;  %v1662_v21 = vld [vmem:[#allocation11 + $0x60] sm:$0xff] }
 0x245   :  { %1480 = vmatmul.mubr.f32.vlgmr.msra.gmra.mrb[10].mxu0 %v705_v22  ;;  %4847 = vmatprep.subr.bf16.mxu1 %v5935_v36  ;;  %v1663_v22 = vld [vmem:[#allocation11 + $0x68] sm:$0xff] }
 0x246   :  { %4825 = vmatpush3.bf16.msra.mxu0 %v4824_v37  ;;  %4226 = vmatprep.mubr.msk.f32.mxu0 %vm5936_vm0, %v5937_v2 }
 0x247   :  { %1550 = vmatmul.mubr.f32.vlgmr.msra.gmra.mrb[10].mxu1 %v707_v23  ;;  %4826 = vmatprep.subr.bf16.mxu0 %v5935_v36 }
 0x248   :  { %4261 = vmatprep.mubr.msk.f32.mxu1 %vm5936_vm0, %v5937_v2  ;;  %4849 = vmatpush3.bf16.msra.mxu1 %v4848_v6  ;;  %v4878_v6 = vpack.c.bf16 %v1749_v5, %v1748_v4  ;;  %v1938_v4 = vld [vmem:[#allocation20 + $0x38] sm:$0xff] }
 0x249   :  { %4850 = vmatprep.subr.bf16.mxu1 %v5935_v36 }
 0x24a   :  { %4828 = vmatpush3.bf16.msra.mxu0 %v4827_v39 }
 0x24b   :  { %4829 = vmatprep.subr.bf16.mxu0 %v5935_v36 }
 0x24c   :  { %4852 = vmatpush3.bf16.msra.mxu1 %v4851_v8  ;;  %v1751_v8 = vld [vmem:[#allocation14 + $0x38] sm:$0xff] }
 0x24d   :  { %4853 = vmatprep.subr.bf16.mxu1 %v5935_v36  ;;  %v4881_v9 = vpack.c.bf16 %v1751_v8, %v1750_v7  ;;  %v1940_v7 = vld [vmem:[#allocation20 + $0x48] sm:$0xff] }
 0x24e   :  { %4831 = vmatpush3.bf16.msra.mxu0 %v4830_v42 }
 0x24f   :  { %4832 = vmatprep.subr.bf16.mxu0 %v5935_v36 }
 0x250   :  { %4855 = vmatpush3.bf16.msra.mxu1 %v4854_v11  ;;  %v1753_v11 = vld [vmem:[#allocation14 + $0x48] sm:$0xff] }
 0x251   :  { %4856 = vmatprep.subr.bf16.mxu1 %v5935_v36  ;;  %v4884_v12 = vpack.c.bf16 %v1753_v11, %v1752_v10  ;;  %v1942_v10 = vld [vmem:[#allocation20 + $0x58] sm:$0xff] }
 0x252   :  { %4834 = vmatpush3.bf16.msra.mxu0 %v4833_v45 }
 0x253   :  { %4835 = vmatprep.subr.bf16.mxu0 %v5935_v36 }
 0x254   :  { %4858 = vmatpush3.bf16.msra.mxu1 %v4857_v14  ;;  %v1755_v14 = vld [vmem:[#allocation14 + $0x58] sm:$0xff] }
 0x255   :  { %4859 = vmatprep.subr.bf16.mxu1 %v5935_v36  ;;  %v4887_v15 = vpack.c.bf16 %v1755_v14, %v1754_v13  ;;  %v1944_v13 = vld [vmem:[#allocation20 + $0x68] sm:$0xff] }
 0x256   :  { %4837 = vmatpush3.bf16.msra.mxu0 %v4836_v48 }
 0x257   :  { %4838 = vmatprep.subr.bf16.mxu0 %v5935_v36 }
 0x258   :  { %4861 = vmatpush3.bf16.msra.mxu1 %v4860_v17  ;;  %v1757_v17 = vld [vmem:[#allocation14 + $0x68] sm:$0xff] }
 0x259   :  { %4862 = vmatprep.subr.bf16.mxu1 %v5935_v36  ;;  %v4890_v18 = vpack.c.bf16 %v1757_v17, %v1756_v16 }
 0x25a   :  { %4840 = vmatpush3.bf16.msra.mxu0 %v4839_v51 }
 0x25b   :  { %4841 = vmatprep.subr.bf16.mxu0 %v5935_v36 }
 0x25c   :  { %4864 = vmatpush3.bf16.msra.mxu1 %v4863_v20 }
 0x25d   :  { %4865 = vmatprep.subr.bf16.mxu1 %v5935_v36 }
 0x25e   :  { %4843 = vmatpush3.bf16.msra.mxu0 %v4842_v57 }
 0x25f   :  { %4844 = vmatprep.subr.bf16.mxu0 %v5935_v36 }
 0x262   :  { %4846 = vmatpush3.bf16.msra.mxu0 %v4845_v0 }
 0x263   :  { %4871 = vmatprep.subr.bf16.mxu0 %v5935_v36 }
 0x278   :  { %v3687_v24 = vpop.f32.mrb[0].mxu0 }
 0x279   :  { %v3688_v26 = vpop.f32.mrb[1].mxu0 }
 0x27a   :  { %v3722_v27 = vpop.f32.mrb[0].mxu1  ;;  %v3689_v28 = vadd.f32 %v3688_v26, %v3687_v24  ;;  %v4866_v26 = vpack.c.bf16 %v1663_v22, %v1662_v21 }
 0x27b   :  { %v3723_v29 = vpop.f32.mrb[1].mxu1 }
 0x27c   :  { %v3724_v30 = vadd.f32 %v3723_v29, %v3722_v27  ;;  %v782_v31 = vadd.f32 %v3689_v28, %v3647_v25  ;;  %4867 = vmatpush3.bf16.msra.mxu1 %v4866_v26 }
 0x27d   :  { %4868 = vmatprep.subr.bf16.mxu1 %v5935_v36 }
 0x27e   :  { %v852_v32 = vadd.f32 %v3724_v30, %v782_v31 }
 0x298   :  { %v3757_v52 = vpop.f32.mrb[2].mxu0 }
 0x299   :  { %v3758_v55 = vpop.f32.mrb[3].mxu0 }
 0x29a   :  { %v3792_v56 = vpop.f32.mrb[2].mxu1  ;;  %v3759_v58 = vadd.f32 %v3758_v55, %v3757_v52 }
 0x29b   :  { %v3793_v59 = vpop.f32.mrb[3].mxu1 }
 0x29c   :  { %v3794_v60 = vadd.f32 %v3793_v59, %v3792_v56  ;;  %v922_v61 = vadd.f32 %v3759_v58, %v852_v32  ;;  %v1664_v58 = vld [vmem:[#allocation11 + $0x70] sm:$0xff]  ;;  %v1665_v59 = vld [vmem:[#allocation11 + $0x78] sm:$0xff] }
 0x29e   :  { %v992_v1 = vadd.f32 %v3794_v60, %v922_v61  ;;  %v4869_v60 = vpack.c.bf16 %v1665_v59, %v1664_v58  ;;  %v1744_v61 = vld [vmem:[#allocation14] sm:$0xff]  ;;  %v1932_v58 = vld [vmem:[#allocation20 + $0x8] sm:$0xff]  ;;  %v1933_v59 = vld [vmem:[#allocation20 + $0x10] sm:$0xff] }
 0x29f   :  { %v4872_v0 = vpack.c.bf16 %v1745_v62, %v1744_v61  ;;  %v1934_v61 = vld [vmem:[#allocation20 + $0x18] sm:$0xff] }
 0x2a0   :  { %4870 = vmatpush3.bf16.msra.mxu1 %v4869_v60  ;;  %v4923_v62 = vpack.c.bf16 %v1934_v61, %v1933_v59  ;;  %v2124_v59 = vld [vmem:[#allocation26 + $0x28] sm:$0xff]  ;;  %v2125_v61 = vld [vmem:[#allocation26 + $0x30] sm:$0xff] }
 0x2a1   :  { %4895 = vmatprep.subr.bf16.mxu1 %v5935_v36 }
 0x2b8   :  { %v3827_v23 = vpop.f32.mrb[4].mxu0 }
 0x2b9   :  { %v3828_v24 = vpop.f32.mrb[5].mxu0 }
 0x2ba   :  { %v3862_v25 = vpop.f32.mrb[4].mxu1  ;;  %v3829_v27 = vadd.f32 %v3828_v24, %v3827_v23  ;;  %v1758_v24 = vld [vmem:[#allocation14 + $0x70] sm:$0xff] }
 0x2bb   :  { %v3863_v28 = vpop.f32.mrb[5].mxu1 }
 0x2bc   :  { %v3864_v29 = vadd.f32 %v3863_v28, %v3862_v25  ;;  %v1062_v30 = vadd.f32 %v3829_v27, %v992_v1  ;;  %v1747_v1 = vld [vmem:[#allocation14 + $0x18] sm:$0xff]  ;;  %v1838_v27 = vld [vmem:[#allocation17] sm:$0xff]  ;;  %v1839_v28 = vld [vmem:[#allocation17 + $0x8] sm:$0xff] }
 0x2bd   :  { %v4875_v3 = vpack.c.bf16 %v1747_v1, %v1746_v63  ;;  %v1759_v25 = vld [vmem:[#allocation14 + $0x78] sm:$0xff]  ;;  %v1935_v63 = vld [vmem:[#allocation20 + $0x20] sm:$0xff] }
 0x2be   :  { %v1132_v31 = vadd.f32 %v3864_v29, %v1062_v30  ;;  %v4893_v26 = vpack.c.bf16 %v1759_v25, %v1758_v24  ;;  %v1840_v29 = vld [vmem:[#allocation17 + $0x10] sm:$0xff]  ;;  %v4896_v30 = vpack.c.bf16 %v1839_v28, %v1838_v27  ;;  %v2028_v27 = vld [vmem:[#allocation23 + $0x18] sm:$0xff] }
 0x2bf   :  { %v2026_v24 = vld [vmem:[#allocation23 + $0x8] sm:$0xff]  ;;  %v2027_v25 = vld [vmem:[#allocation23 + $0x10] sm:$0xff] }
 0x2c0   :  { %v4947_v28 = vpack.c.bf16 %v2028_v27, %v2027_v25  ;;  %v2286_v27 = vld [vmem:[#allocation29 + $0x248] sm:$0xff] }
 0x2d8   :  { %v3897_v32 = vpop.f32.mrb[6].mxu0 }
 0x2d9   :  { %v3898_v33 = vpop.f32.mrb[7].mxu0 }
 0x2da   :  { %v3932_v34 = vpop.f32.mrb[6].mxu1  ;;  %v3899_v35 = vadd.f32 %v3898_v33, %v3897_v32  ;;  %v1842_v33 = vld [vmem:[#allocation17 + $0x20] sm:$0xff] }
 0x2db   :  { %v3933_v37 = vpop.f32.mrb[7].mxu1 }
 0x2dc   :  { %v3934_v38 = vadd.f32 %v3933_v37, %v3932_v34  ;;  %v1202_v39 = vadd.f32 %v3899_v35, %v1132_v31  ;;  %v1841_v31 = vld [vmem:[#allocation17 + $0x18] sm:$0xff]  ;;  %v1843_v34 = vld [vmem:[#allocation17 + $0x28] sm:$0xff]  ;;  %v1844_v37 = vld [vmem:[#allocation17 + $0x30] sm:$0xff] }
 0x2dd   :  { %v4899_v32 = vpack.c.bf16 %v1841_v31, %v1840_v29  ;;  %v4902_v35 = vpack.c.bf16 %v1843_v34, %v1842_v33  ;;  %v2029_v29 = vld [vmem:[#allocation23 + $0x20] sm:$0xff]  ;;  %v2032_v33 = vld [vmem:[#allocation23 + $0x38] sm:$0xff] }
 0x2de   :  { %v1272_v40 = vadd.f32 %v3934_v38, %v1202_v39  ;;  %v1845_v38 = vld [vmem:[#allocation17 + $0x38] sm:$0xff] }
 0x2df   :  { %v4905_v39 = vpack.c.bf16 %v1845_v38, %v1844_v37  ;;  %v2034_v37 = vld [vmem:[#allocation23 + $0x48] sm:$0xff] }
 0x2f8   :  { %v3967_v41 = vpop.f32.mrb[8].mxu0 }
 0x2f9   :  { %v3968_v42 = vpop.f32.mrb[9].mxu0 }
 0x2fa   :  { %v4002_v43 = vpop.f32.mrb[8].mxu1  ;;  %v3969_v44 = vadd.f32 %v3968_v42, %v3967_v41  ;;  %v1847_v41 = vld [vmem:[#allocation17 + $0x48] sm:$0xff] }
 0x2fb   :  { %v4003_v45 = vpop.f32.mrb[9].mxu1 }
 0x2fc   :  { %v4004_v46 = vadd.f32 %v4003_v45, %v4002_v43  ;;  %v1342_v47 = vadd.f32 %v3969_v44, %v1272_v40  ;;  %v1846_v40 = vld [vmem:[#allocation17 + $0x40] sm:$0xff]  ;;  %v1848_v43 = vld [vmem:[#allocation17 + $0x50] sm:$0xff]  ;;  %v1849_v44 = vld [vmem:[#allocation17 + $0x58] sm:$0xff] }
 0x2fd   :  { %v4908_v42 = vpack.c.bf16 %v1847_v41, %v1846_v40  ;;  %v4911_v45 = vpack.c.bf16 %v1849_v44, %v1848_v43  ;;  %v2036_v40 = vld [vmem:[#allocation23 + $0x58] sm:$0xff]  ;;  %v2038_v43 = vld [vmem:[#allocation23 + $0x68] sm:$0xff] }
 0x2fe   :  { %v1412_v48 = vadd.f32 %v4004_v46, %v1342_v47  ;;  %v1850_v46 = vld [vmem:[#allocation17 + $0x60] sm:$0xff]  ;;  %v1851_v47 = vld [vmem:[#allocation17 + $0x68] sm:$0xff] }
 0x318   :  { %v4037_v49 = vpop.f32.mrb[10].mxu0 }
 0x319   :  { %v4038_v50 = vpop.f32.mrb[11].mxu0 }
 0x31a   :  { %v4072_v51 = vpop.f32.mrb[10].mxu1  ;;  %v4039_v52 = vadd.f32 %v4038_v50, %v4037_v49  ;;  %v3649_v49 = vld [vmem:[#allocation13] ss:$0 sm:$0xff] }
 0x31b   :  { %v4073_v53 = vpop.f32.mrb[11].mxu1 }
 0x31c   :  { %v4074_v54 = vadd.f32 %v4073_v53, %v4072_v51  ;;  %v1482_v55 = vadd.f32 %v4039_v52, %v1412_v48  ;;  %v4914_v48 = vpack.c.bf16 %v1851_v47, %v1850_v46 }
 0x31e   :  { %v1552_v56 = vadd.f32 %v4074_v54, %v1482_v55  ;;  %v1852_v54 = vld [vmem:[#allocation17 + $0x70] sm:$0xff]  ;;  %v1853_v55 = vld [vmem:[#allocation17 + $0x78] sm:$0xff] }
 0x320   :  { %v1555_v57 = vmax.f32 %v1552_v56, 0.0  ;;  %v4917_v56 = vpack.c.bf16 %v1853_v55, %v1852_v54  ;;  %v2121_v54 = vld [vmem:[#allocation26 + $0x10] sm:$0xff] }
 0x322   :  { %4227 = vmatmul.mubr.f32.vlgmr.msra.gmra.mrb[12].mxu0 %v1555_v57  ;;  %v1931_v57 = vld [vmem:[#allocation20] sm:$0xff] }
 0x323   :  { %4296 = vmatprep.mubr.msk.f32.mxu0 %vm5936_vm0, %v5937_v2  ;;  %4873 = vmatpush3.bf16.msra.mxu0 %v4872_v0  ;;  %v4920_v60 = vpack.c.bf16 %v1932_v58, %v1931_v57  ;;  %v1936_v0 = vld [vmem:[#allocation20 + $0x28] sm:$0xff] }
 0x324   :  { %4874 = vmatprep.subr.bf16.mxu0 %v5935_v36  ;;  %v4926_v1 = vpack.c.bf16 %v1936_v0, %v1935_v63  ;;  %v2123_v58 = vld [vmem:[#allocation26 + $0x20] sm:$0xff] }
 0x325   :  { %v2127_v0 = vld [vmem:[#allocation26 + $0x40] sm:$0xff] }
 0x327   :  { %4876 = vmatpush3.bf16.msra.mxu0 %v4875_v3  ;;  %v1937_v3 = vld [vmem:[#allocation20 + $0x30] sm:$0xff] }
 0x328   :  { %4877 = vmatprep.subr.bf16.mxu0 %v5935_v36  ;;  %v4929_v5 = vpack.c.bf16 %v1938_v4, %v1937_v3  ;;  %v2129_v4 = vld [vmem:[#allocation26 + $0x50] sm:$0xff] }
 0x32b   :  { %4879 = vmatpush3.bf16.msra.mxu0 %v4878_v6  ;;  %v1939_v6 = vld [vmem:[#allocation20 + $0x40] sm:$0xff] }
 0x32c   :  { %4880 = vmatprep.subr.bf16.mxu0 %v5935_v36  ;;  %v4932_v8 = vpack.c.bf16 %v1940_v7, %v1939_v6  ;;  %v2131_v7 = vld [vmem:[#allocation26 + $0x60] sm:$0xff] }
 0x32f   :  { %4882 = vmatpush3.bf16.msra.mxu0 %v4881_v9  ;;  %v1941_v9 = vld [vmem:[#allocation20 + $0x50] sm:$0xff] }
 0x330   :  { %4883 = vmatprep.subr.bf16.mxu0 %v5935_v36  ;;  %v4935_v11 = vpack.c.bf16 %v1942_v10, %v1941_v9  ;;  %v3652_v10 = vld [vmem:[#allocation22] ss:$0 sm:$0xff] }
 0x333   :  { %4885 = vmatpush3.bf16.msra.mxu0 %v4884_v12  ;;  %v1943_v12 = vld [vmem:[#allocation20 + $0x60] sm:$0xff] }
 0x334   :  { %4886 = vmatprep.subr.bf16.mxu0 %v5935_v36  ;;  %v4938_v14 = vpack.c.bf16 %v1944_v13, %v1943_v12 }
 0x337   :  { %4888 = vmatpush3.bf16.msra.mxu0 %v4887_v15  ;;  %v3650_v15 = vld [vmem:[#allocation16] ss:$0 sm:$0xff] }
 0x338   :  { %4889 = vmatprep.subr.bf16.mxu0 %v5935_v36 }
 0x33b   :  { %4891 = vmatpush3.bf16.msra.mxu0 %v4890_v18 }
 0x33c   :  { %4892 = vmatprep.subr.bf16.mxu0 %v5935_v36 }
 0x33f   :  { %4894 = vmatpush3.bf16.msra.mxu0 %v4893_v26 }
 0x340   :  { %4919 = vmatprep.subr.bf16.mxu0 %v5935_v36 }
 0x3f5   :  { %v1645_v20 = vpop.f32.mrb[12].mxu0 }
 0x3f6   :  { %v1646_v21 = vadd.f32 %v3648_v19, %v1645_v20  ;;  %v4228_v22 = vpop.f32.mrb[13].mxu0  ;;  %v1945_v20 = vld [vmem:[#allocation20 + $0x70] sm:$0xff] }
 0x3f8   :  { %v1649_v23 = vmax.f32 %v1646_v21, 0.0  ;;  %v1946_v21 = vld [vmem:[#allocation20 + $0x78] sm:$0xff] }
 0x3f9   :  { %v4941_v22 = vpack.c.bf16 %v1946_v21, %v1945_v20  ;;  %v2216_v20 = vld [vmem:[#allocation29 + $0x18] sm:$0xff] }
 0x3fa   :  { %4262 = vmatmul.mubr.f32.vlgmr.msra.gmra.mrb[12].mxu1 %v1649_v23  ;;  %v2025_v23 = vld [vmem:[#allocation23] sm:$0xff] }
 0x3fb   :  { %4331 = vmatprep.mubr.msk.f32.mxu1 %vm5936_vm0, %v5937_v2  ;;  %4897 = vmatpush3.bf16.msra.mxu1 %v4896_v30  ;;  %v4944_v26 = vpack.c.bf16 %v2026_v24, %v2025_v23  ;;  %v2030_v30 = vld [vmem:[#allocation23 + $0x28] sm:$0xff] }
 0x3fc   :  { %4898 = vmatprep.subr.bf16.mxu1 %v5935_v36  ;;  %v4950_v31 = vpack.c.bf16 %v2030_v30, %v2029_v29  ;;  %v2213_v23 = vld [vmem:[#allocation29] sm:$0xff] }
 0x3fd   :  { %v2237_v24 = vld [vmem:[#allocation29 + $0xc0] sm:$0xff] }
 0x3fe   :  { %v4993_v25 = vpack.c.bf16 %v2237_v24, %v2213_v23  ;;  %v2261_v29 = vld [vmem:[#allocation29 + $0x180] sm:$0xff]  ;;  %v2359_v23 = vld [vmem:[#allocation29 + $0x490] sm:$0xff] }
 0x3ff   :  { %4900 = vmatpush3.bf16.msra.mxu1 %v4899_v32  ;;  %v2031_v32 = vld [vmem:[#allocation23 + $0x30] sm:$0xff]  ;;  %v2285_v30 = vld [vmem:[#allocation29 + $0x240] sm:$0xff] }
 0x400   :  { %4901 = vmatprep.subr.bf16.mxu1 %v5935_v36  ;;  %v4953_v34 = vpack.c.bf16 %v2032_v33, %v2031_v32  ;;  %v2310_v32 = vld [vmem:[#allocation29 + $0x308] sm:$0xff]  ;;  %v2383_v24 = vld [vmem:[#allocation29 + $0x550] sm:$0xff] }
 0x401   :  { %v2334_v33 = vld [vmem:[#allocation29 + $0x3c8] sm:$0xff] }
 0x403   :  { %4903 = vmatpush3.bf16.msra.mxu1 %v4902_v35  ;;  %v2033_v35 = vld [vmem:[#allocation23 + $0x40] sm:$0xff] }
 0x404   :  { %4904 = vmatprep.subr.bf16.mxu1 %v5935_v36  ;;  %v4956_v38 = vpack.c.bf16 %v2034_v37, %v2033_v35  ;;  %v2309_v35 = vld [vmem:[#allocation29 + $0x300] sm:$0xff] }
 0x405   :  { %v2333_v37 = vld [vmem:[#allocation29 + $0x3c0] sm:$0xff] }
 0x407   :  { %4906 = vmatpush3.bf16.msra.mxu1 %v4905_v39  ;;  %v2035_v39 = vld [vmem:[#allocation23 + $0x50] sm:$0xff] }
 0x408   :  { %4907 = vmatprep.subr.bf16.mxu1 %v5935_v36  ;;  %v4959_v41 = vpack.c.bf16 %v2036_v40, %v2035_v39  ;;  %v2358_v39 = vld [vmem:[#allocation29 + $0x488] sm:$0xff] }
 0x409   :  { %v2382_v40 = vld [vmem:[#allocation29 + $0x548] sm:$0xff] }
 0x40b   :  { %4909 = vmatpush3.bf16.msra.mxu1 %v4908_v42  ;;  %v2037_v42 = vld [vmem:[#allocation23 + $0x60] sm:$0xff] }
 0x40c   :  { %4910 = vmatprep.subr.bf16.mxu1 %v5935_v36  ;;  %v4962_v44 = vpack.c.bf16 %v2038_v43, %v2037_v42  ;;  %v2357_v42 = vld [vmem:[#allocation29 + $0x480] sm:$0xff] }
 0x40d   :  { %v2381_v43 = vld [vmem:[#allocation29 + $0x540] sm:$0xff] }
 0x40f   :  { %4912 = vmatpush3.bf16.msra.mxu1 %v4911_v45  ;;  %v3651_v45 = vld [vmem:[#allocation19] ss:$0 sm:$0xff] }
 0x410   :  { %4913 = vmatprep.subr.bf16.mxu1 %v5935_v36 }
 0x413   :  { %4915 = vmatpush3.bf16.msra.mxu1 %v4914_v48 }
 0x414   :  { %4916 = vmatprep.subr.bf16.mxu1 %v5935_v36 }
 0x417   :  { %4918 = vmatpush3.bf16.msra.mxu1 %v4917_v56  ;;  %v2122_v56 = vld [vmem:[#allocation26 + $0x18] sm:$0xff] }
 0x418   :  { %4943 = vmatprep.subr.bf16.mxu1 %v5935_v36  ;;  %v4971_v57 = vpack.c.bf16 %v2122_v56, %v2121_v54  ;;  %v2453_v54 = vld [vmem:[#allocation29 + $0x780] sm:$0xff] }
 0x4cd   :  { %v1739_v50 = vpop.f32.mrb[12].mxu1 }
 0x4ce   :  { %v1740_v51 = vadd.f32 %v3649_v49, %v1739_v50  ;;  %v4263_v52 = vpop.f32.mrb[13].mxu1  ;;  %v2039_v49 = vld [vmem:[#allocation23 + $0x70] sm:$0xff]  ;;  %v2040_v50 = vld [vmem:[#allocation23 + $0x78] sm:$0xff] }
 0x4cf   :  { %v2119_v52 = vld [vmem:[#allocation26] sm:$0xff] }
 0x4d0   :  { %v1743_v53 = vmax.f32 %v1740_v51, 0.0  ;;  %v4965_v51 = vpack.c.bf16 %v2040_v50, %v2039_v49  ;;  %v2429_v49 = vld [vmem:[#allocation29 + $0x6c0] sm:$0xff] }
 0x4d2   :  { %4297 = vmatmul.mubr.f32.vlgmr.msra.gmra.mrb[14].mxu0 %v1743_v53  ;;  %v2120_v53 = vld [vmem:[#allocation26 + $0x8] sm:$0xff] }
 0x4d3   :  { %4366 = vmatprep.mubr.msk.f32.mxu0 %vm5936_vm0, %v5937_v2  ;;  %4921 = vmatpush3.bf16.msra.mxu0 %v4920_v60  ;;  %v4968_v55 = vpack.c.bf16 %v2120_v53, %v2119_v52  ;;  %v4974_v60 = vpack.c.bf16 %v2124_v59, %v2123_v58  ;;  %v2478_v52 = vld [vmem:[#allocation29 + $0x848] sm:$0xff] }
 0x4d4   :  { %4922 = vmatprep.subr.bf16.mxu0 %v5935_v36  ;;  %v2526_v58 = vld [vmem:[#allocation29 + $0x9c8] sm:$0xff] }
 0x4d7   :  { %4924 = vmatpush3.bf16.msra.mxu0 %v4923_v62  ;;  %v2126_v62 = vld [vmem:[#allocation26 + $0x38] sm:$0xff] }
 0x4d8   :  { %4925 = vmatprep.subr.bf16.mxu0 %v5935_v36  ;;  %v4977_v63 = vpack.c.bf16 %v2126_v62, %v2125_v61  ;;  %v2525_v61 = vld [vmem:[#allocation29 + $0x9c0] sm:$0xff] }
 0x4db   :  { %4927 = vmatpush3.bf16.msra.mxu0 %v4926_v1  ;;  %v2128_v1 = vld [vmem:[#allocation26 + $0x48] sm:$0xff] }
 0x4dc   :  { %4928 = vmatprep.subr.bf16.mxu0 %v5935_v36  ;;  %v4980_v3 = vpack.c.bf16 %v2128_v1, %v2127_v0  ;;  %v2215_v0 = vld [vmem:[#allocation29 + $0x10] sm:$0xff] }
 0x4dd   :  { %v2239_v1 = vld [vmem:[#allocation29 + $0xd0] sm:$0xff] }
 0x4df   :  { %4930 = vmatpush3.bf16.msra.mxu0 %v4929_v5  ;;  %v2130_v5 = vld [vmem:[#allocation26 + $0x58] sm:$0xff] }
 0x4e0   :  { %4931 = vmatprep.subr.bf16.mxu0 %v5935_v36  ;;  %v4983_v6 = vpack.c.bf16 %v2130_v5, %v2129_v4  ;;  %v2264_v4 = vld [vmem:[#allocation29 + $0x198] sm:$0xff] }
 0x4e1   :  { %v2288_v5 = vld [vmem:[#allocation29 + $0x258] sm:$0xff] }
 0x4e3   :  { %4933 = vmatpush3.bf16.msra.mxu0 %v4932_v8  ;;  %v2132_v8 = vld [vmem:[#allocation26 + $0x68] sm:$0xff] }
 0x4e4   :  { %4934 = vmatprep.subr.bf16.mxu0 %v5935_v36  ;;  %v4986_v9 = vpack.c.bf16 %v2132_v8, %v2131_v7  ;;  %v5025_v8 = vpack.c.bf16 %v2239_v1, %v2215_v0  ;;  %v2241_v0 = vld [vmem:[#allocation29 + $0xe0] sm:$0xff]  ;;  %v2219_v1 = vld [vmem:[#allocation29 + $0x30] sm:$0xff] }
 0x4e7   :  { %4936 = vmatpush3.bf16.msra.mxu0 %v4935_v11 }
 0x4e8   :  { %4937 = vmatprep.subr.bf16.mxu0 %v5935_v36 }
 0x4eb   :  { %4939 = vmatpush3.bf16.msra.mxu0 %v4938_v14 }
 0x4ec   :  { %4940 = vmatprep.subr.bf16.mxu0 %v5935_v36 }
 0x4ef   :  { %4942 = vmatpush3.bf16.msra.mxu0 %v4941_v22  ;;  %v2240_v22 = vld [vmem:[#allocation29 + $0xd8] sm:$0xff] }
 0x4f0   :  { %4967 = vmatprep.subr.bf16.mxu0 %v5935_v36 }
 0x5a5   :  { %v1833_v16 = vpop.f32.mrb[14].mxu0 }
 0x5a6   :  { %v1834_v17 = vadd.f32 %v3650_v15, %v1833_v16  ;;  %v4298_v18 = vpop.f32.mrb[15].mxu0  ;;  %v2133_v15 = vld [vmem:[#allocation26 + $0x70] sm:$0xff]  ;;  %v2134_v16 = vld [vmem:[#allocation26 + $0x78] sm:$0xff] }
 0x5a7   :  { %v2214_v18 = vld [vmem:[#allocation29 + $0x8] sm:$0xff] }
 0x5a8   :  { %v1837_v19 = vmax.f32 %v1834_v17, 0.0  ;;  %v4989_v17 = vpack.c.bf16 %v2134_v16, %v2133_v15 }
 0x5aa   :  { %4332 = vmatmul.mubr.f32.vlgmr.msra.gmra.mrb[14].mxu1 %v1837_v19  ;;  %v2238_v19 = vld [vmem:[#allocation29 + $0xc8] sm:$0xff] }
 0x5ab   :  { %4401 = vmatprep.mubr.msk.f32.mxu1 %vm5936_vm0, %v5937_v2  ;;  %4945 = vmatpush3.bf16.msra.mxu1 %v4944_v26  ;;  %v4991_v21 = vpack.c.bf16 %v2238_v19, %v2214_v18  ;;  %v2262_v26 = vld [vmem:[#allocation29 + $0x188] sm:$0xff]  ;;  %v2335_v18 = vld [vmem:[#allocation29 + $0x3d0] sm:$0xff]  ;;  %v2360_v19 = vld [vmem:[#allocation29 + $0x498] sm:$0xff] }
 0x5ac   :  { %4946 = vmatprep.subr.bf16.mxu1 %v5935_v36 }
 0x5af   :  { %4948 = vmatpush3.bf16.msra.mxu1 %v4947_v28  ;;  %v4995_v28 = vpack.c.bf16 %v2286_v27, %v2262_v26  ;;  %v5037_v26 = vpack.c.bf16 %v2383_v24, %v2359_v23  ;;  %v2340_v23 = vld [vmem:[#allocation29 + $0x3f8] sm:$0xff] }
 0x5b0   :  { %4949 = vmatprep.subr.bf16.mxu1 %v5935_v36 }
 0x5b3   :  { %4951 = vmatpush3.bf16.msra.mxu1 %v4950_v31  ;;  %v4997_v31 = vpack.c.bf16 %v2285_v30, %v2261_v29  ;;  %v2431_v29 = vld [vmem:[#allocation29 + $0x6d0] sm:$0xff]  ;;  %v2456_v30 = vld [vmem:[#allocation29 + $0x798] sm:$0xff] }
 0x5b4   :  { %4952 = vmatprep.subr.bf16.mxu1 %v5935_v36 }
 0x5b7   :  { %4954 = vmatpush3.bf16.msra.mxu1 %v4953_v34  ;;  %v4999_v34 = vpack.c.bf16 %v2334_v33, %v2310_v32 }
 0x5b8   :  { %4955 = vmatprep.subr.bf16.mxu1 %v5935_v36 }
 0x5bb   :  { %4957 = vmatpush3.bf16.msra.mxu1 %v4956_v38  ;;  %v5001_v38 = vpack.c.bf16 %v2333_v37, %v2309_v35  ;;  %v2479_v35 = vld [vmem:[#allocation29 + $0x850] sm:$0xff]  ;;  %v2504_v37 = vld [vmem:[#allocation29 + $0x918] sm:$0xff] }
 0x5bc   :  { %4958 = vmatprep.subr.bf16.mxu1 %v5935_v36 }
 0x5bf   :  { %4960 = vmatpush3.bf16.msra.mxu1 %v4959_v41  ;;  %v5003_v41 = vpack.c.bf16 %v2382_v40, %v2358_v39 }
 0x5c0   :  { %4961 = vmatprep.subr.bf16.mxu1 %v5935_v36 }
 0x5c3   :  { %4963 = vmatpush3.bf16.msra.mxu1 %v4962_v44  ;;  %v5005_v44 = vpack.c.bf16 %v2381_v43, %v2357_v42  ;;  %v2527_v42 = vld [vmem:[#allocation29 + $0x9d0] sm:$0xff] }
 0x5c4   :  { %4964 = vmatprep.subr.bf16.mxu1 %v5935_v36 }
 0x5c7   :  { %4966 = vmatpush3.bf16.msra.mxu1 %v4965_v51  ;;  %v2454_v51 = vld [vmem:[#allocation29 + $0x788] sm:$0xff] }
 0x5c8   :  { %4992 = vmatprep.subr.bf16.mxu1 %v4991_v21  ;;  %v5011_v53 = vpack.c.bf16 %v2478_v52, %v2454_v51 }
 0x67d   :  { %v1927_v46 = vpop.f32.mrb[14].mxu1 }
 0x67e   :  { %v1928_v47 = vadd.f32 %v3651_v45, %v1927_v46  ;;  %v4333_v48 = vpop.f32.mrb[15].mxu1  ;;  %v2406_v45 = vld [vmem:[#allocation29 + $0x608] sm:$0xff] }
 0x67f   :  { %v2430_v46 = vld [vmem:[#allocation29 + $0x6c8] sm:$0xff]  ;;  %v2405_v48 = vld [vmem:[#allocation29 + $0x600] sm:$0xff] }
 0x680   :  { %4367 = vmatmul.mubr.f32.vlgmr.msra.gmra.mrb[16].mxu0 %v1928_v47  ;;  %v5007_v47 = vpack.c.bf16 %v2430_v46, %v2406_v45  ;;  %v5009_v50 = vpack.c.bf16 %v2429_v49, %v2405_v48  ;;  %v2574_v45 = vld [vmem:[#allocation29 + $0xb48] sm:$0xff]  ;;  %v2552_v46 = vld [vmem:[#allocation29 + $0xa98] sm:$0xff]  ;;  %v2549_v49 = vld [vmem:[#allocation29 + $0xa80] sm:$0xff] }
 0x681   :  { %4436 = vmatprep.mubr.msk.f32.mxu0 %vm5936_vm0, %v5937_v2  ;;  %4969 = vmatpush3.bf16.msra.mxu0 %v4968_v55  ;;  %v2477_v55 = vld [vmem:[#allocation29 + $0x840] sm:$0xff]  ;;  %v2576_v48 = vld [vmem:[#allocation29 + $0xb58] sm:$0xff] }
 0x682   :  { %4970 = vmatprep.subr.bf16.mxu0 %v5935_v36  ;;  %v5013_v56 = vpack.c.bf16 %v2477_v55, %v2453_v54  ;;  %v5051_v51 = vpack.c.bf16 %v2576_v48, %v2552_v46  ;;  %v2575_v54 = vld [vmem:[#allocation29 + $0xb50] sm:$0xff]  ;;  %v2412_v46 = vld [vmem:[#allocation29 + $0x638] sm:$0xff] }
 0x685   :  { %4972 = vmatpush3.bf16.msra.mxu0 %v4971_v57  ;;  %v2502_v57 = vld [vmem:[#allocation29 + $0x908] sm:$0xff] }
 0x686   :  { %4973 = vmatprep.subr.bf16.mxu0 %v5935_v36  ;;  %v5015_v59 = vpack.c.bf16 %v2526_v58, %v2502_v57  ;;  %v2242_v57 = vld [vmem:[#allocation29 + $0xe8] sm:$0xff]  ;;  %v2220_v58 = vld [vmem:[#allocation29 + $0x38] sm:$0xff] }
 0x689   :  { %4975 = vmatpush3.bf16.msra.mxu0 %v4974_v60  ;;  %v2501_v60 = vld [vmem:[#allocation29 + $0x900] sm:$0xff] }
 0x68a   :  { %4976 = vmatprep.subr.bf16.mxu0 %v5935_v36  ;;  %v5017_v62 = vpack.c.bf16 %v2525_v61, %v2501_v60  ;;  %v2244_v60 = vld [vmem:[#allocation29 + $0xf8] sm:$0xff] }
 0x68b   :  { %v5087_v61 = vpack.c.bf16 %v2244_v60, %v2220_v58  ;;  %v2460_v58 = vld [vmem:[#allocation29 + $0x7b8] sm:$0xff] }
 0x68d   :  { %4978 = vmatpush3.bf16.msra.mxu0 %v4977_v63  ;;  %v3653_v63 = vld [vmem:[#allocation25] ss:$0 sm:$0xff] }
 0x68e   :  { %4979 = vmatprep.subr.bf16.mxu0 %v5935_v36 }
 0x691   :  { %4981 = vmatpush3.bf16.msra.mxu0 %v4980_v3 }
 0x692   :  { %4982 = vmatprep.subr.bf16.mxu0 %v5935_v36 }
 0x695   :  { %4984 = vmatpush3.bf16.msra.mxu0 %v4983_v6 }
 0x696   :  { %4985 = vmatprep.subr.bf16.mxu0 %v5935_v36 }
 0x699   :  { %4987 = vmatpush3.bf16.msra.mxu0 %v4986_v9 }
 0x69a   :  { %4988 = vmatprep.subr.bf16.mxu0 %v5935_v36  ;;  %v5023_v36 = vpack.c.bf16 %v2240_v22, %v2216_v20  ;;  %v2384_v20 = vld [vmem:[#allocation29 + $0x558] sm:$0xff] }
 0x69b   :  { %v5035_v22 = vpack.c.bf16 %v2384_v20, %v2360_v19  ;;  %v2291_v19 = vld [vmem:[#allocation29 + $0x270] sm:$0xff]  ;;  %v2314_v20 = vld [vmem:[#allocation29 + $0x328] sm:$0xff] }
 0x69d   :  { %4990 = vmatpush3.bf16.msra.mxu0 %v4989_v17  ;;  %v2311_v17 = vld [vmem:[#allocation29 + $0x310] sm:$0xff] }
 0x69e   :  { %5024 = vmatprep.subr.bf16.mxu0 %v5023_v36  ;;  %v5033_v21 = vpack.c.bf16 %v2335_v18, %v2311_v17  ;;  %v2408_v36 = vld [vmem:[#allocation29 + $0x618] sm:$0xff]  ;;  %v2267_v18 = vld [vmem:[#allocation29 + $0x1b0] sm:$0xff] }
 0x753   :  { %v2020_v11 = vpop.f32.mrb[16].mxu0 }
 0x754   :  { %v2021_v12 = vadd.f32 %v3652_v10, %v2020_v11  ;;  %v4368_v13 = vpop.f32.mrb[17].mxu0  ;;  %v5027_v10 = vpack.c.bf16 %v2288_v5, %v2264_v4  ;;  %v2263_v11 = vld [vmem:[#allocation29 + $0x190] sm:$0xff]  ;;  %v2266_v4 = vld [vmem:[#allocation29 + $0x1a8] sm:$0xff] }
 0x755   :  { %v2312_v13 = vld [vmem:[#allocation29 + $0x318] sm:$0xff] }
 0x756   :  { %v2024_v14 = vmax.f32 %v2021_v12, 0.0  ;;  %v2287_v12 = vld [vmem:[#allocation29 + $0x250] sm:$0xff] }
 0x757   :  { %v5029_v15 = vpack.c.bf16 %v2287_v12, %v2263_v11 }
 0x758   :  { %4402 = vmatmul.mubr.f32.vlgmr.msra.gmra.mrb[16].mxu1 %v2024_v14  ;;  %v2336_v14 = vld [vmem:[#allocation29 + $0x3d8] sm:$0xff] }
 0x759   :  { %2787 = vmatprep.mubr.f32.mxu1 %v5937_v2  ;;  %4994 = vmatpush1.bf16.msra.mxu1 %v4993_v25  ;;  %v5031_v16 = vpack.c.bf16 %v2336_v14, %v2312_v13  ;;  %v2432_v25 = vld [vmem:[#allocation29 + $0x6d8] sm:$0xff]  ;;  %v2265_v13 = vld [vmem:[#allocation29 + $0x1a0] sm:$0xff] }
 0x75a   :  { %4996 = vmatprep.subr.bf16.mxu1 %v4995_v28  ;;  %v5039_v27 = vpack.c.bf16 %v2432_v25, %v2408_v36  ;;  %v2407_v28 = vld [vmem:[#allocation29 + $0x610] sm:$0xff]  ;;  %v2289_v14 = vld [vmem:[#allocation29 + $0x260] sm:$0xff]  ;;  %v5093_v36 = vpack.c.bf16 %v2291_v19, %v2267_v18  ;;  %v2554_v18 = vld [vmem:[#allocation29 + $0xaa8] sm:$0xff] }
 0x75b   :  { %v5041_v32 = vpack.c.bf16 %v2431_v29, %v2407_v28  ;;  %v5061_v24 = vpack.c.bf16 %v2289_v14, %v2265_v13  ;;  %v2313_v25 = vld [vmem:[#allocation29 + $0x320] sm:$0xff]  ;;  %v2315_v29 = vld [vmem:[#allocation29 + $0x330] sm:$0xff]  ;;  %v2578_v19 = vld [vmem:[#allocation29 + $0xb68] sm:$0xff] }
 0x75d   :  { %4998 = vmatpush1.bf16.msra.mxu1 %v4997_v31  ;;  %v2480_v31 = vld [vmem:[#allocation29 + $0x858] sm:$0xff] }
 0x75e   :  { %5000 = vmatprep.subr.bf16.mxu1 %v4999_v34  ;;  %v5043_v33 = vpack.c.bf16 %v2480_v31, %v2456_v30  ;;  %v2455_v34 = vld [vmem:[#allocation29 + $0x790] sm:$0xff]  ;;  %v2362_v31 = vld [vmem:[#allocation29 + $0x4a8] sm:$0xff] }
 0x75f   :  { %v5045_v39 = vpack.c.bf16 %v2479_v35, %v2455_v34  ;;  %v2339_v30 = vld [vmem:[#allocation29 + $0x3f0] sm:$0xff]  ;;  %v2388_v34 = vld [vmem:[#allocation29 + $0x578] sm:$0xff] }
 0x761   :  { %5002 = vmatpush1.bf16.msra.mxu1 %v5001_v38  ;;  %v2528_v38 = vld [vmem:[#allocation29 + $0x9d8] sm:$0xff] }
 0x762   :  { %5004 = vmatprep.subr.bf16.mxu1 %v5003_v41  ;;  %v5047_v40 = vpack.c.bf16 %v2528_v38, %v2504_v37  ;;  %v2503_v41 = vld [vmem:[#allocation29 + $0x910] sm:$0xff]  ;;  %v5097_v37 = vpack.c.bf16 %v2339_v30, %v2315_v29  ;;  %v2361_v38 = vld [vmem:[#allocation29 + $0x4a0] sm:$0xff]  ;;  %v2222_v29 = vld [vmem:[#allocation29 + $0x48] sm:$0xff] }
 0x763   :  { %v5049_v43 = vpack.c.bf16 %v2527_v42, %v2503_v41  ;;  %v2363_v42 = vld [vmem:[#allocation29 + $0x4b0] sm:$0xff]  ;;  %v2246_v30 = vld [vmem:[#allocation29 + $0x108] sm:$0xff] }
 0x765   :  { %5006 = vmatpush1.bf16.msra.mxu1 %v5005_v44  ;;  %v2550_v44 = vld [vmem:[#allocation29 + $0xa88] sm:$0xff] }
 0x766   :  { %5008 = vmatprep.subr.bf16.mxu1 %v5007_v47  ;;  %v5019_v47 = vpack.c.bf16 %v2574_v45, %v2550_v44  ;;  %v2410_v44 = vld [vmem:[#allocation29 + $0x628] sm:$0xff] }
 0x767   :  { %v2434_v45 = vld [vmem:[#allocation29 + $0x6e8] sm:$0xff] }
 0x769   :  { %5010 = vmatpush1.bf16.msra.mxu1 %v5009_v50  ;;  %v2573_v50 = vld [vmem:[#allocation29 + $0xb40] sm:$0xff] }
 0x76a   :  { %5012 = vmatprep.subr.bf16.mxu1 %v5011_v53  ;;  %v5021_v52 = vpack.c.bf16 %v2573_v50, %v2549_v49  ;;  %v2551_v53 = vld [vmem:[#allocation29 + $0xa90] sm:$0xff]  ;;  %v2409_v50 = vld [vmem:[#allocation29 + $0x620] sm:$0xff] }
 0x76b   :  { %v5053_v55 = vpack.c.bf16 %v2575_v54, %v2551_v53  ;;  %v2411_v54 = vld [vmem:[#allocation29 + $0x630] sm:$0xff] }
 0x76d   :  { %5014 = vmatpush1.bf16.msra.mxu1 %v5013_v56  ;;  %v2218_v56 = vld [vmem:[#allocation29 + $0x28] sm:$0xff] }
 0x76e   :  { %5016 = vmatprep.subr.bf16.mxu1 %v5015_v59  ;;  %v5055_v59 = vpack.c.bf16 %v2242_v57, %v2218_v56  ;;  %v2458_v56 = vld [vmem:[#allocation29 + $0x7a8] sm:$0xff] }
 0x76f   :  { %v2482_v57 = vld [vmem:[#allocation29 + $0x868] sm:$0xff] }
 0x771   :  { %5018 = vmatpush1.bf16.msra.mxu1 %v5017_v62  ;;  %v3654_v62 = vld [vmem:[#allocation28] ss:$0 sm:$0xff] }
 0x772   :  { %5020 = vmatprep.subr.bf16.mxu1 %v5019_v47  ;;  %v2436_v47 = vld [vmem:[#allocation29 + $0x6f8] sm:$0xff] }
 0x773   :  { %v5103_v53 = vpack.c.bf16 %v2436_v47, %v2412_v46 }
 0x775   :  { %5022 = vmatpush1.bf16.msra.mxu1 %v5021_v52  ;;  %v5071_v52 = vpack.c.bf16 %v2434_v45, %v2410_v44  ;;  %v2272_v44 = vld [vmem:[#allocation29 + $0x1d8] sm:$0xff] }
 0x776   :  { %5056 = vmatprep.subr.bf16.mxu1 %v5055_v59  ;;  %v2484_v59 = vld [vmem:[#allocation29 + $0x878] sm:$0xff] }
 0x777   :  { %v2296_v45 = vld [vmem:[#allocation29 + $0x298] sm:$0xff] }
 0x82b   :  { %v2114_v3 = vpop.f32.mrb[16].mxu1 }
 0x82c   :  { %v2115_v6 = vadd.f32 %v3653_v63, %v2114_v3  ;;  %v4403_v7 = vpop.f32.mrb[17].mxu1  ;;  %v2217_v63 = vld [vmem:[#allocation29 + $0x20] sm:$0xff]  ;;  %v2243_v3 = vld [vmem:[#allocation29 + $0xf0] sm:$0xff] }
 0x82d   :  { %v2268_v7 = vld [vmem:[#allocation29 + $0x1b8] sm:$0xff]  ;;  %v5057_v11 = vpack.c.bf16 %v2241_v0, %v2217_v63  ;;  %v5089_v12 = vpack.c.bf16 %v2243_v3, %v2219_v1  ;;  %v2481_v63 = vld [vmem:[#allocation29 + $0x860] sm:$0xff]  ;;  %v5075_v0 = vpack.c.bf16 %v2482_v57, %v2458_v56  ;;  %v5107_v1 = vpack.c.bf16 %v2484_v59, %v2460_v58  ;;  %v2459_v3 = vld [vmem:[#allocation29 + $0x7b0] sm:$0xff] }
 0x82e   :  { %v2118_v9 = vmax.f32 %v2115_v6, 0.0  ;;  %v2290_v6 = vld [vmem:[#allocation29 + $0x268] sm:$0xff]  ;;  %v2320_v56 = vld [vmem:[#allocation29 + $0x358] sm:$0xff] }
 0x82f   :  { %v2344_v57 = vld [vmem:[#allocation29 + $0x418] sm:$0xff] }
 0x830   :  { %4437 = vmatmul.mubr.f32.vlgmr.msra.gmra.mrb[18].mxu0 %v2118_v9 }
 0x831   :  { %5026 = vmatpush1.bf16.msra.mxu0 %v5025_v8  ;;  %2858 = vmatprep.mubr.f32.mxu0 %v5937_v2  ;;  %v2292_v8 = vld [vmem:[#allocation29 + $0x278] sm:$0xff] }
 0x832   :  { %5028 = vmatprep.subr.bf16.mxu0 %v5027_v10  ;;  %v5091_v17 = vpack.c.bf16 %v2292_v8, %v2268_v7  ;;  %v2508_v7 = vld [vmem:[#allocation29 + $0x938] sm:$0xff] }
 0x833   :  { %v2532_v8 = vld [vmem:[#allocation29 + $0x9f8] sm:$0xff] }
 0x834   :  { %v5111_v14 = vpack.c.bf16 %v2532_v8, %v2508_v7 }
 0x835   :  { %5030 = vmatpush1.bf16.msra.mxu0 %v5029_v15 }
 0x836   :  { %5032 = vmatprep.subr.bf16.mxu0 %v5031_v16  ;;  %v5059_v16 = vpack.c.bf16 %v2290_v6, %v2266_v4  ;;  %v2483_v4 = vld [vmem:[#allocation29 + $0x870] sm:$0xff]  ;;  %v2530_v6 = vld [vmem:[#allocation29 + $0x9e8] sm:$0xff] }
 0x839   :  { %5034 = vmatpush1.bf16.msra.mxu0 %v5033_v21  ;;  %v2338_v21 = vld [vmem:[#allocation29 + $0x3e8] sm:$0xff] }
 0x83a   :  { %5036 = vmatprep.subr.bf16.mxu0 %v5035_v22  ;;  %v2316_v22 = vld [vmem:[#allocation29 + $0x338] sm:$0xff] }
 0x83b   :  { %v5095_v28 = vpack.c.bf16 %v2340_v23, %v2316_v22 }
 0x83d   :  { %5038 = vmatpush1.bf16.msra.mxu0 %v5037_v26  ;;  %v2337_v26 = vld [vmem:[#allocation29 + $0x3e0] sm:$0xff] }
 0x83e   :  { %5040 = vmatprep.subr.bf16.mxu0 %v5039_v27  ;;  %v5063_v27 = vpack.c.bf16 %v2338_v21, %v2314_v20  ;;  %v5065_v35 = vpack.c.bf16 %v2337_v26, %v2313_v25  ;;  %v2556_v20 = vld [vmem:[#allocation29 + $0xab8] sm:$0xff]  ;;  %v5083_v25 = vpack.c.bf16 %v2578_v19, %v2554_v18 }
 0x83f   :  { %v2580_v21 = vld [vmem:[#allocation29 + $0xb78] sm:$0xff] }
 0x840   :  { %v5115_v26 = vpack.c.bf16 %v2580_v21, %v2556_v20  ;;  %v2416_v18 = vld [vmem:[#allocation29 + $0x658] sm:$0xff] }
 0x841   :  { %5042 = vmatpush1.bf16.msra.mxu0 %v5041_v32  ;;  %v2386_v32 = vld [vmem:[#allocation29 + $0x568] sm:$0xff]  ;;  %v2440_v19 = vld [vmem:[#allocation29 + $0x718] sm:$0xff] }
 0x842   :  { %5044 = vmatprep.subr.bf16.mxu0 %v5043_v33  ;;  %v2364_v33 = vld [vmem:[#allocation29 + $0x4b8] sm:$0xff] }
 0x843   :  { %v5099_v41 = vpack.c.bf16 %v2388_v34, %v2364_v33 }
 0x845   :  { %5046 = vmatpush1.bf16.msra.mxu0 %v5045_v39  ;;  %v2385_v39 = vld [vmem:[#allocation29 + $0x560] sm:$0xff] }
 0x846   :  { %5048 = vmatprep.subr.bf16.mxu0 %v5047_v40  ;;  %v5067_v40 = vpack.c.bf16 %v2386_v32, %v2362_v31  ;;  %v5069_v48 = vpack.c.bf16 %v2385_v39, %v2361_v38  ;;  %v2224_v31 = vld [vmem:[#allocation29 + $0x58] sm:$0xff]  ;;  %v5119_v38 = vpack.c.bf16 %v2246_v30, %v2222_v29 }
 0x847   :  { %v2248_v32 = vld [vmem:[#allocation29 + $0x118] sm:$0xff] }
 0x848   :  { %v5151_v39 = vpack.c.bf16 %v2248_v32, %v2224_v31  ;;  %v2464_v29 = vld [vmem:[#allocation29 + $0x7d8] sm:$0xff] }
 0x849   :  { %5050 = vmatpush1.bf16.msra.mxu0 %v5049_v43  ;;  %v2387_v43 = vld [vmem:[#allocation29 + $0x570] sm:$0xff]  ;;  %v2488_v30 = vld [vmem:[#allocation29 + $0x898] sm:$0xff] }
 0x84a   :  { %5052 = vmatprep.subr.bf16.mxu0 %v5051_v51  ;;  %v5101_v49 = vpack.c.bf16 %v2387_v43, %v2363_v42  ;;  %v2433_v51 = vld [vmem:[#allocation29 + $0x6e0] sm:$0xff]  ;;  %v2270_v42 = vld [vmem:[#allocation29 + $0x1c8] sm:$0xff] }
 0x84b   :  { %v5073_v60 = vpack.c.bf16 %v2433_v51, %v2409_v50  ;;  %v2294_v43 = vld [vmem:[#allocation29 + $0x288] sm:$0xff]  ;;  %v5155_v51 = vpack.c.bf16 %v2296_v45, %v2272_v44 }
 0x84c   :  { %v5123_v50 = vpack.c.bf16 %v2294_v43, %v2270_v42  ;;  %v2512_v42 = vld [vmem:[#allocation29 + $0x958] sm:$0xff] }
 0x84d   :  { %5054 = vmatpush1.bf16.msra.mxu0 %v5053_v55  ;;  %v2435_v55 = vld [vmem:[#allocation29 + $0x6f0] sm:$0xff]  ;;  %v2536_v43 = vld [vmem:[#allocation29 + $0xa18] sm:$0xff] }
 0x84e   :  { %5088 = vmatprep.subr.bf16.mxu0 %v5087_v61  ;;  %v5105_v61 = vpack.c.bf16 %v2435_v55, %v2411_v54  ;;  %v2318_v54 = vld [vmem:[#allocation29 + $0x348] sm:$0xff] }
 0x84f   :  { %v2342_v55 = vld [vmem:[#allocation29 + $0x408] sm:$0xff] }
 0x903   :  { %v2208_v5 = vpop.f32.mrb[18].mxu0 }
 0x904   :  { %v2209_v9 = vadd.f32 %v3654_v62, %v2208_v5  ;;  %v4438_v10 = vpop.f32.mrb[19].mxu0  ;;  %v2457_v62 = vld [vmem:[#allocation29 + $0x7a0] sm:$0xff]  ;;  %v2506_v5 = vld [vmem:[#allocation29 + $0x928] sm:$0xff] }
 0x905   :  { %v5109_v10 = vpack.c.bf16 %v2483_v4, %v2459_v3  ;;  %v5079_v13 = vpack.c.bf16 %v2530_v6, %v2506_v5  ;;  %v2366_v3 = vld [vmem:[#allocation29 + $0x4c8] sm:$0xff]  ;;  %v2368_v5 = vld [vmem:[#allocation29 + $0x4d8] sm:$0xff] }
 0x906   :  { %v6363_v15 = vmax.f32 %v2209_v9, 0.0  ;;  %v5077_v9 = vpack.c.bf16 %v2481_v63, %v2457_v62  ;;  %v5127_v62 = vpack.c.bf16 %v2342_v55, %v2318_v54  ;;  %v5159_v63 = vpack.c.bf16 %v2344_v57, %v2320_v56  ;;  %v2390_v4 = vld [vmem:[#allocation29 + $0x588] sm:$0xff]  ;;  %v2392_v6 = vld [vmem:[#allocation29 + $0x598] sm:$0xff] }
 0x907   :  { %v2560_v54 = vld [vmem:[#allocation29 + $0xad8] sm:$0xff] }
 0x908   :  { %2788 = vmatmul.mubr.f32.vlgmr.msra.gmra.mrb[18].mxu1 %v6363_v15  ;;  %2859 = vmatmul.mubr.f32.vlgmr.msra.gmra.mrb[20].mxu0 %v6363_v15  ;;  %v2584_v55 = vld [vmem:[#allocation29 + $0xb98] sm:$0xff] }
 0x909   :  { %5058 = vmatpush1.bf16.msra.mxu1 %v5057_v11  ;;  %5090 = vmatpush1.bf16.msra.mxu0 %v5089_v12  ;;  %v2505_v11 = vld [vmem:[#allocation29 + $0x920] sm:$0xff] }
 0x90a   :  { %5060 = vmatprep.subr.bf16.mxu1 %v5059_v16  ;;  %5092 = vmatprep.subr.bf16.mxu0 %v5091_v17  ;;  %v2529_v12 = vld [vmem:[#allocation29 + $0x9e0] sm:$0xff]  ;;  %v2507_v16 = vld [vmem:[#allocation29 + $0x930] sm:$0xff] }
 0x90b   :  { %2929 = vmatprep.mubr.f32.mxu1 %v5937_v2  ;;  %3000 = vmatprep.mubr.f32.mxu0 %v5937_v2  ;;  %v2531_v17 = vld [vmem:[#allocation29 + $0x9f0] sm:$0xff]  ;;  %v5081_v22 = vpack.c.bf16 %v2529_v12, %v2505_v11  ;;  %v5131_v11 = vpack.c.bf16 %v2390_v4, %v2366_v3  ;;  %v5163_v12 = vpack.c.bf16 %v2392_v6, %v2368_v5  ;;  %v2228_v3 = vld [vmem:[#allocation29 + $0x78] sm:$0xff] }
 0x90c   :  { %v5113_v23 = vpack.c.bf16 %v2531_v17, %v2507_v16  ;;  %v2414_v16 = vld [vmem:[#allocation29 + $0x648] sm:$0xff]  ;;  %v2252_v4 = vld [vmem:[#allocation29 + $0x138] sm:$0xff] }
 0x90d   :  { %5062 = vmatpush1.bf16.msra.mxu1 %v5061_v24  ;;  %5094 = vmatpush1.bf16.msra.mxu0 %v5093_v36  ;;  %v2553_v24 = vld [vmem:[#allocation29 + $0xaa0] sm:$0xff]  ;;  %v2438_v17 = vld [vmem:[#allocation29 + $0x708] sm:$0xff] }
 0x90e   :  { %5064 = vmatprep.subr.bf16.mxu1 %v5063_v27  ;;  %5096 = vmatprep.subr.bf16.mxu0 %v5095_v28  ;;  %v2577_v36 = vld [vmem:[#allocation29 + $0xb60] sm:$0xff]  ;;  %v2555_v27 = vld [vmem:[#allocation29 + $0xab0] sm:$0xff] }
 0x90f   :  { %v2579_v28 = vld [vmem:[#allocation29 + $0xb70] sm:$0xff]  ;;  %v5085_v33 = vpack.c.bf16 %v2577_v36, %v2553_v24  ;;  %v5135_v24 = vpack.c.bf16 %v2438_v17, %v2414_v16  ;;  %v5167_v36 = vpack.c.bf16 %v2440_v19, %v2416_v18  ;;  %v2276_v16 = vld [vmem:[#allocation29 + $0x1f8] sm:$0xff] }
 0x910   :  { %v5117_v34 = vpack.c.bf16 %v2579_v28, %v2555_v27  ;;  %v2462_v27 = vld [vmem:[#allocation29 + $0x7c8] sm:$0xff]  ;;  %v2300_v17 = vld [vmem:[#allocation29 + $0x2b8] sm:$0xff] }
 0x911   :  { %5066 = vmatpush1.bf16.msra.mxu1 %v5065_v35  ;;  %5098 = vmatpush1.bf16.msra.mxu0 %v5097_v37  ;;  %v2221_v35 = vld [vmem:[#allocation29 + $0x40] sm:$0xff]  ;;  %v2486_v28 = vld [vmem:[#allocation29 + $0x888] sm:$0xff] }
 0x912   :  { %5068 = vmatprep.subr.bf16.mxu1 %v5067_v40  ;;  %5100 = vmatprep.subr.bf16.mxu0 %v5099_v41  ;;  %v2245_v37 = vld [vmem:[#allocation29 + $0x100] sm:$0xff]  ;;  %v2223_v40 = vld [vmem:[#allocation29 + $0x50] sm:$0xff] }
 0x913   :  { %v2247_v41 = vld [vmem:[#allocation29 + $0x110] sm:$0xff]  ;;  %v5121_v46 = vpack.c.bf16 %v2245_v37, %v2221_v35  ;;  %v5139_v35 = vpack.c.bf16 %v2486_v28, %v2462_v27  ;;  %v5171_v37 = vpack.c.bf16 %v2488_v30, %v2464_v29  ;;  %v2324_v27 = vld [vmem:[#allocation29 + $0x378] sm:$0xff] }
 0x914   :  { %v5153_v47 = vpack.c.bf16 %v2247_v41, %v2223_v40  ;;  %v2510_v40 = vld [vmem:[#allocation29 + $0x948] sm:$0xff]  ;;  %v2348_v28 = vld [vmem:[#allocation29 + $0x438] sm:$0xff] }
 0x915   :  { %5070 = vmatpush1.bf16.msra.mxu1 %v5069_v48  ;;  %5102 = vmatpush1.bf16.msra.mxu0 %v5101_v49  ;;  %v2269_v48 = vld [vmem:[#allocation29 + $0x1c0] sm:$0xff]  ;;  %v2534_v41 = vld [vmem:[#allocation29 + $0xa08] sm:$0xff] }
 0x916   :  { %5072 = vmatprep.subr.bf16.mxu1 %v5071_v52  ;;  %5104 = vmatprep.subr.bf16.mxu0 %v5103_v53  ;;  %v2293_v49 = vld [vmem:[#allocation29 + $0x280] sm:$0xff]  ;;  %v2271_v52 = vld [vmem:[#allocation29 + $0x1d0] sm:$0xff] }
 0x917   :  { %v2295_v53 = vld [vmem:[#allocation29 + $0x290] sm:$0xff]  ;;  %v5125_v58 = vpack.c.bf16 %v2293_v49, %v2269_v48  ;;  %v5143_v48 = vpack.c.bf16 %v2534_v41, %v2510_v40  ;;  %v5175_v49 = vpack.c.bf16 %v2536_v43, %v2512_v42  ;;  %v2372_v40 = vld [vmem:[#allocation29 + $0x4f8] sm:$0xff] }
 0x918   :  { %v5157_v59 = vpack.c.bf16 %v2295_v53, %v2271_v52  ;;  %v2558_v52 = vld [vmem:[#allocation29 + $0xac8] sm:$0xff]  ;;  %v2396_v41 = vld [vmem:[#allocation29 + $0x5b8] sm:$0xff] }
 0x919   :  { %5074 = vmatpush1.bf16.msra.mxu1 %v5073_v60  ;;  %5106 = vmatpush1.bf16.msra.mxu0 %v5105_v61  ;;  %v2317_v60 = vld [vmem:[#allocation29 + $0x340] sm:$0xff]  ;;  %v2582_v53 = vld [vmem:[#allocation29 + $0xb88] sm:$0xff] }
 0x91a   :  { %5076 = vmatprep.subr.bf16.mxu1 %v5075_v0  ;;  %5108 = vmatprep.subr.bf16.mxu0 %v5107_v1  ;;  %v2341_v61 = vld [vmem:[#allocation29 + $0x400] sm:$0xff]  ;;  %v2319_v0 = vld [vmem:[#allocation29 + $0x350] sm:$0xff] }
 0x91b   :  { %v2343_v1 = vld [vmem:[#allocation29 + $0x410] sm:$0xff]  ;;  %v5129_v7 = vpack.c.bf16 %v2341_v61, %v2317_v60  ;;  %v5147_v60 = vpack.c.bf16 %v2582_v53, %v2558_v52  ;;  %v5179_v61 = vpack.c.bf16 %v2584_v55, %v2560_v54  ;;  %v2420_v52 = vld [vmem:[#allocation29 + $0x678] sm:$0xff] }
 0x91c   :  { %v5161_v8 = vpack.c.bf16 %v2343_v1, %v2319_v0  ;;  %v2226_v0 = vld [vmem:[#allocation29 + $0x68] sm:$0xff]  ;;  %v2444_v53 = vld [vmem:[#allocation29 + $0x738] sm:$0xff] }
 0x91d   :  { %5078 = vmatpush1.bf16.msra.mxu1 %v5077_v9  ;;  %5110 = vmatpush1.bf16.msra.mxu0 %v5109_v10  ;;  %v2365_v9 = vld [vmem:[#allocation29 + $0x4c0] sm:$0xff]  ;;  %v2250_v1 = vld [vmem:[#allocation29 + $0x128] sm:$0xff] }
 0x91e   :  { %5080 = vmatprep.subr.bf16.mxu1 %v5079_v13  ;;  %5112 = vmatprep.subr.bf16.mxu0 %v5111_v14  ;;  %v2389_v10 = vld [vmem:[#allocation29 + $0x580] sm:$0xff]  ;;  %v2367_v13 = vld [vmem:[#allocation29 + $0x4d0] sm:$0xff] }
 0x91f   :  { %v2391_v14 = vld [vmem:[#allocation29 + $0x590] sm:$0xff]  ;;  %v5133_v20 = vpack.c.bf16 %v2389_v10, %v2365_v9  ;;  %v5183_v9 = vpack.c.bf16 %v2250_v1, %v2226_v0  ;;  %v5215_v10 = vpack.c.bf16 %v2252_v4, %v2228_v3  ;;  %v2468_v0 = vld [vmem:[#allocation29 + $0x7f8] sm:$0xff] }
 0x920   :  { %v5165_v21 = vpack.c.bf16 %v2391_v14, %v2367_v13  ;;  %v2274_v13 = vld [vmem:[#allocation29 + $0x1e8] sm:$0xff]  ;;  %v2492_v1 = vld [vmem:[#allocation29 + $0x8b8] sm:$0xff] }
 0x921   :  { %5082 = vmatpush1.bf16.msra.mxu1 %v5081_v22  ;;  %5114 = vmatpush1.bf16.msra.mxu0 %v5113_v23  ;;  %v2413_v22 = vld [vmem:[#allocation29 + $0x640] sm:$0xff]  ;;  %v2298_v14 = vld [vmem:[#allocation29 + $0x2a8] sm:$0xff] }
 0x922   :  { %5084 = vmatprep.subr.bf16.mxu1 %v5083_v25  ;;  %5116 = vmatprep.subr.bf16.mxu0 %v5115_v26  ;;  %v2437_v23 = vld [vmem:[#allocation29 + $0x700] sm:$0xff]  ;;  %v2415_v25 = vld [vmem:[#allocation29 + $0x650] sm:$0xff] }
 0x923   :  { %v2439_v26 = vld [vmem:[#allocation29 + $0x710] sm:$0xff]  ;;  %v5137_v31 = vpack.c.bf16 %v2437_v23, %v2413_v22  ;;  %v5187_v22 = vpack.c.bf16 %v2298_v14, %v2274_v13  ;;  %v5219_v23 = vpack.c.bf16 %v2300_v17, %v2276_v16  ;;  %v2516_v13 = vld [vmem:[#allocation29 + $0x978] sm:$0xff] }
 0x924   :  { %v5169_v32 = vpack.c.bf16 %v2439_v26, %v2415_v25  ;;  %v2322_v25 = vld [vmem:[#allocation29 + $0x368] sm:$0xff]  ;;  %v2540_v14 = vld [vmem:[#allocation29 + $0xa38] sm:$0xff] }
 0x925   :  { %5086 = vmatpush1.bf16.msra.mxu1 %v5085_v33  ;;  %5118 = vmatpush1.bf16.msra.mxu0 %v5117_v34  ;;  %v2461_v33 = vld [vmem:[#allocation29 + $0x7c0] sm:$0xff]  ;;  %v2346_v26 = vld [vmem:[#allocation29 + $0x428] sm:$0xff] }
 0x926   :  { %5120 = vmatprep.subr.bf16.mxu1 %v5119_v38  ;;  %5152 = vmatprep.subr.bf16.mxu0 %v5151_v39  ;;  %v2485_v34 = vld [vmem:[#allocation29 + $0x880] sm:$0xff]  ;;  %v2463_v38 = vld [vmem:[#allocation29 + $0x7d0] sm:$0xff] }
 0x927   :  { %v2487_v39 = vld [vmem:[#allocation29 + $0x890] sm:$0xff]  ;;  %v5141_v44 = vpack.c.bf16 %v2485_v34, %v2461_v33  ;;  %v5191_v33 = vpack.c.bf16 %v2346_v26, %v2322_v25  ;;  %v5223_v34 = vpack.c.bf16 %v2348_v28, %v2324_v27  ;;  %v2564_v25 = vld [vmem:[#allocation29 + $0xaf8] sm:$0xff] }
 0x928   :  { %2930 = vmatmul.mubr.f32.vlgmr.msra.gmra.mrb[20].mxu1 %v6363_v15  ;;  %3001 = vmatmul.mubr.f32.vlgmr.msra.gmra.mrb[22].mxu0 %v6363_v15  ;;  %v5173_v45 = vpack.c.bf16 %v2487_v39, %v2463_v38  ;;  %v2370_v38 = vld [vmem:[#allocation29 + $0x4e8] sm:$0xff]  ;;  %v2588_v26 = vld [vmem:[#allocation29 + $0xbb8] sm:$0xff] }
 0x929   :  { %5122 = vmatpush1.bf16.msra.mxu1 %v5121_v46  ;;  %5154 = vmatpush1.bf16.msra.mxu0 %v5153_v47  ;;  %v2509_v46 = vld [vmem:[#allocation29 + $0x940] sm:$0xff]  ;;  %v2394_v39 = vld [vmem:[#allocation29 + $0x5a8] sm:$0xff] }
 0x92a   :  { %5124 = vmatprep.subr.bf16.mxu1 %v5123_v50  ;;  %5156 = vmatprep.subr.bf16.mxu0 %v5155_v51  ;;  %v2533_v47 = vld [vmem:[#allocation29 + $0xa00] sm:$0xff]  ;;  %v2511_v50 = vld [vmem:[#allocation29 + $0x950] sm:$0xff] }
 0x92b   :  { %3071 = vmatprep.mubr.f32.mxu1 %v5937_v2  ;;  %3142 = vmatprep.mubr.f32.mxu0 %v5937_v2  ;;  %v2535_v51 = vld [vmem:[#allocation29 + $0xa10] sm:$0xff]  ;;  %v5145_v56 = vpack.c.bf16 %v2533_v47, %v2509_v46  ;;  %v5195_v46 = vpack.c.bf16 %v2394_v39, %v2370_v38  ;;  %v5227_v47 = vpack.c.bf16 %v2396_v41, %v2372_v40  ;;  %v2232_v38 = vld [vmem:[#allocation29 + $0x98] sm:$0xff] }
 0x92c   :  { %v5177_v57 = vpack.c.bf16 %v2535_v51, %v2511_v50  ;;  %v2418_v50 = vld [vmem:[#allocation29 + $0x668] sm:$0xff]  ;;  %v2256_v39 = vld [vmem:[#allocation29 + $0x158] sm:$0xff] }
 0x92d   :  { %5126 = vmatpush1.bf16.msra.mxu1 %v5125_v58  ;;  %5158 = vmatpush1.bf16.msra.mxu0 %v5157_v59  ;;  %v2557_v58 = vld [vmem:[#allocation29 + $0xac0] sm:$0xff]  ;;  %v2442_v51 = vld [vmem:[#allocation29 + $0x728] sm:$0xff] }
 0x92e   :  { %5128 = vmatprep.subr.bf16.mxu1 %v5127_v62  ;;  %5160 = vmatprep.subr.bf16.mxu0 %v5159_v63  ;;  %v2581_v59 = vld [vmem:[#allocation29 + $0xb80] sm:$0xff]  ;;  %v2559_v62 = vld [vmem:[#allocation29 + $0xad0] sm:$0xff] }
 0x92f   :  { %v2583_v63 = vld [vmem:[#allocation29 + $0xb90] sm:$0xff]  ;;  %v5149_v5 = vpack.c.bf16 %v2581_v59, %v2557_v58  ;;  %v5199_v58 = vpack.c.bf16 %v2442_v51, %v2418_v50  ;;  %v5231_v59 = vpack.c.bf16 %v2444_v53, %v2420_v52  ;;  %v2280_v50 = vld [vmem:[#allocation29 + $0x218] sm:$0xff] }
 0x930   :  { %v5181_v6 = vpack.c.bf16 %v2583_v63, %v2559_v62  ;;  %v2466_v62 = vld [vmem:[#allocation29 + $0x7e8] sm:$0xff]  ;;  %v2304_v51 = vld [vmem:[#allocation29 + $0x2d8] sm:$0xff] }
 0x931   :  { %5130 = vmatpush1.bf16.msra.mxu1 %v5129_v7  ;;  %5162 = vmatpush1.bf16.msra.mxu0 %v5161_v8  ;;  %v2225_v7 = vld [vmem:[#allocation29 + $0x60] sm:$0xff]  ;;  %v2490_v63 = vld [vmem:[#allocation29 + $0x8a8] sm:$0xff] }
 0x932   :  { %5132 = vmatprep.subr.bf16.mxu1 %v5131_v11  ;;  %5164 = vmatprep.subr.bf16.mxu0 %v5163_v12  ;;  %v2249_v8 = vld [vmem:[#allocation29 + $0x120] sm:$0xff]  ;;  %v2227_v11 = vld [vmem:[#allocation29 + $0x70] sm:$0xff] }
 0x933   :  { %v2251_v12 = vld [vmem:[#allocation29 + $0x130] sm:$0xff]  ;;  %v5185_v18 = vpack.c.bf16 %v2249_v8, %v2225_v7  ;;  %v5203_v7 = vpack.c.bf16 %v2490_v63, %v2466_v62  ;;  %v5235_v8 = vpack.c.bf16 %v2492_v1, %v2468_v0  ;;  %v2328_v62 = vld [vmem:[#allocation29 + $0x398] sm:$0xff] }
 0x934   :  { %v5217_v19 = vpack.c.bf16 %v2251_v12, %v2227_v11  ;;  %v2514_v11 = vld [vmem:[#allocation29 + $0x968] sm:$0xff]  ;;  %v2352_v63 = vld [vmem:[#allocation29 + $0x458] sm:$0xff] }
 0x935   :  { %5134 = vmatpush1.bf16.msra.mxu1 %v5133_v20  ;;  %5166 = vmatpush1.bf16.msra.mxu0 %v5165_v21  ;;  %v2273_v20 = vld [vmem:[#allocation29 + $0x1e0] sm:$0xff]  ;;  %v2538_v12 = vld [vmem:[#allocation29 + $0xa28] sm:$0xff] }
 0x936   :  { %5136 = vmatprep.subr.bf16.mxu1 %v5135_v24  ;;  %5168 = vmatprep.subr.bf16.mxu0 %v5167_v36  ;;  %v2297_v21 = vld [vmem:[#allocation29 + $0x2a0] sm:$0xff]  ;;  %v2275_v24 = vld [vmem:[#allocation29 + $0x1f0] sm:$0xff] }
 0x937   :  { %v2299_v36 = vld [vmem:[#allocation29 + $0x2b0] sm:$0xff]  ;;  %v5189_v29 = vpack.c.bf16 %v2297_v21, %v2273_v20  ;;  %v5207_v20 = vpack.c.bf16 %v2538_v12, %v2514_v11  ;;  %v5239_v21 = vpack.c.bf16 %v2540_v14, %v2516_v13  ;;  %v2376_v11 = vld [vmem:[#allocation29 + $0x518] sm:$0xff] }
 0x938   :  { %v5221_v30 = vpack.c.bf16 %v2299_v36, %v2275_v24  ;;  %v2562_v24 = vld [vmem:[#allocation29 + $0xae8] sm:$0xff]  ;;  %v2400_v12 = vld [vmem:[#allocation29 + $0x5d8] sm:$0xff] }
 0x939   :  { %5138 = vmatpush1.bf16.msra.mxu1 %v5137_v31  ;;  %5170 = vmatpush1.bf16.msra.mxu0 %v5169_v32  ;;  %v2321_v31 = vld [vmem:[#allocation29 + $0x360] sm:$0xff]  ;;  %v2586_v36 = vld [vmem:[#allocation29 + $0xba8] sm:$0xff] }
 0x93a   :  { %5140 = vmatprep.subr.bf16.mxu1 %v5139_v35  ;;  %5172 = vmatprep.subr.bf16.mxu0 %v5171_v37  ;;  %v2345_v32 = vld [vmem:[#allocation29 + $0x420] sm:$0xff]  ;;  %v2323_v35 = vld [vmem:[#allocation29 + $0x370] sm:$0xff] }
 0x93b   :  { %v2347_v37 = vld [vmem:[#allocation29 + $0x430] sm:$0xff]  ;;  %v5193_v42 = vpack.c.bf16 %v2345_v32, %v2321_v31  ;;  %v5211_v31 = vpack.c.bf16 %v2586_v36, %v2562_v24  ;;  %v5243_v32 = vpack.c.bf16 %v2588_v26, %v2564_v25  ;;  %v2424_v24 = vld [vmem:[#allocation29 + $0x698] sm:$0xff] }
 0x93c   :  { %v5225_v43 = vpack.c.bf16 %v2347_v37, %v2323_v35  ;;  %v2230_v35 = vld [vmem:[#allocation29 + $0x88] sm:$0xff]  ;;  %v2448_v36 = vld [vmem:[#allocation29 + $0x758] sm:$0xff] }
 0x93d   :  { %5142 = vmatpush1.bf16.msra.mxu1 %v5141_v44  ;;  %5174 = vmatpush1.bf16.msra.mxu0 %v5173_v45  ;;  %v2369_v44 = vld [vmem:[#allocation29 + $0x4e0] sm:$0xff]  ;;  %v2254_v37 = vld [vmem:[#allocation29 + $0x148] sm:$0xff] }
 0x93e   :  { %5144 = vmatprep.subr.bf16.mxu1 %v5143_v48  ;;  %5176 = vmatprep.subr.bf16.mxu0 %v5175_v49  ;;  %v2393_v45 = vld [vmem:[#allocation29 + $0x5a0] sm:$0xff]  ;;  %v2371_v48 = vld [vmem:[#allocation29 + $0x4f0] sm:$0xff] }
 0x93f   :  { %v2395_v49 = vld [vmem:[#allocation29 + $0x5b0] sm:$0xff]  ;;  %v5197_v54 = vpack.c.bf16 %v2393_v45, %v2369_v44  ;;  %v5247_v44 = vpack.c.bf16 %v2254_v37, %v2230_v35  ;;  %v5279_v45 = vpack.c.bf16 %v2256_v39, %v2232_v38  ;;  %v2472_v35 = vld [vmem:[#allocation29 + $0x818] sm:$0xff] }
 0x940   :  { %v5229_v55 = vpack.c.bf16 %v2395_v49, %v2371_v48  ;;  %v2278_v48 = vld [vmem:[#allocation29 + $0x208] sm:$0xff]  ;;  %v2496_v37 = vld [vmem:[#allocation29 + $0x8d8] sm:$0xff] }
 0x941   :  { %5146 = vmatpush1.bf16.msra.mxu1 %v5145_v56  ;;  %5178 = vmatpush1.bf16.msra.mxu0 %v5177_v57  ;;  %v2417_v56 = vld [vmem:[#allocation29 + $0x660] sm:$0xff]  ;;  %v2302_v49 = vld [vmem:[#allocation29 + $0x2c8] sm:$0xff] }
 0x942   :  { %5148 = vmatprep.subr.bf16.mxu1 %v5147_v60  ;;  %5180 = vmatprep.subr.bf16.mxu0 %v5179_v61  ;;  %v2441_v57 = vld [vmem:[#allocation29 + $0x720] sm:$0xff]  ;;  %v2419_v60 = vld [vmem:[#allocation29 + $0x670] sm:$0xff] }
 0x943   :  { %v2443_v61 = vld [vmem:[#allocation29 + $0x730] sm:$0xff]  ;;  %v5201_v3 = vpack.c.bf16 %v2441_v57, %v2417_v56  ;;  %v5251_v56 = vpack.c.bf16 %v2302_v49, %v2278_v48  ;;  %v5283_v57 = vpack.c.bf16 %v2304_v51, %v2280_v50  ;;  %v2520_v48 = vld [vmem:[#allocation29 + $0x998] sm:$0xff] }
 0x944   :  { %v5233_v4 = vpack.c.bf16 %v2443_v61, %v2419_v60  ;;  %v2326_v60 = vld [vmem:[#allocation29 + $0x388] sm:$0xff]  ;;  %v2544_v49 = vld [vmem:[#allocation29 + $0xa58] sm:$0xff] }
 0x945   :  { %5150 = vmatpush1.bf16.msra.mxu1 %v5149_v5  ;;  %5182 = vmatpush1.bf16.msra.mxu0 %v5181_v6  ;;  %v2465_v5 = vld [vmem:[#allocation29 + $0x7e0] sm:$0xff]  ;;  %v2350_v61 = vld [vmem:[#allocation29 + $0x448] sm:$0xff] }
 0x946   :  { %5184 = vmatprep.subr.bf16.mxu1 %v5183_v9  ;;  %5216 = vmatprep.subr.bf16.mxu0 %v5215_v10  ;;  %v2489_v6 = vld [vmem:[#allocation29 + $0x8a0] sm:$0xff]  ;;  %v2467_v9 = vld [vmem:[#allocation29 + $0x7f0] sm:$0xff] }
 0x947   :  { %v2491_v10 = vld [vmem:[#allocation29 + $0x8b0] sm:$0xff]  ;;  %v5205_v16 = vpack.c.bf16 %v2489_v6, %v2465_v5  ;;  %v5255_v5 = vpack.c.bf16 %v2350_v61, %v2326_v60  ;;  %v5287_v6 = vpack.c.bf16 %v2352_v63, %v2328_v62  ;;  %v2568_v60 = vld [vmem:[#allocation29 + $0xb18] sm:$0xff] }
 0x948   :  { %3072 = vmatmul.mubr.f32.vlgmr.msra.gmra.mrb[22].mxu1 %v6363_v15  ;;  %3143 = vmatmul.mubr.f32.vlgmr.msra.gmra.mrb[24].mxu0 %v6363_v15  ;;  %v5237_v17 = vpack.c.bf16 %v2491_v10, %v2467_v9  ;;  %v2374_v9 = vld [vmem:[#allocation29 + $0x508] sm:$0xff]  ;;  %v2592_v61 = vld [vmem:[#allocation29 + $0xbd8] sm:$0xff] }
 0x949   :  { %5186 = vmatpush1.bf16.msra.mxu1 %v5185_v18  ;;  %5218 = vmatpush1.bf16.msra.mxu0 %v5217_v19  ;;  %v2513_v18 = vld [vmem:[#allocation29 + $0x960] sm:$0xff]  ;;  %v2398_v10 = vld [vmem:[#allocation29 + $0x5c8] sm:$0xff] }
 0x94a   :  { %5188 = vmatprep.subr.bf16.mxu1 %v5187_v22  ;;  %5220 = vmatprep.subr.bf16.mxu0 %v5219_v23  ;;  %v2537_v19 = vld [vmem:[#allocation29 + $0xa20] sm:$0xff]  ;;  %v2515_v22 = vld [vmem:[#allocation29 + $0x970] sm:$0xff] }
 0x94b   :  { %3213 = vmatprep.mubr.f32.mxu1 %v5937_v2  ;;  %3284 = vmatprep.mubr.f32.mxu0 %v5937_v2  ;;  %v2539_v23 = vld [vmem:[#allocation29 + $0xa30] sm:$0xff]  ;;  %v5209_v27 = vpack.c.bf16 %v2537_v19, %v2513_v18  ;;  %v5259_v18 = vpack.c.bf16 %v2398_v10, %v2374_v9  ;;  %v5291_v19 = vpack.c.bf16 %v2400_v12, %v2376_v11  ;;  %v2236_v9 = vld [vmem:[#allocation29 + $0xb8] sm:$0xff] }
 0x94c   :  { %v5241_v28 = vpack.c.bf16 %v2539_v23, %v2515_v22  ;;  %v2422_v22 = vld [vmem:[#allocation29 + $0x688] sm:$0xff]  ;;  %v2260_v10 = vld [vmem:[#allocation29 + $0x178] sm:$0xff] }
 0x94d   :  { %5190 = vmatpush1.bf16.msra.mxu1 %v5189_v29  ;;  %5222 = vmatpush1.bf16.msra.mxu0 %v5221_v30  ;;  %v2561_v29 = vld [vmem:[#allocation29 + $0xae0] sm:$0xff]  ;;  %v2446_v23 = vld [vmem:[#allocation29 + $0x748] sm:$0xff] }
 0x94e   :  { %5192 = vmatprep.subr.bf16.mxu1 %v5191_v33  ;;  %5224 = vmatprep.subr.bf16.mxu0 %v5223_v34  ;;  %v2585_v30 = vld [vmem:[#allocation29 + $0xba0] sm:$0xff]  ;;  %v2563_v33 = vld [vmem:[#allocation29 + $0xaf0] sm:$0xff] }
 0x94f   :  { %v2587_v34 = vld [vmem:[#allocation29 + $0xbb0] sm:$0xff]  ;;  %v5213_v40 = vpack.c.bf16 %v2585_v30, %v2561_v29  ;;  %v5263_v29 = vpack.c.bf16 %v2446_v23, %v2422_v22  ;;  %v5295_v30 = vpack.c.bf16 %v2448_v36, %v2424_v24  ;;  %v2284_v22 = vld [vmem:[#allocation29 + $0x238] sm:$0xff] }
 0x950   :  { %v5245_v41 = vpack.c.bf16 %v2587_v34, %v2563_v33  ;;  %v2470_v33 = vld [vmem:[#allocation29 + $0x808] sm:$0xff]  ;;  %v2308_v23 = vld [vmem:[#allocation29 + $0x2f8] sm:$0xff] }
 0x951   :  { %5194 = vmatpush1.bf16.msra.mxu1 %v5193_v42  ;;  %5226 = vmatpush1.bf16.msra.mxu0 %v5225_v43  ;;  %v2229_v42 = vld [vmem:[#allocation29 + $0x80] sm:$0xff]  ;;  %v2494_v34 = vld [vmem:[#allocation29 + $0x8c8] sm:$0xff] }
 0x952   :  { %5196 = vmatprep.subr.bf16.mxu1 %v5195_v46  ;;  %5228 = vmatprep.subr.bf16.mxu0 %v5227_v47  ;;  %v2253_v43 = vld [vmem:[#allocation29 + $0x140] sm:$0xff]  ;;  %v2231_v46 = vld [vmem:[#allocation29 + $0x90] sm:$0xff] }
 0x953   :  { %v2255_v47 = vld [vmem:[#allocation29 + $0x150] sm:$0xff]  ;;  %v5249_v52 = vpack.c.bf16 %v2253_v43, %v2229_v42  ;;  %v5267_v42 = vpack.c.bf16 %v2494_v34, %v2470_v33  ;;  %v5299_v43 = vpack.c.bf16 %v2496_v37, %v2472_v35  ;;  %v2332_v33 = vld [vmem:[#allocation29 + $0x3b8] sm:$0xff] }
 0x954   :  { %v5281_v53 = vpack.c.bf16 %v2255_v47, %v2231_v46  ;;  %v2518_v46 = vld [vmem:[#allocation29 + $0x988] sm:$0xff]  ;;  %v2356_v34 = vld [vmem:[#allocation29 + $0x478] sm:$0xff] }
 0x955   :  { %5198 = vmatpush1.bf16.msra.mxu1 %v5197_v54  ;;  %5230 = vmatpush1.bf16.msra.mxu0 %v5229_v55  ;;  %v2277_v54 = vld [vmem:[#allocation29 + $0x200] sm:$0xff]  ;;  %v2542_v47 = vld [vmem:[#allocation29 + $0xa48] sm:$0xff] }
 0x956   :  { %5200 = vmatprep.subr.bf16.mxu1 %v5199_v58  ;;  %5232 = vmatprep.subr.bf16.mxu0 %v5231_v59  ;;  %v2301_v55 = vld [vmem:[#allocation29 + $0x2c0] sm:$0xff]  ;;  %v2279_v58 = vld [vmem:[#allocation29 + $0x210] sm:$0xff] }
 0x957   :  { %v2303_v59 = vld [vmem:[#allocation29 + $0x2d0] sm:$0xff]  ;;  %v5253_v0 = vpack.c.bf16 %v2301_v55, %v2277_v54  ;;  %v5271_v54 = vpack.c.bf16 %v2542_v47, %v2518_v46  ;;  %v5303_v55 = vpack.c.bf16 %v2544_v49, %v2520_v48  ;;  %v2380_v46 = vld [vmem:[#allocation29 + $0x538] sm:$0xff] }
 0x958   :  { %v5285_v1 = vpack.c.bf16 %v2303_v59, %v2279_v58  ;;  %v2566_v58 = vld [vmem:[#allocation29 + $0xb08] sm:$0xff]  ;;  %v2404_v47 = vld [vmem:[#allocation29 + $0x5f8] sm:$0xff] }
 0x959   :  { %5202 = vmatpush1.bf16.msra.mxu1 %v5201_v3  ;;  %5234 = vmatpush1.bf16.msra.mxu0 %v5233_v4  ;;  %v2325_v3 = vld [vmem:[#allocation29 + $0x380] sm:$0xff]  ;;  %v2590_v59 = vld [vmem:[#allocation29 + $0xbc8] sm:$0xff] }
 0x95a   :  { %5204 = vmatprep.subr.bf16.mxu1 %v5203_v7  ;;  %5236 = vmatprep.subr.bf16.mxu0 %v5235_v8  ;;  %v2349_v4 = vld [vmem:[#allocation29 + $0x440] sm:$0xff]  ;;  %v2327_v7 = vld [vmem:[#allocation29 + $0x390] sm:$0xff] }
 0x95b   :  { %v2351_v8 = vld [vmem:[#allocation29 + $0x450] sm:$0xff]  ;;  %v5257_v13 = vpack.c.bf16 %v2349_v4, %v2325_v3  ;;  %v5275_v3 = vpack.c.bf16 %v2590_v59, %v2566_v58  ;;  %v5307_v4 = vpack.c.bf16 %v2592_v61, %v2568_v60  ;;  %v2428_v58 = vld [vmem:[#allocation29 + $0x6b8] sm:$0xff]  ;;  %v2425_v61 = vld [vmem:[#allocation29 + $0x6a0] sm:$0xff] }
 0x95c   :  { %v5289_v14 = vpack.c.bf16 %v2351_v8, %v2327_v7  ;;  %v2234_v7 = vld [vmem:[#allocation29 + $0xa8] sm:$0xff]  ;;  %v2452_v59 = vld [vmem:[#allocation29 + $0x778] sm:$0xff] }
 0x95d   :  { %5206 = vmatpush1.bf16.msra.mxu1 %v5205_v16  ;;  %5238 = vmatpush1.bf16.msra.mxu0 %v5237_v17  ;;  %v2373_v16 = vld [vmem:[#allocation29 + $0x500] sm:$0xff]  ;;  %v2258_v8 = vld [vmem:[#allocation29 + $0x168] sm:$0xff] }
 0x95e   :  { %5208 = vmatprep.subr.bf16.mxu1 %v5207_v20  ;;  %5240 = vmatprep.subr.bf16.mxu0 %v5239_v21  ;;  %v2397_v17 = vld [vmem:[#allocation29 + $0x5c0] sm:$0xff]  ;;  %v2375_v20 = vld [vmem:[#allocation29 + $0x510] sm:$0xff] }
 0x95f   :  { %v2399_v21 = vld [vmem:[#allocation29 + $0x5d0] sm:$0xff]  ;;  %v5261_v25 = vpack.c.bf16 %v2397_v17, %v2373_v16  ;;  %v5311_v16 = vpack.c.bf16 %v2258_v8, %v2234_v7  ;;  %v5343_v17 = vpack.c.bf16 %v2260_v10, %v2236_v9  ;;  %v2500_v7 = vld [vmem:[#allocation29 + $0x8f8] sm:$0xff]  ;;  %v2473_v10 = vld [vmem:[#allocation29 + $0x820] sm:$0xff] }
 0x960   :  { %v5293_v26 = vpack.c.bf16 %v2399_v21, %v2375_v20  ;;  %v2282_v20 = vld [vmem:[#allocation29 + $0x228] sm:$0xff] }
 0x961   :  { %5210 = vmatpush1.bf16.msra.mxu1 %v5209_v27  ;;  %5242 = vmatpush1.bf16.msra.mxu0 %v5241_v28  ;;  %v2421_v27 = vld [vmem:[#allocation29 + $0x680] sm:$0xff]  ;;  %v2306_v21 = vld [vmem:[#allocation29 + $0x2e8] sm:$0xff] }
 0x962   :  { %5212 = vmatprep.subr.bf16.mxu1 %v5211_v31  ;;  %5244 = vmatprep.subr.bf16.mxu0 %v5243_v32  ;;  %v2445_v28 = vld [vmem:[#allocation29 + $0x740] sm:$0xff]  ;;  %v2423_v31 = vld [vmem:[#allocation29 + $0x690] sm:$0xff] }
 0x963   :  { %v2447_v32 = vld [vmem:[#allocation29 + $0x750] sm:$0xff]  ;;  %v5265_v38 = vpack.c.bf16 %v2445_v28, %v2421_v27  ;;  %v5315_v27 = vpack.c.bf16 %v2306_v21, %v2282_v20  ;;  %v5347_v28 = vpack.c.bf16 %v2308_v23, %v2284_v22  ;;  %v2548_v20 = vld [vmem:[#allocation29 + $0xa78] sm:$0xff]  ;;  %v2521_v23 = vld [vmem:[#allocation29 + $0x9a0] sm:$0xff] }
 0x964   :  { %v5297_v39 = vpack.c.bf16 %v2447_v32, %v2423_v31  ;;  %v2330_v31 = vld [vmem:[#allocation29 + $0x3a8] sm:$0xff] }
 0x965   :  { %5214 = vmatpush1.bf16.msra.mxu1 %v5213_v40  ;;  %5246 = vmatpush1.bf16.msra.mxu0 %v5245_v41  ;;  %v2469_v40 = vld [vmem:[#allocation29 + $0x800] sm:$0xff]  ;;  %v2354_v32 = vld [vmem:[#allocation29 + $0x468] sm:$0xff] }
 0x966   :  { %5248 = vmatprep.subr.bf16.mxu1 %v5247_v44  ;;  %5280 = vmatprep.subr.bf16.mxu0 %v5279_v45  ;;  %v2493_v41 = vld [vmem:[#allocation29 + $0x8c0] sm:$0xff]  ;;  %v2471_v44 = vld [vmem:[#allocation29 + $0x810] sm:$0xff] }
 0x967   :  { %v2495_v45 = vld [vmem:[#allocation29 + $0x8d0] sm:$0xff]  ;;  %v5269_v50 = vpack.c.bf16 %v2493_v41, %v2469_v40  ;;  %v5319_v40 = vpack.c.bf16 %v2354_v32, %v2330_v31  ;;  %v5351_v41 = vpack.c.bf16 %v2356_v34, %v2332_v33  ;;  %v2596_v31 = vld [vmem:[#allocation29 + $0xbf8] sm:$0xff]  ;;  %v2569_v34 = vld [vmem:[#allocation29 + $0xb20] sm:$0xff] }
 0x968   :  { %3214 = vmatmul.mubr.f32.vlgmr.msra.gmra.mrb[24].mxu1 %v6363_v15  ;;  %3285 = vmatmul.mubr.f32.vlgmr.msra.gmra.mrb[26].mxu0 %v6363_v15  ;;  %v5301_v51 = vpack.c.bf16 %v2495_v45, %v2471_v44  ;;  %v2378_v44 = vld [vmem:[#allocation29 + $0x528] sm:$0xff] }
 0x969   :  { %5250 = vmatpush1.bf16.msra.mxu1 %v5249_v52  ;;  %5282 = vmatpush1.bf16.msra.mxu0 %v5281_v53  ;;  %v2517_v52 = vld [vmem:[#allocation29 + $0x980] sm:$0xff]  ;;  %v2402_v45 = vld [vmem:[#allocation29 + $0x5e8] sm:$0xff] }
 0x96a   :  { %5252 = vmatprep.subr.bf16.mxu1 %v5251_v56  ;;  %5284 = vmatprep.subr.bf16.mxu0 %v5283_v57  ;;  %v2541_v53 = vld [vmem:[#allocation29 + $0xa40] sm:$0xff]  ;;  %v2519_v56 = vld [vmem:[#allocation29 + $0x990] sm:$0xff] }
 0x96b   :  { %3355 = vmatprep.mubr.f32.mxu1 %v5937_v2  ;;  %3426 = vmatprep.mubr.f32.mxu0 %v5937_v2  ;;  %v2543_v57 = vld [vmem:[#allocation29 + $0xa50] sm:$0xff]  ;;  %v5273_v62 = vpack.c.bf16 %v2541_v53, %v2517_v52  ;;  %v5323_v52 = vpack.c.bf16 %v2402_v45, %v2378_v44  ;;  %v5355_v53 = vpack.c.bf16 %v2404_v47, %v2380_v46  ;;  %v2597_v47 = vld [vmem:[#allocation31] sm:$0xff] }
 0x96c   :  { %v5305_v63 = vpack.c.bf16 %v2543_v57, %v2519_v56  ;;  %v2426_v56 = vld [vmem:[#allocation29 + $0x6a8] sm:$0xff] }
 0x96d   :  { %5254 = vmatpush1.bf16.msra.mxu1 %v5253_v0  ;;  %5286 = vmatpush1.bf16.msra.mxu0 %v5285_v1  ;;  %v2565_v0 = vld [vmem:[#allocation29 + $0xb00] sm:$0xff]  ;;  %v2450_v57 = vld [vmem:[#allocation29 + $0x768] sm:$0xff] }
 0x96e   :  { %5256 = vmatprep.subr.bf16.mxu1 %v5255_v5  ;;  %5288 = vmatprep.subr.bf16.mxu0 %v5287_v6  ;;  %v2589_v1 = vld [vmem:[#allocation29 + $0xbc0] sm:$0xff]  ;;  %v2567_v5 = vld [vmem:[#allocation29 + $0xb10] sm:$0xff] }
 0x96f   :  { %v2591_v6 = vld [vmem:[#allocation29 + $0xbd0] sm:$0xff]  ;;  %v5277_v11 = vpack.c.bf16 %v2589_v1, %v2565_v0  ;;  %v5359_v0 = vpack.c.bf16 %v2452_v59, %v2428_v58 }
 0x970   :  { %v5309_v12 = vpack.c.bf16 %v2591_v6, %v2567_v5  ;;  %v2427_v1 = vld [vmem:[#allocation29 + $0x6b0] sm:$0xff]  ;;  %v2498_v5 = vld [vmem:[#allocation29 + $0x8e8] sm:$0xff]  ;;  %v2476_v6 = vld [vmem:[#allocation29 + $0x838] sm:$0xff] }
 0x971   :  { %5258 = vmatpush1.bf16.msra.mxu1 %v5257_v13  ;;  %5290 = vmatpush1.bf16.msra.mxu0 %v5289_v14  ;;  %v2233_v13 = vld [vmem:[#allocation29 + $0xa0] sm:$0xff] }
 0x972   :  { %5260 = vmatprep.subr.bf16.mxu1 %v5259_v18  ;;  %5292 = vmatprep.subr.bf16.mxu0 %v5291_v19  ;;  %v2257_v14 = vld [vmem:[#allocation29 + $0x160] sm:$0xff]  ;;  %v2235_v18 = vld [vmem:[#allocation29 + $0xb0] sm:$0xff] }
 0x973   :  { %v2259_v19 = vld [vmem:[#allocation29 + $0x170] sm:$0xff]  ;;  %v5313_v24 = vpack.c.bf16 %v2257_v14, %v2233_v13  ;;  %v5363_v13 = vpack.c.bf16 %v2500_v7, %v2476_v6 }
 0x974   :  { %v5345_v36 = vpack.c.bf16 %v2259_v19, %v2235_v18  ;;  %v2475_v14 = vld [vmem:[#allocation29 + $0x830] sm:$0xff]  ;;  %v2546_v18 = vld [vmem:[#allocation29 + $0xa68] sm:$0xff]  ;;  %v2524_v19 = vld [vmem:[#allocation29 + $0x9b8] sm:$0xff] }
 0x975   :  { %5262 = vmatpush1.bf16.msra.mxu1 %v5261_v25  ;;  %5294 = vmatpush1.bf16.msra.mxu0 %v5293_v26  ;;  %v2281_v25 = vld [vmem:[#allocation29 + $0x220] sm:$0xff] }
 0x976   :  { %5264 = vmatprep.subr.bf16.mxu1 %v5263_v29  ;;  %5296 = vmatprep.subr.bf16.mxu0 %v5295_v30  ;;  %v2305_v26 = vld [vmem:[#allocation29 + $0x2e0] sm:$0xff]  ;;  %v2283_v29 = vld [vmem:[#allocation29 + $0x230] sm:$0xff] }
 0x977   :  { %v2307_v30 = vld [vmem:[#allocation29 + $0x2f0] sm:$0xff]  ;;  %v5317_v35 = vpack.c.bf16 %v2305_v26, %v2281_v25  ;;  %v5367_v25 = vpack.c.bf16 %v2548_v20, %v2524_v19 }
 0x978   :  { %v5349_v37 = vpack.c.bf16 %v2307_v30, %v2283_v29  ;;  %v2523_v26 = vld [vmem:[#allocation29 + $0x9b0] sm:$0xff]  ;;  %v2594_v29 = vld [vmem:[#allocation29 + $0xbe8] sm:$0xff]  ;;  %v2572_v30 = vld [vmem:[#allocation29 + $0xb38] sm:$0xff] }
 0x979   :  { %5266 = vmatpush1.bf16.msra.mxu1 %v5265_v38  ;;  %5298 = vmatpush1.bf16.msra.mxu0 %v5297_v39  ;;  %v2329_v38 = vld [vmem:[#allocation29 + $0x3a0] sm:$0xff] }
 0x97a   :  { %5268 = vmatprep.subr.bf16.mxu1 %v5267_v42  ;;  %5300 = vmatprep.subr.bf16.mxu0 %v5299_v43  ;;  %v2353_v39 = vld [vmem:[#allocation29 + $0x460] sm:$0xff]  ;;  %v2331_v42 = vld [vmem:[#allocation29 + $0x3b0] sm:$0xff] }
 0x97b   :  { %v2355_v43 = vld [vmem:[#allocation29 + $0x470] sm:$0xff]  ;;  %v5321_v48 = vpack.c.bf16 %v2353_v39, %v2329_v38  ;;  %v2593_v38 = vld [vmem:[#allocation29 + $0xbe0] sm:$0xff] }
 0x97c   :  { %v5353_v49 = vpack.c.bf16 %v2355_v43, %v2331_v42  ;;  %v2571_v39 = vld [vmem:[#allocation29 + $0xb30] sm:$0xff]  ;;  %v2603_v43 = vlaneseq }
 0x97d   :  { %5270 = vmatpush1.bf16.msra.mxu1 %v5269_v50  ;;  %5302 = vmatpush1.bf16.msra.mxu0 %v5301_v51  ;;  %v2377_v50 = vld [vmem:[#allocation29 + $0x520] sm:$0xff] }
 0x97e   :  { %5272 = vmatprep.subr.bf16.mxu1 %v5271_v54  ;;  %5304 = vmatprep.subr.bf16.mxu0 %v5303_v55  ;;  %v2401_v51 = vld [vmem:[#allocation29 + $0x5e0] sm:$0xff]  ;;  %v2379_v54 = vld [vmem:[#allocation29 + $0x530] sm:$0xff]  ;;  %v2604_v44 = vshrl.u32 %v2603_v43, 7 }
 0x97f   :  { %v2403_v55 = vld [vmem:[#allocation29 + $0x5f0] sm:$0xff]  ;;  %v5325_v60 = vpack.c.bf16 %v2401_v51, %v2377_v50 }
 0x980   :  { %v6387_v45 = vsub.s32 0, %v2604_v44  ;;  %v6389_v46 = vsub.s32 2, %v2604_v44 }
 0x981   :  { %5274 = vmatpush1.bf16.msra.mxu1 %v5273_v62  ;;  %5306 = vmatpush1.bf16.msra.mxu0 %v5305_v63  ;;  %v2449_v62 = vld [vmem:[#allocation29 + $0x760] sm:$0xff]  ;;  %v5327_v63 = vpack.c.bf16 %v2450_v57, %v2426_v56 }
 0x982   :  { %5276 = vmatprep.subr.bf16.mxu1 %v5275_v3  ;;  %5308 = vmatprep.subr.bf16.mxu0 %v5307_v4  ;;  %v2451_v3 = vld [vmem:[#allocation29 + $0x770] sm:$0xff]  ;;  %v2474_v4 = vld [vmem:[#allocation29 + $0x828] sm:$0xff]  ;;  %v5329_v8 = vpack.c.bf16 %v2449_v62, %v2425_v61  ;;  %v2606_v50 = vrot.slane %v2597_v47, %v6387_v45  ;;  %v2614_v51 = vrot.slane %v2597_v47, %v6389_v46 }
 0x983   :  { %v5361_v9 = vpack.c.bf16 %v2451_v3, %v2427_v1  ;;  %v6401_v1 = vsub.s32 6, %v2604_v44  ;;  %v6403_v3 = vsub.s32 5, %v2604_v44 }
 0x985   :  { %5278 = vmatpush1.bf16.msra.mxu1 %v5277_v11  ;;  %5310 = vmatpush1.bf16.msra.mxu0 %v5309_v12  ;;  %v2497_v11 = vld [vmem:[#allocation29 + $0x8e0] sm:$0xff]  ;;  %v5331_v12 = vpack.c.bf16 %v2498_v5, %v2474_v4  ;;  %v6405_v4 = vsub.s32 7, %v2604_v44  ;;  %v2630_v6 = vrot.slane %v2597_v47, %v6401_v1  ;;  %v2626_v7 = vrot.slane %v2597_v47, %v6403_v3 }
 0x986   :  { %5312 = vmatprep.subr.bf16.mxu1 %v5311_v16  ;;  %5344 = vmatprep.subr.bf16.mxu0 %v5343_v17  ;;  %v2499_v16 = vld [vmem:[#allocation29 + $0x8f0] sm:$0xff]  ;;  %v2522_v17 = vld [vmem:[#allocation29 + $0x9a8] sm:$0xff]  ;;  %v5333_v21 = vpack.c.bf16 %v2497_v11, %v2473_v10 }
 0x987   :  { %v5365_v22 = vpack.c.bf16 %v2499_v16, %v2475_v14 }
 0x988   :  { %3356 = vmatmul.mubr.f32.vlgmr.msra.gmra.mrb[26].mxu1 %v6363_v15  ;;  %3427 = vmatmul.mubr.f32.vlgmr.msra.gmra.mrb[28].mxu0 %v6363_v15 }
 0x989   :  { %5314 = vmatpush1.bf16.msra.mxu1 %v5313_v24  ;;  %5346 = vmatpush1.bf16.msra.mxu0 %v5345_v36  ;;  %v2545_v24 = vld [vmem:[#allocation29 + $0xa60] sm:$0xff]  ;;  %v5335_v36 = vpack.c.bf16 %v2546_v18, %v2522_v17 }
 0x98a   :  { %5316 = vmatprep.subr.bf16.mxu1 %v5315_v27  ;;  %5348 = vmatprep.subr.bf16.mxu0 %v5347_v28  ;;  %v2547_v27 = vld [vmem:[#allocation29 + $0xa70] sm:$0xff]  ;;  %v2570_v28 = vld [vmem:[#allocation29 + $0xb28] sm:$0xff]  ;;  %v5337_v32 = vpack.c.bf16 %v2545_v24, %v2521_v23 }
 0x98b   :  { %3497 = vmatprep.mubr.f32.mxu1 %v5937_v2  ;;  %3568 = vmatprep.mubr.f32.mxu0 %v5937_v2  ;;  %v5357_v2 = vpack.c.bf16 %v2403_v55, %v2379_v54  ;;  %v5369_v33 = vpack.c.bf16 %v2547_v27, %v2523_v26 }
 0x98d   :  { %5318 = vmatpush1.bf16.msra.mxu1 %v5317_v35  ;;  %5350 = vmatpush1.bf16.msra.mxu0 %v5349_v37  ;;  %v5339_v35 = vpack.c.bf16 %v2594_v29, %v2570_v28  ;;  %v5371_v37 = vpack.c.bf16 %v2596_v31, %v2572_v30 }
 0x98e   :  { %5320 = vmatprep.subr.bf16.mxu1 %v5319_v40  ;;  %5352 = vmatprep.subr.bf16.mxu0 %v5351_v41  ;;  %v2595_v40 = vld [vmem:[#allocation29 + $0xbf0] sm:$0xff]  ;;  %v5341_v41 = vpack.c.bf16 %v2593_v38, %v2569_v34 }
 0x98f   :  { %v5373_v42 = vpack.c.bf16 %v2595_v40, %v2571_v39 }
 0x991   :  { %5322 = vmatpush1.bf16.msra.mxu1 %v5321_v48  ;;  %5354 = vmatpush1.bf16.msra.mxu0 %v5353_v49  ;;  %v6391_v48 = vsub.s32 1, %v2604_v44  ;;  %v6393_v49 = vsub.s32 3, %v2604_v44 }
 0x992   :  { %5324 = vmatprep.subr.bf16.mxu1 %v5323_v52  ;;  %5356 = vmatprep.subr.bf16.mxu0 %v5355_v53 }
 0x993   :  { %v2610_v52 = vrot.slane %v2597_v47, %v6391_v48  ;;  %v2618_v53 = vrot.slane %v2597_v47, %v6393_v49 }
 0x995   :  { %5326 = vmatpush1.bf16.msra.mxu1 %v5325_v60  ;;  %5358 = vmatpush1.bf16.msra.mxu0 %v5357_v2 }
 0x996   :  { %5328 = vmatprep.subr.bf16.mxu1 %v5327_v63  ;;  %5360 = vmatprep.subr.bf16.mxu0 %v5359_v0  ;;  %v6399_v0 = vsub.s32 4, %v2604_v44 }
 0x998   :  { %v2622_v5 = vrot.slane %v2597_v47, %v6399_v0 }
 0x999   :  { %5330 = vmatpush1.bf16.msra.mxu1 %v5329_v8  ;;  %5362 = vmatpush1.bf16.msra.mxu0 %v5361_v9  ;;  %v2634_v8 = vrot.slane %v2597_v47, %v6405_v4 }
 0x99a   :  { %5332 = vmatprep.subr.bf16.mxu1 %v5331_v12  ;;  %5364 = vmatprep.subr.bf16.mxu0 %v5363_v13 }
 0x99d   :  { %5334 = vmatpush1.bf16.msra.mxu1 %v5333_v21  ;;  %5366 = vmatpush1.bf16.msra.mxu0 %v5365_v22  ;;  %v2598_v22 = vld [vmem:[#allocation31 + $0x8] sm:$0xff] }
 0x99e   :  { %5336 = vmatprep.subr.bf16.mxu1 %v5335_v36  ;;  %5368 = vmatprep.subr.bf16.mxu0 %v5367_v25  ;;  %v2638_v23 = vrot.slane %v2598_v22, %v6387_v45  ;;  %v2646_v24 = vrot.slane %v2598_v22, %v6389_v46  ;;  %v2642_v36 = vrot.slane %v2598_v22, %v6391_v48 }
 0x99f   :  { %v2650_v25 = vrot.slane %v2598_v22, %v6393_v49  ;;  %v2654_v39 = vrot.slane %v2598_v22, %v6399_v0  ;;  %v2662_v40 = vrot.slane %v2598_v22, %v6401_v1 }
 0x9a1   :  { %5338 = vmatpush1.bf16.msra.mxu1 %v5337_v32  ;;  %5370 = vmatpush1.bf16.msra.mxu0 %v5369_v33 }
 0x9a2   :  { %5340 = vmatprep.subr.bf16.mxu1 %v5339_v35  ;;  %5372 = vmatprep.subr.bf16.mxu0 %v5371_v37 }
 0x9a5   :  { %5342 = vmatpush1.bf16.msra.mxu1 %v5341_v41  ;;  %5374 = vmatpush1.bf16.msra.mxu0 %v5373_v42  ;;  %v2658_v41 = vrot.slane %v2598_v22, %v6403_v3  ;;  %v2666_v42 = vrot.slane %v2598_v22, %v6405_v4 }
 0x9a8   :  { %3498 = vmatmul.mubr.f32.vlgmr.msra.gmra.mrb[28].mxu1 %v6363_v15  ;;  %3569 = vmatmul.mubr.f32.vlgmr.msra.gmra.mrb[30].mxu0 %v6363_v15 }
 0x9db   :  { %v2789_v15 = vpop.f32.mrb[18].mxu1  ;;  %v2860_v54 = vpop.f32.mrb[20].mxu0 }
 0x9dc   :  { %v2790_v55 = vadd.f32 %v2789_v15, %v2606_v50  ;;  %v2861_v56 = vadd.f32 %v2860_v54, %v2614_v51  ;;  %v2791_v57 = vpop.f32.mrb[19].mxu1  ;;  %v2862_v58 = vpop.f32.mrb[21].mxu0 }
 0x9dd   :  { %v2792_v59 = vadd.f32 %v2791_v57, %v2610_v52  ;;  %v2863_v60 = vadd.f32 %v2862_v58, %v2618_v53  ;;  %v2599_v58 = vld [vmem:[#allocation31 + $0x10] sm:$0xff] }
 0x9de   :  { %5402 = vtanh.f32 %v2790_v55 }
 0x9df   :  { %5404 = vtanh.f32 %v2861_v56 }
 0x9e0   :  { %5406 = vtanh.f32 %v2792_v59  ;;  %v2670_v59 = vrot.slane %v2599_v58, %v6387_v45 }
 0x9e1   :  { %5408 = vtanh.f32 %v2863_v60  ;;  %v2678_v60 = vrot.slane %v2599_v58, %v6389_v46 }
 0x9e8   :  { %v5403_v2 = vpop.eup %5402 }
 0x9e9   :  { %v5405_v61 = vpop.eup %5404  ;;  %3599 = vst [vmem:[#allocation32] sm:$0xff] %v5403_v2  ;;  %v2674_v2 = vrot.slane %v2599_v58, %v6391_v48 }
 0x9ea   :  { %v5407_v62 = vpop.eup %5406  ;;  %3601 = vst [vmem:[#allocation32 + $0x10] sm:$0xff] %v5405_v61  ;;  %v2682_v61 = vrot.slane %v2599_v58, %v6393_v49  ;;  %v2686_v49 = vrot.slane %v2599_v58, %v6399_v0 }
 0x9eb   :  { %v5409_v63 = vpop.eup %5408  ;;  %3600 = vst [vmem:[#allocation32 + $0x8] sm:$0xff] %v5407_v62 }
 0x9ec   :  { %3602 = vst [vmem:[#allocation32 + $0x18] sm:$0xff] %v5409_v63 }
 0x9fb   :  { %v2931_v9 = vpop.f32.mrb[20].mxu1  ;;  %v3002_v10 = vpop.f32.mrb[22].mxu0 }
 0x9fc   :  { %v2932_v11 = vadd.f32 %v2931_v9, %v2622_v5  ;;  %v3003_v12 = vadd.f32 %v3002_v10, %v2630_v6  ;;  %v2933_v13 = vpop.f32.mrb[21].mxu1  ;;  %v3004_v14 = vpop.f32.mrb[23].mxu0 }
 0x9fd   :  { %v2934_v16 = vadd.f32 %v2933_v13, %v2626_v7  ;;  %v3005_v17 = vadd.f32 %v3004_v14, %v2634_v8  ;;  %v2690_v13 = vrot.slane %v2599_v58, %v6403_v3  ;;  %v2698_v14 = vrot.slane %v2599_v58, %v6405_v4 }
 0x9fe   :  { %5410 = vtanh.f32 %v2932_v11 }
 0x9ff   :  { %5412 = vtanh.f32 %v3003_v12  ;;  %v2694_v12 = vrot.slane %v2599_v58, %v6401_v1 }
 0xa00   :  { %5414 = vtanh.f32 %v2934_v16 }
 0xa01   :  { %5416 = vtanh.f32 %v3005_v17 }
 0xa08   :  { %v5411_v18 = vpop.eup %5410 }
 0xa09   :  { %v5413_v19 = vpop.eup %5412  ;;  %3603 = vst [vmem:[#allocation32 + $0x20] sm:$0xff] %v5411_v18 }
 0xa0a   :  { %v5415_v20 = vpop.eup %5414  ;;  %3605 = vst [vmem:[#allocation32 + $0x30] sm:$0xff] %v5413_v19 }
 0xa0b   :  { %v5417_v21 = vpop.eup %5416  ;;  %3604 = vst [vmem:[#allocation32 + $0x28] sm:$0xff] %v5415_v20 }
 0xa0c   :  { %3606 = vst [vmem:[#allocation32 + $0x38] sm:$0xff] %v5417_v21 }
 0xa1b   :  { %v3073_v26 = vpop.f32.mrb[22].mxu1  ;;  %v3144_v27 = vpop.f32.mrb[24].mxu0 }
 0xa1c   :  { %v3074_v28 = vadd.f32 %v3073_v26, %v2638_v23  ;;  %v3145_v29 = vadd.f32 %v3144_v27, %v2646_v24  ;;  %v3075_v30 = vpop.f32.mrb[23].mxu1  ;;  %v3146_v31 = vpop.f32.mrb[25].mxu0 }
 0xa1d   :  { %v3076_v32 = vadd.f32 %v3075_v30, %v2642_v36  ;;  %v3147_v33 = vadd.f32 %v3146_v31, %v2650_v25 }
 0xa1e   :  { %5418 = vtanh.f32 %v3074_v28 }
 0xa1f   :  { %5420 = vtanh.f32 %v3145_v29 }
 0xa20   :  { %5422 = vtanh.f32 %v3076_v32 }
 0xa21   :  { %5424 = vtanh.f32 %v3147_v33 }
 0xa28   :  { %v5419_v34 = vpop.eup %5418 }
 0xa29   :  { %v5421_v35 = vpop.eup %5420  ;;  %3607 = vst [vmem:[#allocation32 + $0x40] sm:$0xff] %v5419_v34 }
 0xa2a   :  { %v5423_v37 = vpop.eup %5422  ;;  %3609 = vst [vmem:[#allocation32 + $0x50] sm:$0xff] %v5421_v35 }
 0xa2b   :  { %v5425_v38 = vpop.eup %5424  ;;  %3608 = vst [vmem:[#allocation32 + $0x48] sm:$0xff] %v5423_v37 }
 0xa2c   :  { %3610 = vst [vmem:[#allocation32 + $0x58] sm:$0xff] %v5425_v38 }
 0xa3b   :  { %v3215_v43 = vpop.f32.mrb[24].mxu1  ;;  %v3286_v44 = vpop.f32.mrb[26].mxu0 }
 0xa3c   :  { %v3216_v47 = vadd.f32 %v3215_v43, %v2654_v39  ;;  %v3287_v50 = vadd.f32 %v3286_v44, %v2662_v40  ;;  %v3217_v51 = vpop.f32.mrb[25].mxu1  ;;  %v3288_v52 = vpop.f32.mrb[27].mxu0 }
 0xa3d   :  { %v3218_v53 = vadd.f32 %v3217_v51, %v2658_v41  ;;  %v3289_v15 = vadd.f32 %v3288_v52, %v2666_v42 }
 0xa3e   :  { %5426 = vtanh.f32 %v3216_v47 }
 0xa3f   :  { %5428 = vtanh.f32 %v3287_v50 }
 0xa40   :  { %5430 = vtanh.f32 %v3218_v53 }
 0xa41   :  { %5432 = vtanh.f32 %v3289_v15 }
 0xa48   :  { %v5427_v54 = vpop.eup %5426 }
 0xa49   :  { %v5429_v55 = vpop.eup %5428  ;;  %3611 = vst [vmem:[#allocation32 + $0x60] sm:$0xff] %v5427_v54 }
 0xa4a   :  { %v5431_v56 = vpop.eup %5430  ;;  %3613 = vst [vmem:[#allocation32 + $0x70] sm:$0xff] %v5429_v55 }
 0xa4b   :  { %v5433_v57 = vpop.eup %5432  ;;  %3612 = vst [vmem:[#allocation32 + $0x68] sm:$0xff] %v5431_v56 }
 0xa4c   :  { %3614 = vst [vmem:[#allocation32 + $0x78] sm:$0xff] %v5433_v57 }
 0xa5b   :  { %v3357_v62 = vpop.f32.mrb[26].mxu1  ;;  %v3428_v63 = vpop.f32.mrb[28].mxu0 }
 0xa5c   :  { %v3358_v5 = vadd.f32 %v3357_v62, %v2670_v59  ;;  %v3429_v6 = vadd.f32 %v3428_v63, %v2678_v60  ;;  %v3359_v7 = vpop.f32.mrb[27].mxu1  ;;  %v3430_v8 = vpop.f32.mrb[29].mxu0 }
 0xa5d   :  { %v3360_v9 = vadd.f32 %v3359_v7, %v2674_v2  ;;  %v3431_v10 = vadd.f32 %v3430_v8, %v2682_v61 }
 0xa5e   :  { %5434 = vtanh.f32 %v3358_v5 }
 0xa5f   :  { %5436 = vtanh.f32 %v3429_v6 }
 0xa60   :  { %5438 = vtanh.f32 %v3360_v9 }
 0xa61   :  { %5440 = vtanh.f32 %v3431_v10 }
 0xa68   :  { %v5435_v11 = vpop.eup %5434 }
 0xa69   :  { %v5437_v45 = vpop.eup %5436  ;;  %3615 = vst [vmem:[#allocation32 + $0x80] sm:$0xff] %v5435_v11 }
 0xa6a   :  { %v5439_v46 = vpop.eup %5438  ;;  %3617 = vst [vmem:[#allocation32 + $0x90] sm:$0xff] %v5437_v45 }
 0xa6b   :  { %v5441_v48 = vpop.eup %5440  ;;  %3616 = vst [vmem:[#allocation32 + $0x88] sm:$0xff] %v5439_v46 }
 0xa6c   :  { %3618 = vst [vmem:[#allocation32 + $0x98] sm:$0xff] %v5441_v48 }
 0xa7b   :  { %v3499_v16 = vpop.f32.mrb[28].mxu1  ;;  %v3570_v17 = vpop.f32.mrb[30].mxu0 }
 0xa7c   :  { %v3500_v18 = vadd.f32 %v3499_v16, %v2686_v49  ;;  %v3571_v19 = vadd.f32 %v3570_v17, %v2694_v12  ;;  %v3501_v20 = vpop.f32.mrb[29].mxu1  ;;  %v3572_v21 = vpop.f32.mrb[31].mxu0 }
 0xa7d   :  { %v3502_v22 = vadd.f32 %v3501_v20, %v2690_v13  ;;  %v3573_v23 = vadd.f32 %v3572_v21, %v2698_v14 }
 0xa7e   :  { %5442 = vtanh.f32 %v3500_v18 }
 0xa7f   :  { %5444 = vtanh.f32 %v3571_v19 }
 0xa80   :  { %5446 = vtanh.f32 %v3502_v22 }
 0xa81   :  { %5448 = vtanh.f32 %v3573_v23 }
 0xa88   :  { %v5443_v0 = vpop.eup %5442 }
 0xa89   :  { %v5445_v1 = vpop.eup %5444  ;;  %3619 = vst [vmem:[#allocation32 + $0xa0] sm:$0xff] %v5443_v0 }
 0xa8a   :  { %v5447_v3 = vpop.eup %5446  ;;  %3621 = vst [vmem:[#allocation32 + $0xb0] sm:$0xff] %v5445_v1 }
 0xa8b   :  { %v5449_v4 = vpop.eup %5448  ;;  %3620 = vst [vmem:[#allocation32 + $0xa8] sm:$0xff] %v5447_v3 }
 0xa8c   :  { %3622 = vst [vmem:[#allocation32 + $0xb8] sm:$0xff] %v5449_v4 }
 0xa8d   :  { %5879 = shalt.err (!%p5876_p2)
}
 0xa8e   :  { %s6479_s2 = sld [smem:[#allocation50_spill]] }
 0xa94   :  { %s5880_s8 = scalar_lea.hbm %s6479_s2, 3072 }
 0xa95   :  { %p5881_p3 = scmp.ne.s32.totalorder %s6479_s2, %s5880_s8  ;;  %p5884_p4 = scmp.lt.u32.totalorder %s5880_s8, %s6479_s2 }
 0xa97   :  { %p5886_p5 = pnand %p5884_p4, %p5881_p3 }
 0xa99   :  { %5889 = shalt.err (!%p5886_p5)
}
 0xa9a   :  { %3632 = dma.vmem_to_hbm [thread:$0]  %s3630_s15, 3072, %s6479_s2, [#allocation4]  }
 0xa9b   :  { %5910 = dma.done.wait [#allocation4], 3072  }
 0xa9c   :  { %5911 = vsyncadd [#allocation4], 4294964224 }
 0xa9d   :  { %3636 = vsyncpa [#allocation3], 1 }
 0xa9e   :  { %3637 = vsyncpa [#allocation6], 1 }
 0xa9f   :  { %3638 = vsyncpa [#allocation9], 1 }
 0xaa0   :  { %3639 = vsyncpa [#allocation12], 1 }
 0xaa1   :  { %3640 = vsyncpa [#allocation15], 1 }
 0xaa2   :  { %3641 = vsyncpa [#allocation18], 1 }
 0xaa3   :  { %3642 = vsyncpa [#allocation21], 1 }
 0xaa4   :  { %3643 = vsyncpa [#allocation24], 1 }
 0xaa5   :  { %3644 = vsyncpa [#allocation27], 1 }
 0xaa6   :  { %3645 = vsyncpa [#allocation30], 1 }
 0xaa7   :  { %3646 = vsyncpa [#allocation4], 1 }

</bundles_post_ra>
